<compile_context>
chip_gen: v7x
topology: tpu7x:2x2x1
jax: 0.10.0
libtpu: 0.0.40
codegen_flags: <defaults>
</compile_context>

<pallas_src>
import functools

import jax
import jax.numpy as jnp
import numpy as np
from jax.experimental import pallas as pl
from jax.experimental.pallas import tpu as pltpu


# --------------------------------------------------------------------------
# In-kernel helpers
# --------------------------------------------------------------------------

def _mm16(a, b, zero):
    """Row-major-flattened 4x4 product on 'struct of 16' operands.

    `a`, `b` are length-16 Python lists of arrays (broadcast-compatible
    elementwise), `None` marking a structural zero.  Pure VPU multiply-adds:
    no slicing, no concatenation, no MXU.
    """
    out = []
    for r in range(4):
        for c in range(4):
            acc = None
            for k in range(4):
                x, y = a[4 * r + k], b[4 * k + c]
                if x is None or y is None:
                    continue
                term = x * y
                acc = term if acc is None else acc + term
            out.append(zero if acc is None else acc)
    return out


def _fused_kernel(q_ref, out_ref, *, L0, d_m, d_s_r, d_s_a,
                  num_segments, num_sensors_per_segment):
    """Fused RobotKinematics forward: PCC transforms + chain + magnets + sensors."""
    S = num_segments
    nsps = num_sensors_per_segment
    n_sens = S * nsps

    # ---------------- per-segment PCC transform (vectorized over segments) ----
    q = q_ref[...]                          # (S, 3): columns = (dx, dy, dL)
    dx = q[:, 0:1]                          # (S, 1)
    dy = q[:, 1:2]
    dL = q[:, 2:3]
    L = L0 + dL
    d2 = dx * dx + dy * dy
    small = d2 < 1e-12
    d2s = jnp.where(small, 1.0, d2)
    delta = jnp.sqrt(d2s)                                                # EUP
    sder = jnp.where(small, 1.0 - d2 / 6.0, jnp.sin(delta) / delta)      # sin(d)/d
    cder = jnp.where(small, 0.5 - d2 / 24.0, (1.0 - jnp.cos(delta)) / d2s)
    cosd = jnp.where(small, 1.0 - d2 / 2.0, jnp.cos(delta))

    zero = jnp.zeros_like(dx)               # (S, 1) built from a traced value
    one = zero + 1.0

    # struct-of-16 (row-major 4x4), each element a (S, 1) column
    ti = [
        1.0 - dx * dx * cder, -dx * dy * cder, dx * sder, L * dx * cder,
        -dx * dy * cder, 1.0 - dy * dy * cder, dy * sder, L * dy * cder,
        -dx * sder, -dy * sder, cosd, L * sder,
        zero, zero, zero, one,
    ]

    # local magnet frame: tip frame translated by -d_m along the local tip z
    tm_local = list(ti)
    for r in range(3):
        tm_local[4 * r + 3] = ti[4 * r + 3] - d_m * ti[4 * r + 2]

    # ---------------- serial chain: T_base[i], T_tip[i] -----------------------
    one11 = one[0:1, :]
    zero11 = zero[0:1, :]
    eye16 = [one11 if (k % 5) == 0 else zero11 for k in range(16)]

    roll = eye16                            # list of 16 (1, 1) values
    base_segs, tip_segs = [], []
    for i in range(S):                      # tiny static trip count (unrolled);
        base_segs.append(roll)              # switch to fori_loop / scan if S >> 8
        ti_i = [t[i:i + 1, :] for t in ti]  # 16 (1, 1) slices for segment i
        roll = ti_i if i == 0 else _mm16(roll, ti_i, zero11)   # roll = roll @ T_i
        tip_segs.append(roll)

    # struct-of-16 T_base / T_tip as (S, 1) columns (concat once, used batched)
    base = [jnp.concatenate([base_segs[i][e] for i in range(S)], axis=0)
            for e in range(16)]
    tip = [jnp.concatenate([tip_segs[i][e] for i in range(S)], axis=0)
           for e in range(16)]

    # ---------------- magnets: ONE batched S-wide 4x4 product -----------------
    mag = _mm16(base, tm_local, zero)       # T_base[i] @ T_m_local[i], all i

    # ---------------- sensors: ONE batched (S*nsps)-wide 4x4 product ----------
    # Sensor-local frames Rz(theta_j) + [d_s_r*cos, d_s_r*sin, d_s_a] are
    # compile-time floats: materialize them from traced zeros (no captured
    # constant arrays, no input DMA).
    theta = [2.0 * np.pi * j / nsps for j in range(nsps)]
    ct_n = jnp.concatenate([zero11 + float(np.cos(t)) for t in theta], axis=0)
    st_n = jnp.concatenate([zero11 + float(np.sin(t)) for t in theta], axis=0)
    ct = jnp.concatenate([ct_n] * S, axis=0)          # (S*nsps, 1), segment-major
    st = jnp.concatenate([st_n] * S, axis=0)
    zN = jnp.zeros_like(ct)
    oN = zN + 1.0
    tsE = [ct, -st, None, d_s_r * ct,                 # None = structural zero
           st, ct, None, d_s_r * st,
           None, None, oN, zN + d_s_a,
           None, None, None, oN]

    # T_base repeated nsps times per segment (segment-major), each (S*nsps, 1)
    z_nsps = jnp.zeros_like(ct_n)                     # (nsps, 1)
    base_rep = [jnp.concatenate([base_segs[i][e] + z_nsps for i in range(S)], axis=0)
                for e in range(16)]

    sens = _mm16(base_rep, tsE, zN)         # T_base[i] @ T_s_local[j], all (i, j)

    # ---------------- single packed output slab + single store ----------------
    def _slab(cols):                        # 16 x (N, 1) -> (N, 16)
        return jnp.concatenate(cols, axis=1)

    out_ref[...] = jnp.concatenate(
        [_slab(base), _slab(tip), _slab(mag), _slab(sens)], axis=0)


# --------------------------------------------------------------------------
# Wrapper (layout plumbing only: reshape + slice, no transposes)
# --------------------------------------------------------------------------

def robot_kinematics_forward(q, *, L0, d_m, num_sensors_per_segment, d_s_r, d_s_a):
    """Returns (T_base, T_tip, T_magnets, T_sensors), mirroring torch forward()."""
    q = jnp.asarray(q, jnp.float32)
    if q.ndim == 1:
        q = q[None, :]
    S = int(q.shape[0])
    nsps = int(num_sensors_per_segment)
    n_total = 3 * S + S * nsps

    kernel = functools.partial(
        _fused_kernel, L0=float(L0), d_m=float(d_m),
        d_s_r=float(d_s_r), d_s_a=float(d_s_a),
        num_segments=S, num_sensors_per_segment=nsps)

    slab = pl.pallas_call(
        kernel,
        out_shape=jax.ShapeDtypeStruct((n_total, 16), jnp.float32),
        in_specs=[pl.BlockSpec(memory_space=pltpu.MemorySpace.VMEM)],
        out_specs=pl.BlockSpec(memory_space=pltpu.MemorySpace.VMEM),
    )(q)

    mats = slab.reshape(n_total, 4, 4)      # row-major reshape, no transpose
    T_base = mats[0:S]
    T_tip = mats[S:2 * S]
    T_magnets = mats[2 * S:3 * S]
    T_sensors = mats[3 * S:]
    return T_base, T_tip, T_magnets, T_sensors


def segment_id_per_sensor(num_segments, num_sensors_per_segment):
    """torch attribute equivalent (1-based segment ids, like the original)."""
    return jnp.repeat(jnp.arange(1, num_segments + 1, dtype=jnp.int32),
                      num_sensors_per_segment)


# TODO(synk): get_translations() (data-dependent boolean-masked arc-length
# query) is not part of forward() and is left unimplemented.


# --------------------------------------------------------------------------
# Plain-JAX reference (for the in-script correctness check)
# --------------------------------------------------------------------------

def _pcc_transform_ref(qi, L0):
    dx, dy, dL = qi[0], qi[1], qi[2]
    L = L0 + dL
    d2 = dx * dx + dy * dy
    small = d2 < 1e-12
    d2s = jnp.where(small, 1.0, d2)
    delta = jnp.sqrt(d2s)
    s = jnp.where(small, 1.0 - d2 / 6.0, jnp.sin(delta) / delta)
    c = jnp.where(small, 0.5 - d2 / 24.0, (1.0 - jnp.cos(delta)) / d2s)
    cosd = jnp.where(small, 1.0 - d2 / 2.0, jnp.cos(delta))
    row0 = jnp.stack([1.0 - dx * dx * c, -dx * dy * c, dx * s, L * dx * c])
    row1 = jnp.stack([-dx * dy * c, 1.0 - dy * dy * c, dy * s, L * dy * c])
    row2 = jnp.stack([-dx * s, -dy * s, cosd, L * s])
    row3 = jnp.array([0.0, 0.0, 0.0, 1.0], dtype=jnp.float32)
    return jnp.stack([row0, row1, row2, row3])


def _sensor_local_transforms_ref(nsps, d_s_r, d_s_a):
    theta = 2.0 * np.pi * np.arange(nsps, dtype=np.float32) / nsps
    ct, st = np.cos(theta).astype(np.float32), np.sin(theta).astype(np.float32)
    z, o = np.zeros_like(ct), np.ones_like(ct)
    T = np.stack([
        np.stack([ct, -st, z, d_s_r * ct], axis=-1),
        np.stack([st, ct, z, d_s_r * st], axis=-1),
        np.stack([z, z, o, d_s_a * o], axis=-1),
        np.stack([z, z, z, o], axis=-1),
    ], axis=-2).astype(np.float32)
    return jnp.asarray(T)                   # (nsps, 4, 4)


# --------------------------------------------------------------------------
# main
# --------------------------------------------------------------------------

if __name__ == "__main__":
    num_segments = 3
    num_sensors_per_segment = 4
    L0, d, d_m, d_s_r, d_s_a = 0.11, 0.02, 0.017, 0.012, 0.005  # d unused here

    key = jax.random.PRNGKey(0)
    q = 0.2 * jax.random.normal(key, (num_segments, 3), dtype=jnp.float32)

    fwd = jax.jit(functools.partial(
        robot_kinematics_forward, L0=L0, d_m=d_m,
        num_sensors_per_segment=num_sensors_per_segment,
        d_s_r=d_s_r, d_s_a=d_s_a))

    def reference(qq):
        T_i = jax.vmap(lambda qi: _pcc_transform_ref(qi, L0))(qq)
        roll = jnp.eye(4, dtype=jnp.float32)
        base_list, tip_list = [], []
        for i in range(num_segments):
            base_list.append(roll)
            roll = roll @ T_i[i]
            tip_list.append(roll)
        T_base_r = jnp.stack(base_list)
        T_tip_r = jnp.stack(tip_list)

        T_s_local = _sensor_local_transforms_ref(
            num_sensors_per_segment, d_s_r, d_s_a)                  # (nsps,4,4)
        sid = np.repeat(np.arange(num_segments), num_sensors_per_segment)
        T_s_all = jnp.tile(T_s_local, (num_segments, 1, 1))
        T_sensors_r = jnp.einsum('nij,njk->nik', T_base_r[sid], T_s_all)

        offs = jnp.array([0.0, 0.0, -d_m, 1.0], jnp.float32)
        p = jnp.einsum('sij,j->si', T_i, offs)
        T_m_local = T_i.at[:, :, 3].set(p)
        T_magnets_r = jnp.einsum('sij,sjk->sik', T_base_r, T_m_local)
        return T_base_r, T_tip_r, T_magnets_r, T_sensors_r

    outs = None
    # random configuration + straight configuration (torch __init__ path)
    for test_q in (q, jnp.zeros((num_segments, 3), jnp.float32)):
        outs = jax.block_until_ready(fwd(test_q))
        refs = reference(test_q)
        for o, r in zip(outs, refs):
            o_np, r_np = np.asarray(o), np.asarray(r)
            assert o_np.shape == r_np.shape, (o_np.shape, r_np.shape)
            assert np.allclose(o_np, r_np, atol=1e-5), float(np.max(np.abs(o_np - r_np)))

    T_base, T_tip, T_magnets, T_sensors = outs
    assert T_base.shape == (num_segments, 4, 4)
    assert T_tip.shape == (num_segments, 4, 4)
    assert T_magnets.shape == (num_segments, 4, 4)
    assert T_sensors.shape == (num_segments * num_sensors_per_segment, 4, 4)

    print("KERNEL_OK")
</pallas_src>

<mosaic_0001>
module attributes {stable_mosaic.version = 11 : i64} {
  func.func @_fused_kernel(%arg0: memref<3x3xf32, #tpu.memory_space<vmem>>, %arg1: memref<21x16xf32, #tpu.memory_space<vmem>>) attributes {dimension_semantics = [], scalar_prefetch = 0 : i64, scratch_operands = 0 : i64, tpu.core_type = #tpu.core_type<tc>} {
    %c0 = arith.constant 0 : index
    %c0_0 = arith.constant 0 : index
    %0 = vector.load %arg0[%c0, %c0_0] : memref<3x3xf32, #tpu.memory_space<vmem>>, vector<3x3xf32>
    %1 = vector.extract_strided_slice %0 {offsets = [0, 0], sizes = [3, 1], strides = [1, 1]} : vector<3x3xf32> to vector<3x1xf32>
    %2 = vector.extract_strided_slice %0 {offsets = [0, 1], sizes = [3, 1], strides = [1, 1]} : vector<3x3xf32> to vector<3x1xf32>
    %3 = vector.extract_strided_slice %0 {offsets = [0, 2], sizes = [3, 1], strides = [1, 1]} : vector<3x3xf32> to vector<3x1xf32>
    %cst = arith.constant 1.100000e-01 : f32
    %4 = vector.broadcast %cst : f32 to vector<3x1xf32>
    %5 = arith.addf %4, %3 : vector<3x1xf32>
    %6 = arith.mulf %1, %1 : vector<3x1xf32>
    %7 = arith.mulf %2, %2 : vector<3x1xf32>
    %8 = arith.addf %6, %7 : vector<3x1xf32>
    %cst_1 = arith.constant 9.99999996E-13 : f32
    %9 = vector.broadcast %cst_1 : f32 to vector<3x1xf32>
    %10 = arith.cmpf olt, %8, %9 : vector<3x1xf32>
    %cst_2 = arith.constant 1.000000e+00 : f32
    %11 = vector.broadcast %cst_2 : f32 to vector<3x1xf32>
    %12 = arith.select %10, %11, %8 : vector<3x1xi1>, vector<3x1xf32>
    %13 = math.sqrt %12 : vector<3x1xf32>
    %cst_3 = arith.constant 6.000000e+00 : f32
    %14 = vector.broadcast %cst_3 : f32 to vector<3x1xf32>
    %15 = arith.divf %8, %14 : vector<3x1xf32>
    %cst_4 = arith.constant 1.000000e+00 : f32
    %16 = vector.broadcast %cst_4 : f32 to vector<3x1xf32>
    %17 = arith.subf %16, %15 : vector<3x1xf32>
    %18 = math.sin %13 : vector<3x1xf32>
    %19 = arith.divf %18, %13 : vector<3x1xf32>
    %20 = arith.select %10, %17, %19 : vector<3x1xi1>, vector<3x1xf32>
    %cst_5 = arith.constant 2.400000e+01 : f32
    %21 = vector.broadcast %cst_5 : f32 to vector<3x1xf32>
    %22 = arith.divf %8, %21 : vector<3x1xf32>
    %cst_6 = arith.constant 5.000000e-01 : f32
    %23 = vector.broadcast %cst_6 : f32 to vector<3x1xf32>
    %24 = arith.subf %23, %22 : vector<3x1xf32>
    %25 = math.cos %13 : vector<3x1xf32>
    %cst_7 = arith.constant 1.000000e+00 : f32
    %26 = vector.broadcast %cst_7 : f32 to vector<3x1xf32>
    %27 = arith.subf %26, %25 : vector<3x1xf32>
    %28 = arith.divf %27, %12 : vector<3x1xf32>
    %29 = arith.select %10, %24, %28 : vector<3x1xi1>, vector<3x1xf32>
    %cst_8 = arith.constant 2.000000e+00 : f32
    %30 = vector.broadcast %cst_8 : f32 to vector<3x1xf32>
    %31 = arith.divf %8, %30 : vector<3x1xf32>
    %cst_9 = arith.constant 1.000000e+00 : f32
    %32 = vector.broadcast %cst_9 : f32 to vector<3x1xf32>
    %33 = arith.subf %32, %31 : vector<3x1xf32>
    %34 = math.cos %13 : vector<3x1xf32>
    %35 = arith.select %10, %33, %34 : vector<3x1xi1>, vector<3x1xf32>
    %cst_10 = arith.constant 0.000000e+00 : f32
    %36 = vector.broadcast %cst_10 : f32 to vector<3x1xf32>
    %cst_11 = arith.constant 1.000000e+00 : f32
    %37 = vector.broadcast %cst_11 : f32 to vector<3x1xf32>
    %38 = arith.addf %36, %37 : vector<3x1xf32>
    %39 = arith.mulf %1, %1 : vector<3x1xf32>
    %40 = arith.mulf %39, %29 : vector<3x1xf32>
    %cst_12 = arith.constant 1.000000e+00 : f32
    %41 = vector.broadcast %cst_12 : f32 to vector<3x1xf32>
    %42 = arith.subf %41, %40 : vector<3x1xf32>
    %cst_13 = arith.constant 0.000000e+00 : f32
    %43 = vector.broadcast %cst_13 : f32 to vector<3x1xf32>
    %44 = arith.subf %43, %1 : vector<3x1xf32>
    %45 = arith.mulf %44, %2 : vector<3x1xf32>
    %46 = arith.mulf %45, %29 : vector<3x1xf32>
    %47 = arith.mulf %1, %20 : vector<3x1xf32>
    %48 = arith.mulf %5, %1 : vector<3x1xf32>
    %49 = arith.mulf %48, %29 : vector<3x1xf32>
    %cst_14 = arith.constant 0.000000e+00 : f32
    %50 = vector.broadcast %cst_14 : f32 to vector<3x1xf32>
    %51 = arith.subf %50, %1 : vector<3x1xf32>
    %52 = arith.mulf %51, %2 : vector<3x1xf32>
    %53 = arith.mulf %52, %29 : vector<3x1xf32>
    %54 = arith.mulf %2, %2 : vector<3x1xf32>
    %55 = arith.mulf %54, %29 : vector<3x1xf32>
    %cst_15 = arith.constant 1.000000e+00 : f32
    %56 = vector.broadcast %cst_15 : f32 to vector<3x1xf32>
    %57 = arith.subf %56, %55 : vector<3x1xf32>
    %58 = arith.mulf %2, %20 : vector<3x1xf32>
    %59 = arith.mulf %5, %2 : vector<3x1xf32>
    %60 = arith.mulf %59, %29 : vector<3x1xf32>
    %cst_16 = arith.constant 0.000000e+00 : f32
    %61 = vector.broadcast %cst_16 : f32 to vector<3x1xf32>
    %62 = arith.subf %61, %1 : vector<3x1xf32>
    %63 = arith.mulf %62, %20 : vector<3x1xf32>
    %cst_17 = arith.constant 0.000000e+00 : f32
    %64 = vector.broadcast %cst_17 : f32 to vector<3x1xf32>
    %65 = arith.subf %64, %2 : vector<3x1xf32>
    %66 = arith.mulf %65, %20 : vector<3x1xf32>
    %67 = arith.mulf %5, %20 : vector<3x1xf32>
    %cst_18 = arith.constant 1.700000e-02 : f32
    %68 = vector.broadcast %cst_18 : f32 to vector<3x1xf32>
    %69 = arith.mulf %68, %47 : vector<3x1xf32>
    %70 = arith.subf %49, %69 : vector<3x1xf32>
    %cst_19 = arith.constant 1.700000e-02 : f32
    %71 = vector.broadcast %cst_19 : f32 to vector<3x1xf32>
    %72 = arith.mulf %71, %58 : vector<3x1xf32>
    %73 = arith.subf %60, %72 : vector<3x1xf32>
    %cst_20 = arith.constant 1.700000e-02 : f32
    %74 = vector.broadcast %cst_20 : f32 to vector<3x1xf32>
    %75 = arith.mulf %74, %35 : vector<3x1xf32>
    %76 = arith.subf %67, %75 : vector<3x1xf32>
    %77 = vector.extract_strided_slice %38 {offsets = [0, 0], sizes = [1, 1], strides = [1, 1]} : vector<3x1xf32> to vector<1x1xf32>
    %78 = vector.extract_strided_slice %36 {offsets = [0, 0], sizes = [1, 1], strides = [1, 1]} : vector<3x1xf32> to vector<1x1xf32>
    %79 = vector.extract_strided_slice %42 {offsets = [0, 0], sizes = [1, 1], strides = [1, 1]} : vector<3x1xf32> to vector<1x1xf32>
    %80 = vector.extract_strided_slice %46 {offsets = [0, 0], sizes = [1, 1], strides = [1, 1]} : vector<3x1xf32> to vector<1x1xf32>
    %81 = vector.extract_strided_slice %47 {offsets = [0, 0], sizes = [1, 1], strides = [1, 1]} : vector<3x1xf32> to vector<1x1xf32>
    %82 = vector.extract_strided_slice %49 {offsets = [0, 0], sizes = [1, 1], strides = [1, 1]} : vector<3x1xf32> to vector<1x1xf32>
    %83 = vector.extract_strided_slice %53 {offsets = [0, 0], sizes = [1, 1], strides = [1, 1]} : vector<3x1xf32> to vector<1x1xf32>
    %84 = vector.extract_strided_slice %57 {offsets = [0, 0], sizes = [1, 1], strides = [1, 1]} : vector<3x1xf32> to vector<1x1xf32>
    %85 = vector.extract_strided_slice %58 {offsets = [0, 0], sizes = [1, 1], strides = [1, 1]} : vector<3x1xf32> to vector<1x1xf32>
    %86 = vector.extract_strided_slice %60 {offsets = [0, 0], sizes = [1, 1], strides = [1, 1]} : vector<3x1xf32> to vector<1x1xf32>
    %87 = vector.extract_strided_slice %63 {offsets = [0, 0], sizes = [1, 1], strides = [1, 1]} : vector<3x1xf32> to vector<1x1xf32>
    %88 = vector.extract_strided_slice %66 {offsets = [0, 0], sizes = [1, 1], strides = [1, 1]} : vector<3x1xf32> to vector<1x1xf32>
    %89 = vector.extract_strided_slice %35 {offsets = [0, 0], sizes = [1, 1], strides = [1, 1]} : vector<3x1xf32> to vector<1x1xf32>
    %90 = vector.extract_strided_slice %67 {offsets = [0, 0], sizes = [1, 1], strides = [1, 1]} : vector<3x1xf32> to vector<1x1xf32>
    %91 = vector.extract_strided_slice %36 {offsets = [0, 0], sizes = [1, 1], strides = [1, 1]} : vector<3x1xf32> to vector<1x1xf32>
    %92 = vector.extract_strided_slice %36 {offsets = [0, 0], sizes = [1, 1], strides = [1, 1]} : vector<3x1xf32> to vector<1x1xf32>
    %93 = vector.extract_strided_slice %36 {offsets = [0, 0], sizes = [1, 1], strides = [1, 1]} : vector<3x1xf32> to vector<1x1xf32>
    %94 = vector.extract_strided_slice %38 {offsets = [0, 0], sizes = [1, 1], strides = [1, 1]} : vector<3x1xf32> to vector<1x1xf32>
    %95 = vector.extract_strided_slice %42 {offsets = [1, 0], sizes = [1, 1], strides = [1, 1]} : vector<3x1xf32> to vector<1x1xf32>
    %96 = vector.extract_strided_slice %46 {offsets = [1, 0], sizes = [1, 1], strides = [1, 1]} : vector<3x1xf32> to vector<1x1xf32>
    %97 = vector.extract_strided_slice %47 {offsets = [1, 0], sizes = [1, 1], strides = [1, 1]} : vector<3x1xf32> to vector<1x1xf32>
    %98 = vector.extract_strided_slice %49 {offsets = [1, 0], sizes = [1, 1], strides = [1, 1]} : vector<3x1xf32> to vector<1x1xf32>
    %99 = vector.extract_strided_slice %53 {offsets = [1, 0], sizes = [1, 1], strides = [1, 1]} : vector<3x1xf32> to vector<1x1xf32>
    %100 = vector.extract_strided_slice %57 {offsets = [1, 0], sizes = [1, 1], strides = [1, 1]} : vector<3x1xf32> to vector<1x1xf32>
    %101 = vector.extract_strided_slice %58 {offsets = [1, 0], sizes = [1, 1], strides = [1, 1]} : vector<3x1xf32> to vector<1x1xf32>
    %102 = vector.extract_strided_slice %60 {offsets = [1, 0], sizes = [1, 1], strides = [1, 1]} : vector<3x1xf32> to vector<1x1xf32>
    %103 = vector.extract_strided_slice %63 {offsets = [1, 0], sizes = [1, 1], strides = [1, 1]} : vector<3x1xf32> to vector<1x1xf32>
    %104 = vector.extract_strided_slice %66 {offsets = [1, 0], sizes = [1, 1], strides = [1, 1]} : vector<3x1xf32> to vector<1x1xf32>
    %105 = vector.extract_strided_slice %35 {offsets = [1, 0], sizes = [1, 1], strides = [1, 1]} : vector<3x1xf32> to vector<1x1xf32>
    %106 = vector.extract_strided_slice %67 {offsets = [1, 0], sizes = [1, 1], strides = [1, 1]} : vector<3x1xf32> to vector<1x1xf32>
    %107 = vector.extract_strided_slice %36 {offsets = [1, 0], sizes = [1, 1], strides = [1, 1]} : vector<3x1xf32> to vector<1x1xf32>
    %108 = vector.extract_strided_slice %36 {offsets = [1, 0], sizes = [1, 1], strides = [1, 1]} : vector<3x1xf32> to vector<1x1xf32>
    %109 = vector.extract_strided_slice %36 {offsets = [1, 0], sizes = [1, 1], strides = [1, 1]} : vector<3x1xf32> to vector<1x1xf32>
    %110 = vector.extract_strided_slice %38 {offsets = [1, 0], sizes = [1, 1], strides = [1, 1]} : vector<3x1xf32> to vector<1x1xf32>
    %111 = arith.mulf %79, %95 : vector<1x1xf32>
    %112 = arith.mulf %80, %99 : vector<1x1xf32>
    %113 = arith.addf %111, %112 : vector<1x1xf32>
    %114 = arith.mulf %81, %103 : vector<1x1xf32>
    %115 = arith.addf %113, %114 : vector<1x1xf32>
    %116 = arith.mulf %82, %107 : vector<1x1xf32>
    %117 = arith.addf %115, %116 : vector<1x1xf32>
    %118 = arith.mulf %79, %96 : vector<1x1xf32>
    %119 = arith.mulf %80, %100 : vector<1x1xf32>
    %120 = arith.addf %118, %119 : vector<1x1xf32>
    %121 = arith.mulf %81, %104 : vector<1x1xf32>
    %122 = arith.addf %120, %121 : vector<1x1xf32>
    %123 = arith.mulf %82, %108 : vector<1x1xf32>
    %124 = arith.addf %122, %123 : vector<1x1xf32>
    %125 = arith.mulf %79, %97 : vector<1x1xf32>
    %126 = arith.mulf %80, %101 : vector<1x1xf32>
    %127 = arith.addf %125, %126 : vector<1x1xf32>
    %128 = arith.mulf %81, %105 : vector<1x1xf32>
    %129 = arith.addf %127, %128 : vector<1x1xf32>
    %130 = arith.mulf %82, %109 : vector<1x1xf32>
    %131 = arith.addf %129, %130 : vector<1x1xf32>
    %132 = arith.mulf %79, %98 : vector<1x1xf32>
    %133 = arith.mulf %80, %102 : vector<1x1xf32>
    %134 = arith.addf %132, %133 : vector<1x1xf32>
    %135 = arith.mulf %81, %106 : vector<1x1xf32>
    %136 = arith.addf %134, %135 : vector<1x1xf32>
    %137 = arith.mulf %82, %110 : vector<1x1xf32>
    %138 = arith.addf %136, %137 : vector<1x1xf32>
    %139 = arith.mulf %83, %95 : vector<1x1xf32>
    %140 = arith.mulf %84, %99 : vector<1x1xf32>
    %141 = arith.addf %139, %140 : vector<1x1xf32>
    %142 = arith.mulf %85, %103 : vector<1x1xf32>
    %143 = arith.addf %141, %142 : vector<1x1xf32>
    %144 = arith.mulf %86, %107 : vector<1x1xf32>
    %145 = arith.addf %143, %144 : vector<1x1xf32>
    %146 = arith.mulf %83, %96 : vector<1x1xf32>
    %147 = arith.mulf %84, %100 : vector<1x1xf32>
    %148 = arith.addf %146, %147 : vector<1x1xf32>
    %149 = arith.mulf %85, %104 : vector<1x1xf32>
    %150 = arith.addf %148, %149 : vector<1x1xf32>
    %151 = arith.mulf %86, %108 : vector<1x1xf32>
    %152 = arith.addf %150, %151 : vector<1x1xf32>
    %153 = arith.mulf %83, %97 : vector<1x1xf32>
    %154 = arith.mulf %84, %101 : vector<1x1xf32>
    %155 = arith.addf %153, %154 : vector<1x1xf32>
    %156 = arith.mulf %85, %105 : vector<1x1xf32>
    %157 = arith.addf %155, %156 : vector<1x1xf32>
    %158 = arith.mulf %86, %109 : vector<1x1xf32>
    %159 = arith.addf %157, %158 : vector<1x1xf32>
    %160 = arith.mulf %83, %98 : vector<1x1xf32>
    %161 = arith.mulf %84, %102 : vector<1x1xf32>
    %162 = arith.addf %160, %161 : vector<1x1xf32>
    %163 = arith.mulf %85, %106 : vector<1x1xf32>
    %164 = arith.addf %162, %163 : vector<1x1xf32>
    %165 = arith.mulf %86, %110 : vector<1x1xf32>
    %166 = arith.addf %164, %165 : vector<1x1xf32>
    %167 = arith.mulf %87, %95 : vector<1x1xf32>
    %168 = arith.mulf %88, %99 : vector<1x1xf32>
    %169 = arith.addf %167, %168 : vector<1x1xf32>
    %170 = arith.mulf %89, %103 : vector<1x1xf32>
    %171 = arith.addf %169, %170 : vector<1x1xf32>
    %172 = arith.mulf %90, %107 : vector<1x1xf32>
    %173 = arith.addf %171, %172 : vector<1x1xf32>
    %174 = arith.mulf %87, %96 : vector<1x1xf32>
    %175 = arith.mulf %88, %100 : vector<1x1xf32>
    %176 = arith.addf %174, %175 : vector<1x1xf32>
    %177 = arith.mulf %89, %104 : vector<1x1xf32>
    %178 = arith.addf %176, %177 : vector<1x1xf32>
    %179 = arith.mulf %90, %108 : vector<1x1xf32>
    %180 = arith.addf %178, %179 : vector<1x1xf32>
    %181 = arith.mulf %87, %97 : vector<1x1xf32>
    %182 = arith.mulf %88, %101 : vector<1x1xf32>
    %183 = arith.addf %181, %182 : vector<1x1xf32>
    %184 = arith.mulf %89, %105 : vector<1x1xf32>
    %185 = arith.addf %183, %184 : vector<1x1xf32>
    %186 = arith.mulf %90, %109 : vector<1x1xf32>
    %187 = arith.addf %185, %186 : vector<1x1xf32>
    %188 = arith.mulf %87, %98 : vector<1x1xf32>
    %189 = arith.mulf %88, %102 : vector<1x1xf32>
    %190 = arith.addf %188, %189 : vector<1x1xf32>
    %191 = arith.mulf %89, %106 : vector<1x1xf32>
    %192 = arith.addf %190, %191 : vector<1x1xf32>
    %193 = arith.mulf %90, %110 : vector<1x1xf32>
    %194 = arith.addf %192, %193 : vector<1x1xf32>
    %195 = arith.mulf %91, %95 : vector<1x1xf32>
    %196 = arith.mulf %92, %99 : vector<1x1xf32>
    %197 = arith.addf %195, %196 : vector<1x1xf32>
    %198 = arith.mulf %93, %103 : vector<1x1xf32>
    %199 = arith.addf %197, %198 : vector<1x1xf32>
    %200 = arith.mulf %94, %107 : vector<1x1xf32>
    %201 = arith.addf %199, %200 : vector<1x1xf32>
    %202 = arith.mulf %91, %96 : vector<1x1xf32>
    %203 = arith.mulf %92, %100 : vector<1x1xf32>
    %204 = arith.addf %202, %203 : vector<1x1xf32>
    %205 = arith.mulf %93, %104 : vector<1x1xf32>
    %206 = arith.addf %204, %205 : vector<1x1xf32>
    %207 = arith.mulf %94, %108 : vector<1x1xf32>
    %208 = arith.addf %206, %207 : vector<1x1xf32>
    %209 = arith.mulf %91, %97 : vector<1x1xf32>
    %210 = arith.mulf %92, %101 : vector<1x1xf32>
    %211 = arith.addf %209, %210 : vector<1x1xf32>
    %212 = arith.mulf %93, %105 : vector<1x1xf32>
    %213 = arith.addf %211, %212 : vector<1x1xf32>
    %214 = arith.mulf %94, %109 : vector<1x1xf32>
    %215 = arith.addf %213, %214 : vector<1x1xf32>
    %216 = arith.mulf %91, %98 : vector<1x1xf32>
    %217 = arith.mulf %92, %102 : vector<1x1xf32>
    %218 = arith.addf %216, %217 : vector<1x1xf32>
    %219 = arith.mulf %93, %106 : vector<1x1xf32>
    %220 = arith.addf %218, %219 : vector<1x1xf32>
    %221 = arith.mulf %94, %110 : vector<1x1xf32>
    %222 = arith.addf %220, %221 : vector<1x1xf32>
    %223 = vector.extract_strided_slice %42 {offsets = [2, 0], sizes = [1, 1], strides = [1, 1]} : vector<3x1xf32> to vector<1x1xf32>
    %224 = vector.extract_strided_slice %46 {offsets = [2, 0], sizes = [1, 1], strides = [1, 1]} : vector<3x1xf32> to vector<1x1xf32>
    %225 = vector.extract_strided_slice %47 {offsets = [2, 0], sizes = [1, 1], strides = [1, 1]} : vector<3x1xf32> to vector<1x1xf32>
    %226 = vector.extract_strided_slice %49 {offsets = [2, 0], sizes = [1, 1], strides = [1, 1]} : vector<3x1xf32> to vector<1x1xf32>
    %227 = vector.extract_strided_slice %53 {offsets = [2, 0], sizes = [1, 1], strides = [1, 1]} : vector<3x1xf32> to vector<1x1xf32>
    %228 = vector.extract_strided_slice %57 {offsets = [2, 0], sizes = [1, 1], strides = [1, 1]} : vector<3x1xf32> to vector<1x1xf32>
    %229 = vector.extract_strided_slice %58 {offsets = [2, 0], sizes = [1, 1], strides = [1, 1]} : vector<3x1xf32> to vector<1x1xf32>
    %230 = vector.extract_strided_slice %60 {offsets = [2, 0], sizes = [1, 1], strides = [1, 1]} : vector<3x1xf32> to vector<1x1xf32>
    %231 = vector.extract_strided_slice %63 {offsets = [2, 0], sizes = [1, 1], strides = [1, 1]} : vector<3x1xf32> to vector<1x1xf32>
    %232 = vector.extract_strided_slice %66 {offsets = [2, 0], sizes = [1, 1], strides = [1, 1]} : vector<3x1xf32> to vector<1x1xf32>
    %233 = vector.extract_strided_slice %35 {offsets = [2, 0], sizes = [1, 1], strides = [1, 1]} : vector<3x1xf32> to vector<1x1xf32>
    %234 = vector.extract_strided_slice %67 {offsets = [2, 0], sizes = [1, 1], strides = [1, 1]} : vector<3x1xf32> to vector<1x1xf32>
    %235 = vector.extract_strided_slice %36 {offsets = [2, 0], sizes = [1, 1], strides = [1, 1]} : vector<3x1xf32> to vector<1x1xf32>
    %236 = vector.extract_strided_slice %36 {offsets = [2, 0], sizes = [1, 1], strides = [1, 1]} : vector<3x1xf32> to vector<1x1xf32>
    %237 = vector.extract_strided_slice %36 {offsets = [2, 0], sizes = [1, 1], strides = [1, 1]} : vector<3x1xf32> to vector<1x1xf32>
    %238 = vector.extract_strided_slice %38 {offsets = [2, 0], sizes = [1, 1], strides = [1, 1]} : vector<3x1xf32> to vector<1x1xf32>
    %239 = arith.mulf %117, %223 : vector<1x1xf32>
    %240 = arith.mulf %124, %227 : vector<1x1xf32>
    %241 = arith.addf %239, %240 : vector<1x1xf32>
    %242 = arith.mulf %131, %231 : vector<1x1xf32>
    %243 = arith.addf %241, %242 : vector<1x1xf32>
    %244 = arith.mulf %138, %235 : vector<1x1xf32>
    %245 = arith.addf %243, %244 : vector<1x1xf32>
    %246 = arith.mulf %117, %224 : vector<1x1xf32>
    %247 = arith.mulf %124, %228 : vector<1x1xf32>
    %248 = arith.addf %246, %247 : vector<1x1xf32>
    %249 = arith.mulf %131, %232 : vector<1x1xf32>
    %250 = arith.addf %248, %249 : vector<1x1xf32>
    %251 = arith.mulf %138, %236 : vector<1x1xf32>
    %252 = arith.addf %250, %251 : vector<1x1xf32>
    %253 = arith.mulf %117, %225 : vector<1x1xf32>
    %254 = arith.mulf %124, %229 : vector<1x1xf32>
    %255 = arith.addf %253, %254 : vector<1x1xf32>
    %256 = arith.mulf %131, %233 : vector<1x1xf32>
    %257 = arith.addf %255, %256 : vector<1x1xf32>
    %258 = arith.mulf %138, %237 : vector<1x1xf32>
    %259 = arith.addf %257, %258 : vector<1x1xf32>
    %260 = arith.mulf %117, %226 : vector<1x1xf32>
    %261 = arith.mulf %124, %230 : vector<1x1xf32>
    %262 = arith.addf %260, %261 : vector<1x1xf32>
    %263 = arith.mulf %131, %234 : vector<1x1xf32>
    %264 = arith.addf %262, %263 : vector<1x1xf32>
    %265 = arith.mulf %138, %238 : vector<1x1xf32>
    %266 = arith.addf %264, %265 : vector<1x1xf32>
    %267 = arith.mulf %145, %223 : vector<1x1xf32>
    %268 = arith.mulf %152, %227 : vector<1x1xf32>
    %269 = arith.addf %267, %268 : vector<1x1xf32>
    %270 = arith.mulf %159, %231 : vector<1x1xf32>
    %271 = arith.addf %269, %270 : vector<1x1xf32>
    %272 = arith.mulf %166, %235 : vector<1x1xf32>
    %273 = arith.addf %271, %272 : vector<1x1xf32>
    %274 = arith.mulf %145, %224 : vector<1x1xf32>
    %275 = arith.mulf %152, %228 : vector<1x1xf32>
    %276 = arith.addf %274, %275 : vector<1x1xf32>
    %277 = arith.mulf %159, %232 : vector<1x1xf32>
    %278 = arith.addf %276, %277 : vector<1x1xf32>
    %279 = arith.mulf %166, %236 : vector<1x1xf32>
    %280 = arith.addf %278, %279 : vector<1x1xf32>
    %281 = arith.mulf %145, %225 : vector<1x1xf32>
    %282 = arith.mulf %152, %229 : vector<1x1xf32>
    %283 = arith.addf %281, %282 : vector<1x1xf32>
    %284 = arith.mulf %159, %233 : vector<1x1xf32>
    %285 = arith.addf %283, %284 : vector<1x1xf32>
    %286 = arith.mulf %166, %237 : vector<1x1xf32>
    %287 = arith.addf %285, %286 : vector<1x1xf32>
    %288 = arith.mulf %145, %226 : vector<1x1xf32>
    %289 = arith.mulf %152, %230 : vector<1x1xf32>
    %290 = arith.addf %288, %289 : vector<1x1xf32>
    %291 = arith.mulf %159, %234 : vector<1x1xf32>
    %292 = arith.addf %290, %291 : vector<1x1xf32>
    %293 = arith.mulf %166, %238 : vector<1x1xf32>
    %294 = arith.addf %292, %293 : vector<1x1xf32>
    %295 = arith.mulf %173, %223 : vector<1x1xf32>
    %296 = arith.mulf %180, %227 : vector<1x1xf32>
    %297 = arith.addf %295, %296 : vector<1x1xf32>
    %298 = arith.mulf %187, %231 : vector<1x1xf32>
    %299 = arith.addf %297, %298 : vector<1x1xf32>
    %300 = arith.mulf %194, %235 : vector<1x1xf32>
    %301 = arith.addf %299, %300 : vector<1x1xf32>
    %302 = arith.mulf %173, %224 : vector<1x1xf32>
    %303 = arith.mulf %180, %228 : vector<1x1xf32>
    %304 = arith.addf %302, %303 : vector<1x1xf32>
    %305 = arith.mulf %187, %232 : vector<1x1xf32>
    %306 = arith.addf %304, %305 : vector<1x1xf32>
    %307 = arith.mulf %194, %236 : vector<1x1xf32>
    %308 = arith.addf %306, %307 : vector<1x1xf32>
    %309 = arith.mulf %173, %225 : vector<1x1xf32>
    %310 = arith.mulf %180, %229 : vector<1x1xf32>
    %311 = arith.addf %309, %310 : vector<1x1xf32>
    %312 = arith.mulf %187, %233 : vector<1x1xf32>
    %313 = arith.addf %311, %312 : vector<1x1xf32>
    %314 = arith.mulf %194, %237 : vector<1x1xf32>
    %315 = arith.addf %313, %314 : vector<1x1xf32>
    %316 = arith.mulf %173, %226 : vector<1x1xf32>
    %317 = arith.mulf %180, %230 : vector<1x1xf32>
    %318 = arith.addf %316, %317 : vector<1x1xf32>
    %319 = arith.mulf %187, %234 : vector<1x1xf32>
    %320 = arith.addf %318, %319 : vector<1x1xf32>
    %321 = arith.mulf %194, %238 : vector<1x1xf32>
    %322 = arith.addf %320, %321 : vector<1x1xf32>
    %323 = arith.mulf %201, %223 : vector<1x1xf32>
    %324 = arith.mulf %208, %227 : vector<1x1xf32>
    %325 = arith.addf %323, %324 : vector<1x1xf32>
    %326 = arith.mulf %215, %231 : vector<1x1xf32>
    %327 = arith.addf %325, %326 : vector<1x1xf32>
    %328 = arith.mulf %222, %235 : vector<1x1xf32>
    %329 = arith.addf %327, %328 : vector<1x1xf32>
    %330 = arith.mulf %201, %224 : vector<1x1xf32>
    %331 = arith.mulf %208, %228 : vector<1x1xf32>
    %332 = arith.addf %330, %331 : vector<1x1xf32>
    %333 = arith.mulf %215, %232 : vector<1x1xf32>
    %334 = arith.addf %332, %333 : vector<1x1xf32>
    %335 = arith.mulf %222, %236 : vector<1x1xf32>
    %336 = arith.addf %334, %335 : vector<1x1xf32>
    %337 = arith.mulf %201, %225 : vector<1x1xf32>
    %338 = arith.mulf %208, %229 : vector<1x1xf32>
    %339 = arith.addf %337, %338 : vector<1x1xf32>
    %340 = arith.mulf %215, %233 : vector<1x1xf32>
    %341 = arith.addf %339, %340 : vector<1x1xf32>
    %342 = arith.mulf %222, %237 : vector<1x1xf32>
    %343 = arith.addf %341, %342 : vector<1x1xf32>
    %344 = arith.mulf %201, %226 : vector<1x1xf32>
    %345 = arith.mulf %208, %230 : vector<1x1xf32>
    %346 = arith.addf %344, %345 : vector<1x1xf32>
    %347 = arith.mulf %215, %234 : vector<1x1xf32>
    %348 = arith.addf %346, %347 : vector<1x1xf32>
    %349 = arith.mulf %222, %238 : vector<1x1xf32>
    %350 = arith.addf %348, %349 : vector<1x1xf32>
    %351 = tpu.concatenate %77, %79, %117 in 0 : vector<1x1xf32>, vector<1x1xf32>, vector<1x1xf32> -> vector<3x1xf32>
    %352 = tpu.concatenate %78, %80, %124 in 0 : vector<1x1xf32>, vector<1x1xf32>, vector<1x1xf32> -> vector<3x1xf32>
    %353 = tpu.concatenate %78, %81, %131 in 0 : vector<1x1xf32>, vector<1x1xf32>, vector<1x1xf32> -> vector<3x1xf32>
    %354 = tpu.concatenate %78, %82, %138 in 0 : vector<1x1xf32>, vector<1x1xf32>, vector<1x1xf32> -> vector<3x1xf32>
    %355 = tpu.concatenate %78, %83, %145 in 0 : vector<1x1xf32>, vector<1x1xf32>, vector<1x1xf32> -> vector<3x1xf32>
    %356 = tpu.concatenate %77, %84, %152 in 0 : vector<1x1xf32>, vector<1x1xf32>, vector<1x1xf32> -> vector<3x1xf32>
    %357 = tpu.concatenate %78, %85, %159 in 0 : vector<1x1xf32>, vector<1x1xf32>, vector<1x1xf32> -> vector<3x1xf32>
    %358 = tpu.concatenate %78, %86, %166 in 0 : vector<1x1xf32>, vector<1x1xf32>, vector<1x1xf32> -> vector<3x1xf32>
    %359 = tpu.concatenate %78, %87, %173 in 0 : vector<1x1xf32>, vector<1x1xf32>, vector<1x1xf32> -> vector<3x1xf32>
    %360 = tpu.concatenate %78, %88, %180 in 0 : vector<1x1xf32>, vector<1x1xf32>, vector<1x1xf32> -> vector<3x1xf32>
    %361 = tpu.concatenate %77, %89, %187 in 0 : vector<1x1xf32>, vector<1x1xf32>, vector<1x1xf32> -> vector<3x1xf32>
    %362 = tpu.concatenate %78, %90, %194 in 0 : vector<1x1xf32>, vector<1x1xf32>, vector<1x1xf32> -> vector<3x1xf32>
    %363 = tpu.concatenate %78, %91, %201 in 0 : vector<1x1xf32>, vector<1x1xf32>, vector<1x1xf32> -> vector<3x1xf32>
    %364 = tpu.concatenate %78, %92, %208 in 0 : vector<1x1xf32>, vector<1x1xf32>, vector<1x1xf32> -> vector<3x1xf32>
    %365 = tpu.concatenate %78, %93, %215 in 0 : vector<1x1xf32>, vector<1x1xf32>, vector<1x1xf32> -> vector<3x1xf32>
    %366 = tpu.concatenate %77, %94, %222 in 0 : vector<1x1xf32>, vector<1x1xf32>, vector<1x1xf32> -> vector<3x1xf32>
    %367 = tpu.concatenate %79, %117, %245 in 0 : vector<1x1xf32>, vector<1x1xf32>, vector<1x1xf32> -> vector<3x1xf32>
    %368 = tpu.concatenate %80, %124, %252 in 0 : vector<1x1xf32>, vector<1x1xf32>, vector<1x1xf32> -> vector<3x1xf32>
    %369 = tpu.concatenate %81, %131, %259 in 0 : vector<1x1xf32>, vector<1x1xf32>, vector<1x1xf32> -> vector<3x1xf32>
    %370 = tpu.concatenate %82, %138, %266 in 0 : vector<1x1xf32>, vector<1x1xf32>, vector<1x1xf32> -> vector<3x1xf32>
    %371 = tpu.concatenate %83, %145, %273 in 0 : vector<1x1xf32>, vector<1x1xf32>, vector<1x1xf32> -> vector<3x1xf32>
    %372 = tpu.concatenate %84, %152, %280 in 0 : vector<1x1xf32>, vector<1x1xf32>, vector<1x1xf32> -> vector<3x1xf32>
    %373 = tpu.concatenate %85, %159, %287 in 0 : vector<1x1xf32>, vector<1x1xf32>, vector<1x1xf32> -> vector<3x1xf32>
    %374 = tpu.concatenate %86, %166, %294 in 0 : vector<1x1xf32>, vector<1x1xf32>, vector<1x1xf32> -> vector<3x1xf32>
    %375 = tpu.concatenate %87, %173, %301 in 0 : vector<1x1xf32>, vector<1x1xf32>, vector<1x1xf32> -> vector<3x1xf32>
    %376 = tpu.concatenate %88, %180, %308 in 0 : vector<1x1xf32>, vector<1x1xf32>, vector<1x1xf32> -> vector<3x1xf32>
    %377 = tpu.concatenate %89, %187, %315 in 0 : vector<1x1xf32>, vector<1x1xf32>, vector<1x1xf32> -> vector<3x1xf32>
    %378 = tpu.concatenate %90, %194, %322 in 0 : vector<1x1xf32>, vector<1x1xf32>, vector<1x1xf32> -> vector<3x1xf32>
    %379 = tpu.concatenate %91, %201, %329 in 0 : vector<1x1xf32>, vector<1x1xf32>, vector<1x1xf32> -> vector<3x1xf32>
    %380 = tpu.concatenate %92, %208, %336 in 0 : vector<1x1xf32>, vector<1x1xf32>, vector<1x1xf32> -> vector<3x1xf32>
    %381 = tpu.concatenate %93, %215, %343 in 0 : vector<1x1xf32>, vector<1x1xf32>, vector<1x1xf32> -> vector<3x1xf32>
    %382 = tpu.concatenate %94, %222, %350 in 0 : vector<1x1xf32>, vector<1x1xf32>, vector<1x1xf32> -> vector<3x1xf32>
    %383 = arith.mulf %351, %42 : vector<3x1xf32>
    %384 = arith.mulf %352, %53 : vector<3x1xf32>
    %385 = arith.addf %383, %384 : vector<3x1xf32>
    %386 = arith.mulf %353, %63 : vector<3x1xf32>
    %387 = arith.addf %385, %386 : vector<3x1xf32>
    %388 = arith.mulf %354, %36 : vector<3x1xf32>
    %389 = arith.addf %387, %388 : vector<3x1xf32>
    %390 = arith.mulf %351, %46 : vector<3x1xf32>
    %391 = arith.mulf %352, %57 : vector<3x1xf32>
    %392 = arith.addf %390, %391 : vector<3x1xf32>
    %393 = arith.mulf %353, %66 : vector<3x1xf32>
    %394 = arith.addf %392, %393 : vector<3x1xf32>
    %395 = arith.mulf %354, %36 : vector<3x1xf32>
    %396 = arith.addf %394, %395 : vector<3x1xf32>
    %397 = arith.mulf %351, %47 : vector<3x1xf32>
    %398 = arith.mulf %352, %58 : vector<3x1xf32>
    %399 = arith.addf %397, %398 : vector<3x1xf32>
    %400 = arith.mulf %353, %35 : vector<3x1xf32>
    %401 = arith.addf %399, %400 : vector<3x1xf32>
    %402 = arith.mulf %354, %36 : vector<3x1xf32>
    %403 = arith.addf %401, %402 : vector<3x1xf32>
    %404 = arith.mulf %351, %70 : vector<3x1xf32>
    %405 = arith.mulf %352, %73 : vector<3x1xf32>
    %406 = arith.addf %404, %405 : vector<3x1xf32>
    %407 = arith.mulf %353, %76 : vector<3x1xf32>
    %408 = arith.addf %406, %407 : vector<3x1xf32>
    %409 = arith.mulf %354, %38 : vector<3x1xf32>
    %410 = arith.addf %408, %409 : vector<3x1xf32>
    %411 = arith.mulf %355, %42 : vector<3x1xf32>
    %412 = arith.mulf %356, %53 : vector<3x1xf32>
    %413 = arith.addf %411, %412 : vector<3x1xf32>
    %414 = arith.mulf %357, %63 : vector<3x1xf32>
    %415 = arith.addf %413, %414 : vector<3x1xf32>
    %416 = arith.mulf %358, %36 : vector<3x1xf32>
    %417 = arith.addf %415, %416 : vector<3x1xf32>
    %418 = arith.mulf %355, %46 : vector<3x1xf32>
    %419 = arith.mulf %356, %57 : vector<3x1xf32>
    %420 = arith.addf %418, %419 : vector<3x1xf32>
    %421 = arith.mulf %357, %66 : vector<3x1xf32>
    %422 = arith.addf %420, %421 : vector<3x1xf32>
    %423 = arith.mulf %358, %36 : vector<3x1xf32>
    %424 = arith.addf %422, %423 : vector<3x1xf32>
    %425 = arith.mulf %355, %47 : vector<3x1xf32>
    %426 = arith.mulf %356, %58 : vector<3x1xf32>
    %427 = arith.addf %425, %426 : vector<3x1xf32>
    %428 = arith.mulf %357, %35 : vector<3x1xf32>
    %429 = arith.addf %427, %428 : vector<3x1xf32>
    %430 = arith.mulf %358, %36 : vector<3x1xf32>
    %431 = arith.addf %429, %430 : vector<3x1xf32>
    %432 = arith.mulf %355, %70 : vector<3x1xf32>
    %433 = arith.mulf %356, %73 : vector<3x1xf32>
    %434 = arith.addf %432, %433 : vector<3x1xf32>
    %435 = arith.mulf %357, %76 : vector<3x1xf32>
    %436 = arith.addf %434, %435 : vector<3x1xf32>
    %437 = arith.mulf %358, %38 : vector<3x1xf32>
    %438 = arith.addf %436, %437 : vector<3x1xf32>
    %439 = arith.mulf %359, %42 : vector<3x1xf32>
    %440 = arith.mulf %360, %53 : vector<3x1xf32>
    %441 = arith.addf %439, %440 : vector<3x1xf32>
    %442 = arith.mulf %361, %63 : vector<3x1xf32>
    %443 = arith.addf %441, %442 : vector<3x1xf32>
    %444 = arith.mulf %362, %36 : vector<3x1xf32>
    %445 = arith.addf %443, %444 : vector<3x1xf32>
    %446 = arith.mulf %359, %46 : vector<3x1xf32>
    %447 = arith.mulf %360, %57 : vector<3x1xf32>
    %448 = arith.addf %446, %447 : vector<3x1xf32>
    %449 = arith.mulf %361, %66 : vector<3x1xf32>
    %450 = arith.addf %448, %449 : vector<3x1xf32>
    %451 = arith.mulf %362, %36 : vector<3x1xf32>
    %452 = arith.addf %450, %451 : vector<3x1xf32>
    %453 = arith.mulf %359, %47 : vector<3x1xf32>
    %454 = arith.mulf %360, %58 : vector<3x1xf32>
    %455 = arith.addf %453, %454 : vector<3x1xf32>
    %456 = arith.mulf %361, %35 : vector<3x1xf32>
    %457 = arith.addf %455, %456 : vector<3x1xf32>
    %458 = arith.mulf %362, %36 : vector<3x1xf32>
    %459 = arith.addf %457, %458 : vector<3x1xf32>
    %460 = arith.mulf %359, %70 : vector<3x1xf32>
    %461 = arith.mulf %360, %73 : vector<3x1xf32>
    %462 = arith.addf %460, %461 : vector<3x1xf32>
    %463 = arith.mulf %361, %76 : vector<3x1xf32>
    %464 = arith.addf %462, %463 : vector<3x1xf32>
    %465 = arith.mulf %362, %38 : vector<3x1xf32>
    %466 = arith.addf %464, %465 : vector<3x1xf32>
    %467 = arith.mulf %363, %42 : vector<3x1xf32>
    %468 = arith.mulf %364, %53 : vector<3x1xf32>
    %469 = arith.addf %467, %468 : vector<3x1xf32>
    %470 = arith.mulf %365, %63 : vector<3x1xf32>
    %471 = arith.addf %469, %470 : vector<3x1xf32>
    %472 = arith.mulf %366, %36 : vector<3x1xf32>
    %473 = arith.addf %471, %472 : vector<3x1xf32>
    %474 = arith.mulf %363, %46 : vector<3x1xf32>
    %475 = arith.mulf %364, %57 : vector<3x1xf32>
    %476 = arith.addf %474, %475 : vector<3x1xf32>
    %477 = arith.mulf %365, %66 : vector<3x1xf32>
    %478 = arith.addf %476, %477 : vector<3x1xf32>
    %479 = arith.mulf %366, %36 : vector<3x1xf32>
    %480 = arith.addf %478, %479 : vector<3x1xf32>
    %481 = arith.mulf %363, %47 : vector<3x1xf32>
    %482 = arith.mulf %364, %58 : vector<3x1xf32>
    %483 = arith.addf %481, %482 : vector<3x1xf32>
    %484 = arith.mulf %365, %35 : vector<3x1xf32>
    %485 = arith.addf %483, %484 : vector<3x1xf32>
    %486 = arith.mulf %366, %36 : vector<3x1xf32>
    %487 = arith.addf %485, %486 : vector<3x1xf32>
    %488 = arith.mulf %363, %70 : vector<3x1xf32>
    %489 = arith.mulf %364, %73 : vector<3x1xf32>
    %490 = arith.addf %488, %489 : vector<3x1xf32>
    %491 = arith.mulf %365, %76 : vector<3x1xf32>
    %492 = arith.addf %490, %491 : vector<3x1xf32>
    %493 = arith.mulf %366, %38 : vector<3x1xf32>
    %494 = arith.addf %492, %493 : vector<3x1xf32>
    %cst_21 = arith.constant 1.000000e+00 : f32
    %495 = vector.broadcast %cst_21 : f32 to vector<1x1xf32>
    %496 = arith.addf %78, %495 : vector<1x1xf32>
    %cst_22 = arith.constant 6.12323426E-17 : f32
    %497 = vector.broadcast %cst_22 : f32 to vector<1x1xf32>
    %498 = arith.addf %78, %497 : vector<1x1xf32>
    %cst_23 = arith.constant -1.000000e+00 : f32
    %499 = vector.broadcast %cst_23 : f32 to vector<1x1xf32>
    %500 = arith.addf %78, %499 : vector<1x1xf32>
    %cst_24 = arith.constant -1.83697015E-16 : f32
    %501 = vector.broadcast %cst_24 : f32 to vector<1x1xf32>
    %502 = arith.addf %78, %501 : vector<1x1xf32>
    %503 = tpu.concatenate %496, %498, %500, %502 in 0 : vector<1x1xf32>, vector<1x1xf32>, vector<1x1xf32>, vector<1x1xf32> -> vector<4x1xf32>
    %cst_25 = arith.constant 0.000000e+00 : f32
    %504 = vector.broadcast %cst_25 : f32 to vector<1x1xf32>
    %505 = arith.addf %78, %504 : vector<1x1xf32>
    %cst_26 = arith.constant 1.000000e+00 : f32
    %506 = vector.broadcast %cst_26 : f32 to vector<1x1xf32>
    %507 = arith.addf %78, %506 : vector<1x1xf32>
    %cst_27 = arith.constant 1.22464685E-16 : f32
    %508 = vector.broadcast %cst_27 : f32 to vector<1x1xf32>
    %509 = arith.addf %78, %508 : vector<1x1xf32>
    %cst_28 = arith.constant -1.000000e+00 : f32
    %510 = vector.broadcast %cst_28 : f32 to vector<1x1xf32>
    %511 = arith.addf %78, %510 : vector<1x1xf32>
    %512 = tpu.concatenate %505, %507, %509, %511 in 0 : vector<1x1xf32>, vector<1x1xf32>, vector<1x1xf32>, vector<1x1xf32> -> vector<4x1xf32>
    %513 = tpu.concatenate %503, %503, %503 in 0 : vector<4x1xf32>, vector<4x1xf32>, vector<4x1xf32> -> vector<12x1xf32>
    %514 = tpu.concatenate %512, %512, %512 in 0 : vector<4x1xf32>, vector<4x1xf32>, vector<4x1xf32> -> vector<12x1xf32>
    %cst_29 = arith.constant 0.000000e+00 : f32
    %515 = vector.broadcast %cst_29 : f32 to vector<12x1xf32>
    %cst_30 = arith.constant 1.000000e+00 : f32
    %516 = vector.broadcast %cst_30 : f32 to vector<12x1xf32>
    %517 = arith.addf %515, %516 : vector<12x1xf32>
    %cst_31 = arith.constant 0.000000e+00 : f32
    %518 = vector.broadcast %cst_31 : f32 to vector<12x1xf32>
    %519 = arith.subf %518, %514 : vector<12x1xf32>
    %cst_32 = arith.constant 1.200000e-02 : f32
    %520 = vector.broadcast %cst_32 : f32 to vector<12x1xf32>
    %521 = arith.mulf %520, %513 : vector<12x1xf32>
    %cst_33 = arith.constant 1.200000e-02 : f32
    %522 = vector.broadcast %cst_33 : f32 to vector<12x1xf32>
    %523 = arith.mulf %522, %514 : vector<12x1xf32>
    %cst_34 = arith.constant 5.000000e-03 : f32
    %524 = vector.broadcast %cst_34 : f32 to vector<12x1xf32>
    %525 = arith.addf %515, %524 : vector<12x1xf32>
    %cst_35 = arith.constant 0.000000e+00 : f32
    %526 = vector.broadcast %cst_35 : f32 to vector<4x1xf32>
    %527 = vector.broadcast %77 : vector<1x1xf32> to vector<4x1xf32>
    %528 = arith.addf %527, %526 : vector<4x1xf32>
    %529 = vector.broadcast %79 : vector<1x1xf32> to vector<4x1xf32>
    %530 = arith.addf %529, %526 : vector<4x1xf32>
    %531 = vector.broadcast %117 : vector<1x1xf32> to vector<4x1xf32>
    %532 = arith.addf %531, %526 : vector<4x1xf32>
    %533 = tpu.concatenate %528, %530, %532 in 0 : vector<4x1xf32>, vector<4x1xf32>, vector<4x1xf32> -> vector<12x1xf32>
    %534 = vector.broadcast %78 : vector<1x1xf32> to vector<4x1xf32>
    %535 = arith.addf %534, %526 : vector<4x1xf32>
    %536 = vector.broadcast %80 : vector<1x1xf32> to vector<4x1xf32>
    %537 = arith.addf %536, %526 : vector<4x1xf32>
    %538 = vector.broadcast %124 : vector<1x1xf32> to vector<4x1xf32>
    %539 = arith.addf %538, %526 : vector<4x1xf32>
    %540 = tpu.concatenate %535, %537, %539 in 0 : vector<4x1xf32>, vector<4x1xf32>, vector<4x1xf32> -> vector<12x1xf32>
    %541 = vector.broadcast %78 : vector<1x1xf32> to vector<4x1xf32>
    %542 = arith.addf %541, %526 : vector<4x1xf32>
    %543 = vector.broadcast %81 : vector<1x1xf32> to vector<4x1xf32>
    %544 = arith.addf %543, %526 : vector<4x1xf32>
    %545 = vector.broadcast %131 : vector<1x1xf32> to vector<4x1xf32>
    %546 = arith.addf %545, %526 : vector<4x1xf32>
    %547 = tpu.concatenate %542, %544, %546 in 0 : vector<4x1xf32>, vector<4x1xf32>, vector<4x1xf32> -> vector<12x1xf32>
    %548 = vector.broadcast %78 : vector<1x1xf32> to vector<4x1xf32>
    %549 = arith.addf %548, %526 : vector<4x1xf32>
    %550 = vector.broadcast %82 : vector<1x1xf32> to vector<4x1xf32>
    %551 = arith.addf %550, %526 : vector<4x1xf32>
    %552 = vector.broadcast %138 : vector<1x1xf32> to vector<4x1xf32>
    %553 = arith.addf %552, %526 : vector<4x1xf32>
    %554 = tpu.concatenate %549, %551, %553 in 0 : vector<4x1xf32>, vector<4x1xf32>, vector<4x1xf32> -> vector<12x1xf32>
    %555 = vector.broadcast %78 : vector<1x1xf32> to vector<4x1xf32>
    %556 = arith.addf %555, %526 : vector<4x1xf32>
    %557 = vector.broadcast %83 : vector<1x1xf32> to vector<4x1xf32>
    %558 = arith.addf %557, %526 : vector<4x1xf32>
    %559 = vector.broadcast %145 : vector<1x1xf32> to vector<4x1xf32>
    %560 = arith.addf %559, %526 : vector<4x1xf32>
    %561 = tpu.concatenate %556, %558, %560 in 0 : vector<4x1xf32>, vector<4x1xf32>, vector<4x1xf32> -> vector<12x1xf32>
    %562 = vector.broadcast %77 : vector<1x1xf32> to vector<4x1xf32>
    %563 = arith.addf %562, %526 : vector<4x1xf32>
    %564 = vector.broadcast %84 : vector<1x1xf32> to vector<4x1xf32>
    %565 = arith.addf %564, %526 : vector<4x1xf32>
    %566 = vector.broadcast %152 : vector<1x1xf32> to vector<4x1xf32>
    %567 = arith.addf %566, %526 : vector<4x1xf32>
    %568 = tpu.concatenate %563, %565, %567 in 0 : vector<4x1xf32>, vector<4x1xf32>, vector<4x1xf32> -> vector<12x1xf32>
    %569 = vector.broadcast %78 : vector<1x1xf32> to vector<4x1xf32>
    %570 = arith.addf %569, %526 : vector<4x1xf32>
    %571 = vector.broadcast %85 : vector<1x1xf32> to vector<4x1xf32>
    %572 = arith.addf %571, %526 : vector<4x1xf32>
    %573 = vector.broadcast %159 : vector<1x1xf32> to vector<4x1xf32>
    %574 = arith.addf %573, %526 : vector<4x1xf32>
    %575 = tpu.concatenate %570, %572, %574 in 0 : vector<4x1xf32>, vector<4x1xf32>, vector<4x1xf32> -> vector<12x1xf32>
    %576 = vector.broadcast %78 : vector<1x1xf32> to vector<4x1xf32>
    %577 = arith.addf %576, %526 : vector<4x1xf32>
    %578 = vector.broadcast %86 : vector<1x1xf32> to vector<4x1xf32>
    %579 = arith.addf %578, %526 : vector<4x1xf32>
    %580 = vector.broadcast %166 : vector<1x1xf32> to vector<4x1xf32>
    %581 = arith.addf %580, %526 : vector<4x1xf32>
    %582 = tpu.concatenate %577, %579, %581 in 0 : vector<4x1xf32>, vector<4x1xf32>, vector<4x1xf32> -> vector<12x1xf32>
    %583 = vector.broadcast %78 : vector<1x1xf32> to vector<4x1xf32>
    %584 = arith.addf %583, %526 : vector<4x1xf32>
    %585 = vector.broadcast %87 : vector<1x1xf32> to vector<4x1xf32>
    %586 = arith.addf %585, %526 : vector<4x1xf32>
    %587 = vector.broadcast %173 : vector<1x1xf32> to vector<4x1xf32>
    %588 = arith.addf %587, %526 : vector<4x1xf32>
    %589 = tpu.concatenate %584, %586, %588 in 0 : vector<4x1xf32>, vector<4x1xf32>, vector<4x1xf32> -> vector<12x1xf32>
    %590 = vector.broadcast %78 : vector<1x1xf32> to vector<4x1xf32>
    %591 = arith.addf %590, %526 : vector<4x1xf32>
    %592 = vector.broadcast %88 : vector<1x1xf32> to vector<4x1xf32>
    %593 = arith.addf %592, %526 : vector<4x1xf32>
    %594 = vector.broadcast %180 : vector<1x1xf32> to vector<4x1xf32>
    %595 = arith.addf %594, %526 : vector<4x1xf32>
    %596 = tpu.concatenate %591, %593, %595 in 0 : vector<4x1xf32>, vector<4x1xf32>, vector<4x1xf32> -> vector<12x1xf32>
    %597 = vector.broadcast %77 : vector<1x1xf32> to vector<4x1xf32>
    %598 = arith.addf %597, %526 : vector<4x1xf32>
    %599 = vector.broadcast %89 : vector<1x1xf32> to vector<4x1xf32>
    %600 = arith.addf %599, %526 : vector<4x1xf32>
    %601 = vector.broadcast %187 : vector<1x1xf32> to vector<4x1xf32>
    %602 = arith.addf %601, %526 : vector<4x1xf32>
    %603 = tpu.concatenate %598, %600, %602 in 0 : vector<4x1xf32>, vector<4x1xf32>, vector<4x1xf32> -> vector<12x1xf32>
    %604 = vector.broadcast %78 : vector<1x1xf32> to vector<4x1xf32>
    %605 = arith.addf %604, %526 : vector<4x1xf32>
    %606 = vector.broadcast %90 : vector<1x1xf32> to vector<4x1xf32>
    %607 = arith.addf %606, %526 : vector<4x1xf32>
    %608 = vector.broadcast %194 : vector<1x1xf32> to vector<4x1xf32>
    %609 = arith.addf %608, %526 : vector<4x1xf32>
    %610 = tpu.concatenate %605, %607, %609 in 0 : vector<4x1xf32>, vector<4x1xf32>, vector<4x1xf32> -> vector<12x1xf32>
    %611 = vector.broadcast %78 : vector<1x1xf32> to vector<4x1xf32>
    %612 = arith.addf %611, %526 : vector<4x1xf32>
    %613 = vector.broadcast %91 : vector<1x1xf32> to vector<4x1xf32>
    %614 = arith.addf %613, %526 : vector<4x1xf32>
    %615 = vector.broadcast %201 : vector<1x1xf32> to vector<4x1xf32>
    %616 = arith.addf %615, %526 : vector<4x1xf32>
    %617 = tpu.concatenate %612, %614, %616 in 0 : vector<4x1xf32>, vector<4x1xf32>, vector<4x1xf32> -> vector<12x1xf32>
    %618 = vector.broadcast %78 : vector<1x1xf32> to vector<4x1xf32>
    %619 = arith.addf %618, %526 : vector<4x1xf32>
    %620 = vector.broadcast %92 : vector<1x1xf32> to vector<4x1xf32>
    %621 = arith.addf %620, %526 : vector<4x1xf32>
    %622 = vector.broadcast %208 : vector<1x1xf32> to vector<4x1xf32>
    %623 = arith.addf %622, %526 : vector<4x1xf32>
    %624 = tpu.concatenate %619, %621, %623 in 0 : vector<4x1xf32>, vector<4x1xf32>, vector<4x1xf32> -> vector<12x1xf32>
    %625 = vector.broadcast %78 : vector<1x1xf32> to vector<4x1xf32>
    %626 = arith.addf %625, %526 : vector<4x1xf32>
    %627 = vector.broadcast %93 : vector<1x1xf32> to vector<4x1xf32>
    %628 = arith.addf %627, %526 : vector<4x1xf32>
    %629 = vector.broadcast %215 : vector<1x1xf32> to vector<4x1xf32>
    %630 = arith.addf %629, %526 : vector<4x1xf32>
    %631 = tpu.concatenate %626, %628, %630 in 0 : vector<4x1xf32>, vector<4x1xf32>, vector<4x1xf32> -> vector<12x1xf32>
    %632 = vector.broadcast %77 : vector<1x1xf32> to vector<4x1xf32>
    %633 = arith.addf %632, %526 : vector<4x1xf32>
    %634 = vector.broadcast %94 : vector<1x1xf32> to vector<4x1xf32>
    %635 = arith.addf %634, %526 : vector<4x1xf32>
    %636 = vector.broadcast %222 : vector<1x1xf32> to vector<4x1xf32>
    %637 = arith.addf %636, %526 : vector<4x1xf32>
    %638 = tpu.concatenate %633, %635, %637 in 0 : vector<4x1xf32>, vector<4x1xf32>, vector<4x1xf32> -> vector<12x1xf32>
    %639 = arith.mulf %533, %513 : vector<12x1xf32>
    %640 = arith.mulf %540, %514 : vector<12x1xf32>
    %641 = arith.addf %639, %640 : vector<12x1xf32>
    %642 = arith.mulf %533, %519 : vector<12x1xf32>
    %643 = arith.mulf %540, %513 : vector<12x1xf32>
    %644 = arith.addf %642, %643 : vector<12x1xf32>
    %645 = arith.mulf %547, %517 : vector<12x1xf32>
    %646 = arith.mulf %533, %521 : vector<12x1xf32>
    %647 = arith.mulf %540, %523 : vector<12x1xf32>
    %648 = arith.addf %646, %647 : vector<12x1xf32>
    %649 = arith.mulf %547, %525 : vector<12x1xf32>
    %650 = arith.addf %648, %649 : vector<12x1xf32>
    %651 = arith.mulf %554, %517 : vector<12x1xf32>
    %652 = arith.addf %650, %651 : vector<12x1xf32>
    %653 = arith.mulf %561, %513 : vector<12x1xf32>
    %654 = arith.mulf %568, %514 : vector<12x1xf32>
    %655 = arith.addf %653, %654 : vector<12x1xf32>
    %656 = arith.mulf %561, %519 : vector<12x1xf32>
    %657 = arith.mulf %568, %513 : vector<12x1xf32>
    %658 = arith.addf %656, %657 : vector<12x1xf32>
    %659 = arith.mulf %575, %517 : vector<12x1xf32>
    %660 = arith.mulf %561, %521 : vector<12x1xf32>
    %661 = arith.mulf %568, %523 : vector<12x1xf32>
    %662 = arith.addf %660, %661 : vector<12x1xf32>
    %663 = arith.mulf %575, %525 : vector<12x1xf32>
    %664 = arith.addf %662, %663 : vector<12x1xf32>
    %665 = arith.mulf %582, %517 : vector<12x1xf32>
    %666 = arith.addf %664, %665 : vector<12x1xf32>
    %667 = arith.mulf %589, %513 : vector<12x1xf32>
    %668 = arith.mulf %596, %514 : vector<12x1xf32>
    %669 = arith.addf %667, %668 : vector<12x1xf32>
    %670 = arith.mulf %589, %519 : vector<12x1xf32>
    %671 = arith.mulf %596, %513 : vector<12x1xf32>
    %672 = arith.addf %670, %671 : vector<12x1xf32>
    %673 = arith.mulf %603, %517 : vector<12x1xf32>
    %674 = arith.mulf %589, %521 : vector<12x1xf32>
    %675 = arith.mulf %596, %523 : vector<12x1xf32>
    %676 = arith.addf %674, %675 : vector<12x1xf32>
    %677 = arith.mulf %603, %525 : vector<12x1xf32>
    %678 = arith.addf %676, %677 : vector<12x1xf32>
    %679 = arith.mulf %610, %517 : vector<12x1xf32>
    %680 = arith.addf %678, %679 : vector<12x1xf32>
    %681 = arith.mulf %617, %513 : vector<12x1xf32>
    %682 = arith.mulf %624, %514 : vector<12x1xf32>
    %683 = arith.addf %681, %682 : vector<12x1xf32>
    %684 = arith.mulf %617, %519 : vector<12x1xf32>
    %685 = arith.mulf %624, %513 : vector<12x1xf32>
    %686 = arith.addf %684, %685 : vector<12x1xf32>
    %687 = arith.mulf %631, %517 : vector<12x1xf32>
    %688 = arith.mulf %617, %521 : vector<12x1xf32>
    %689 = arith.mulf %624, %523 : vector<12x1xf32>
    %690 = arith.addf %688, %689 : vector<12x1xf32>
    %691 = arith.mulf %631, %525 : vector<12x1xf32>
    %692 = arith.addf %690, %691 : vector<12x1xf32>
    %693 = arith.mulf %638, %517 : vector<12x1xf32>
    %694 = arith.addf %692, %693 : vector<12x1xf32>
    %695 = tpu.concatenate %351, %352, %353, %354, %355, %356, %357, %358, %359, %360, %361, %362, %363, %364, %365, %366 in 1 : vector<3x1xf32>, vector<3x1xf32>, vector<3x1xf32>, vector<3x1xf32>, vector<3x1xf32>, vector<3x1xf32>, vector<3x1xf32>, vector<3x1xf32>, vector<3x1xf32>, vector<3x1xf32>, vector<3x1xf32>, vector<3x1xf32>, vector<3x1xf32>, vector<3x1xf32>, vector<3x1xf32>, vector<3x1xf32> -> vector<3x16xf32>
    %696 = tpu.concatenate %367, %368, %369, %370, %371, %372, %373, %374, %375, %376, %377, %378, %379, %380, %381, %382 in 1 : vector<3x1xf32>, vector<3x1xf32>, vector<3x1xf32>, vector<3x1xf32>, vector<3x1xf32>, vector<3x1xf32>, vector<3x1xf32>, vector<3x1xf32>, vector<3x1xf32>, vector<3x1xf32>, vector<3x1xf32>, vector<3x1xf32>, vector<3x1xf32>, vector<3x1xf32>, vector<3x1xf32>, vector<3x1xf32> -> vector<3x16xf32>
    %697 = tpu.concatenate %389, %396, %403, %410, %417, %424, %431, %438, %445, %452, %459, %466, %473, %480, %487, %494 in 1 : vector<3x1xf32>, vector<3x1xf32>, vector<3x1xf32>, vector<3x1xf32>, vector<3x1xf32>, vector<3x1xf32>, vector<3x1xf32>, vector<3x1xf32>, vector<3x1xf32>, vector<3x1xf32>, vector<3x1xf32>, vector<3x1xf32>, vector<3x1xf32>, vector<3x1xf32>, vector<3x1xf32>, vector<3x1xf32> -> vector<3x16xf32>
    %698 = tpu.concatenate %641, %644, %645, %652, %655, %658, %659, %666, %669, %672, %673, %680, %683, %686, %687, %694 in 1 : vector<12x1xf32>, vector<12x1xf32>, vector<12x1xf32>, vector<12x1xf32>, vector<12x1xf32>, vector<12x1xf32>, vector<12x1xf32>, vector<12x1xf32>, vector<12x1xf32>, vector<12x1xf32>, vector<12x1xf32>, vector<12x1xf32>, vector<12x1xf32>, vector<12x1xf32>, vector<12x1xf32>, vector<12x1xf32> -> vector<12x16xf32>
    %699 = tpu.concatenate %695, %696, %697, %698 in 0 : vector<3x16xf32>, vector<3x16xf32>, vector<3x16xf32>, vector<12x16xf32> -> vector<21x16xf32>
    %c0_36 = arith.constant 0 : index
    %c0_37 = arith.constant 0 : index
    %700 = vector.load %arg1[%c0_36, %c0_37] : memref<21x16xf32, #tpu.memory_space<vmem>>, vector<21x16xf32>
    tpu.vector_store %arg1[%c0_36, %c0_37], %699 {strides = array<i32>} : memref<21x16xf32, #tpu.memory_space<vmem>>, vector<21x16xf32>,
    return
  }
}

</mosaic_0001>

<bundles_post_ra>
// kernel: robot_kinematics_forward.1
= control target key start
LH: loop header
LB: loop body
LE: loop exit
PB: predicated region body
PF: predicated region fallthrough
CT: control target
= control target key end

     0   :  { %6 = vsyncpa [#allocation3], 0  ;;  %s1839_s6 = smov [#allocation2]   ;;  %s3436_s0 = inlined_call_operand.hbm [shape: f32[3,3], index: 0, kind: input, shape index: {}]   ;;  %s3437_s1 = inlined_call_operand.vmem [shape: f32[21,16], index: 1, kind: output, shape index: {}]  }
   0x1   :  { %s13_s7 = sshll.u32 %s1839_s6, 4  ;;  %s1815_s10 = scalar_lea.hbm %s3436_s0, 64  ;;  %s14_s7 = int_to_ptr.vmem [resolvable:$true] %s13_s7 }
   0x2   :  { %p1816_p0 = scmp.ne.s32.totalorder %s3436_s0, %s1815_s10  ;;  %p1819_p1 = scmp.lt.u32.totalorder %s1815_s10, %s3436_s0 }
   0x4   :  { %p1821_p2 = pnand %p1819_p1, %p1816_p0 }
   0x6   :  { %1824 = shalt.err (!%p1821_p2)
}
   0x7   :  { %s1825_s15 = scalar_lea.vmem %s14_s7, 64  ;;  %p1830_p4 = scmp.lt.s32.totalorder %s14_s7, %s14_s7 }
   0x8   :  { %p1826_p3 = scmp.ne.s32.totalorder %s14_s7, %s1825_s15  ;;  %p1831_p5 = scmp.lt.s32.totalorder %s1825_s15, %s1825_s15 }
   0xa   :  { %p1832_p6 = por %p1831_p5, %p1830_p4 }
   0xc   :  { %p1833_p7 = pnand %p1832_p6, %p1826_p3 }
   0xe   :  { %1836 = shalt.err (!%p1833_p7)
}
   0xf   :  { %16 = dma.hbm_to_vmem [thread:$0]  %s3436_s0, 64, %s14_s7, [#allocation3]  }
  0x10   :  { %1837 = dma.done.wait [#allocation3], 64  }
  0x11   :  { %1838 = vsyncadd [#allocation3], 4294967232  ;;  %v1888_v0 = vld [vmem:[#allocation2] sm:$0x7]  ;;  %s1840_s18 = smov 1   ;;  %s1841_s19 = smov 127  }
  0x12   :  { %v1892_v1 = vmul.f32 %v1888_v0, %v1888_v0  ;;  %290 = vrot.lane.b32.xlu1 %v1888_v0, %s1840_s18  ;;  %s1842_s20 = smov 2   ;;  %v1843_v20 = vmov 683565275   ;;  %v1844_v22 = vmov 2475754826   ;;  %vm704_vm12 = vcmask 1040384  }
  0x13   :  { %v1845_v25 = vmov 2131351028   ;;  %v1846_v28 = vmov 2102212464   ;;  %v1847_v31 = vmov 920167782  }
  0x14   :  { %24 = vrot.lane.b32.xlu0 %v1892_v1, %s1841_s19  ;;  %v1848_v34 = vmov 1326507024   ;;  %vm706_vm13 = vcmask 1041408   ;;  %vm1062_vm14 = vcmask 1042432   ;;  %s1851_s0 = smov 12   ;;  %s1852_s21 = smov 126  }
  0x15   :  { %s1853_s22 = smov 6   ;;  %s1854_s23 = smov 3  }
  0x16   :  { %271 = vrot.lane.b32.xlu1 %v1888_v0, %s1842_s20  ;;  %s1855_s24 = smov 14   ;;  %s1856_s25 = smov 13  }
  0x17   :  { %s1857_s26 = smov 4   ;;  %s1858_s27 = smov 5  }
  0x18   :  { %265 = vrot.lane.b32.xlu0 %v1888_v0, %s1841_s19  ;;  %s1859_s28 = smov 15   ;;  %s1860_s29 = smov 10  }
  0x19   :  { %s1861_s30 = smov 9   ;;  %s1862_s2 = smov 8  }
  0x1a   :  { %s1863_s3 = smov 7   ;;  %s1864_s4 = smov 11  }
  0x86   :  { %v25_v2 = vpop.permute.xlu0 %24 }
  0x87   :  { %v1903_v3 = vadd.f32 %v25_v2, %v1892_v1 }
  0x89   :  { %vm28_vm0 = vcmp.lt.f32.partialorder %v1903_v3, 1e-12 }
  0x8a   :  { %v1909_v4 = vsel %vm28_vm0, 1.0, %v1903_v3 }
  0x8b   :  { %1805 = vrsqrt.f32 %v1909_v4  ;;  %vm32_vm1 = vcmp.eq.f32.partialorder %v1909_v4, inf  ;;  %v35_v7 = vand.u32 2147483648, %v1909_v4  ;;  %vm34_vm2 = vcmp.eq.f32.partialorder %v1909_v4, 0.0 }
  0x95   :  { %v1806_v5 = vpop.eup %1805 }
  0x96   :  { %v31_v6 = vmul.f32 %v1806_v5, %v1909_v4 }
  0x98   :  { %v33_v8 = vsel %vm32_vm1, %v1909_v4, %v31_v6 }
  0x99   :  { %v1917_v9 = vsel %vm34_vm2, %v35_v7, %v33_v8 }
  0x9a   :  { %v43_v10 = vand.u32 2139095040, %v1917_v9  ;;  %v40_v14 = vand.u32 2147483647, %v1917_v9  ;;  %vm42_vm10 = vcmp.lt.s32.totalorder %v1917_v9, 0 }
  0x9c   :  { %v44_v11 = vshrl.u32 %v43_v10, 23  ;;  %v47_v17 = vand.u32 8388607, %v40_v14  ;;  %vm41_vm11 = vcmp.le.f32.partialorder %v40_v14, 0.7853982  ;;  %v1850_v14 = vmov 1.0  }
  0x9e   :  { %v1766_v12 = vadd.s32 4294967169, %v44_v11  ;;  %v48_v36 = vor.u32 8388608, %v47_v17 }
  0xa0   :  { %v50_v13 = vadd.s32 1, %v1766_v12  ;;  %v88_v50 = vshll.u32 %v48_v36, 8 }
  0xa2   :  { %vm51_vm3 = vcmp.gt.s32.totalorder %v50_v13, 0 }
  0xa3   :  { %v52_v15 = vsel %vm51_vm3, %v50_v13, 0 }
  0xa4   :  { %v54_v16 = vand.u32 31, %v52_v15  ;;  %v53_v19 = vshrl.u32 %v52_v15, 5 }
  0xa6   :  { %v55_v18 = vsub.s32 32, %v54_v16  ;;  %v57_v21 = vshll.u32 %v1843_v20, %v54_v16  ;;  %v60_v23 = vshll.u32 %v1844_v22, %v54_v16  ;;  %v63_v27 = vshll.u32 %v1845_v25, %v54_v16 }
  0xa7   :  { %v66_v30 = vshll.u32 %v1846_v28, %v54_v16  ;;  %v69_v33 = vshll.u32 %v1847_v31, %v54_v16  ;;  %vm72_vm4 = vcmp.lt.s32.totalorder %v53_v19, 1  ;;  %vm75_vm5 = vcmp.lt.s32.totalorder %v53_v19, 4 }
  0xa8   :  { %v58_v24 = vshrl.u32 %v1844_v22, %v55_v18  ;;  %v61_v26 = vshrl.u32 %v1845_v25, %v55_v18  ;;  %v64_v29 = vshrl.u32 %v1846_v28, %v55_v18  ;;  %v67_v32 = vshrl.u32 %v1847_v31, %v55_v18 }
  0xa9   :  { %v70_v35 = vshrl.u32 %v1848_v34, %v55_v18  ;;  %v56_v45 = vshrl.u32 %v1843_v20, %v55_v18  ;;  %vm74_vm6 = vcmp.lt.s32.totalorder %v53_v19, 3  ;;  %vm73_vm7 = vcmp.lt.s32.totalorder %v53_v19, 2 }
  0xaa   :  { %v59_v37 = vor.u32 %v58_v24, %v57_v21  ;;  %v62_v38 = vor.u32 %v61_v26, %v60_v23  ;;  %v65_v39 = vor.u32 %v64_v29, %v63_v27  ;;  %v68_v40 = vor.u32 %v67_v32, %v66_v30 }
  0xab   :  { %v71_v41 = vor.u32 %v70_v35, %v69_v33  ;;  %v1849_v34 = vmov 6.123234e-17  }
  0xac   :  { %v77_v42 = vsel %vm75_vm5, %v65_v39, 2102212464  ;;  %v80_v43 = vsel %vm72_vm4, %v59_v37, %v62_v38  ;;  %v84_v44 = vsel %vm72_vm4, %v62_v38, %v65_v39  ;;  %v81_v46 = vsel %vm75_vm5, %v68_v40, 920167782 }
  0xad   :  { %v85_v47 = vsel %vm75_vm5, %v71_v41, 1326507024  ;;  %v82_v48 = vsel %vm74_vm6, %v65_v39, %v81_v46  ;;  %v76_v51 = vsel %vm72_vm4, %v56_v45, %v59_v37  ;;  %v78_v52 = vsel %vm74_vm6, %v62_v38, %v77_v42 }
  0xae   :  { %v86_v49 = vsel %vm74_vm6, %v68_v40, %v85_v47  ;;  %v83_v53 = vsel %vm73_vm7, %v80_v43, %v82_v48  ;;  %v79_v59 = vsel %vm73_vm7, %v76_v51, %v78_v52  ;;  %v1060_v35 = vsel %vm704_vm12, 1.0, %v1849_v34 }
  0xaf   :  { %v87_v54 = vsel %vm73_vm7, %v84_v44, %v86_v49  ;;  %v1926_v57 = vmul.u32.u64.low %v88_v50, %v83_v53  ;;  %v1927_v58 = vmul.u32.u64.high %v88_v50, %v83_v53, %v1926_v57  ;;  %v95_v61 = vmul.u32 %v88_v50, %v79_v59 }
  0xb0   :  { %v1923_v55 = vmul.u32.u64.low %v88_v50, %v87_v54  ;;  %v1924_v56 = vmul.u32.u64.high %v88_v50, %v87_v54, %v1923_v55  ;;  %v1064_v38 = vsel %vm704_vm12, 0.0, %v1850_v14  ;;  %v1942_v40 = vsub.f32 0.0, %v1888_v0  ;;  %v266_v54 = vpop.permute.xlu0 %265 }
  0xb1   :  { %v98_v60 = vadd.s32 1, %v1927_v58  ;;  %v1082_v41 = vlaneseq  ;;  %v1061_v42 = vsel %vm706_vm13, %v1060_v35, -1.0  ;;  %v258_v44 = vmul.f32 0.5, %v1903_v3 }
  0xb2   :  { %vm97_vm8 = vc.u32 %v1924_v56, %v1926_v57  ;;  %v96_v15 = vadd.s32 %v1926_v57, %v1924_v56  ;;  %v38_v45 = vmul.f32 0.16666667, %v1903_v3  ;;  %v1065_v47 = vsel %vm706_vm13, %v1064_v38, 1.2246469e-16 }
  0xb3   :  { %v99_v62 = vsel %vm97_vm8, %v98_v60, %v1927_v58  ;;  %v148_v48 = vmul.f32 0.041666668, %v1903_v3  ;;  %v259_v53 = vsub.f32 1.0, %v258_v44  ;;  %vm132_vm6 = vweird.f32 %v1917_v9 }
  0xb4   :  { %v100_v63 = vadd.s32 %v99_v62, %v95_v61  ;;  %v1950_v60 = vshrl.u32 %v1082_v41, 7  ;;  %v1953_v61 = vsel %vm1062_vm14, %v1061_v42, -1.8369701e-16  ;;  %v39_v62 = vsub.f32 1.0, %v38_v45 }
  0xb5   :  { %3518 = vst [vmem:[#allocation5_spill] sm:$0xff] %v1953_v61  ;;  %vm1070_vm7 = vcmask 1043456   ;;  %vm1411_vm8 = vcmask 15360  }
  0xb6   :  { %v101_v2 = vadd.s32 536870912, %v100_v63 }
  0xb8   :  { %v102_v5 = vshrl.u32 %v101_v2, 30 }
  0xba   :  { %v103_v6 = vshll.u32 %v102_v5, 30  ;;  %v126_v27 = vsub.s32 4, %v102_v5 }
  0xbc   :  { %v104_v7 = vsub.s32 %v100_v63, %v103_v6  ;;  %v127_v30 = vsel %vm42_vm10, %v126_v27, %v102_v5 }
  0xbd   :  { %v129_v32 = vsel %vm41_vm11, 0, %v127_v30 }
  0xbe   :  { %v106_v8 = vsub.s32 0, %v104_v7  ;;  %v133_v33 = vadd.s32 3, %v129_v32  ;;  %v243_v37 = vand.u32 3, %v129_v32 }
  0xc0   :  { %v1767_v10 = vmin.u32 %v106_v8, %v104_v7  ;;  %v134_v36 = vand.u32 3, %v133_v33  ;;  %vm248_vm1 = vcmp.eq.s32.totalorder %v243_v37, 2  ;;  %vm245_vm3 = vcmp.eq.s32.totalorder %v243_v37, 0 }
  0xc1   :  { %vm244_vm5 = vcmp.lt.s32.totalorder %v243_v37, 2 }
  0xc2   :  { %v108_v11 = vclz %v1767_v10  ;;  %vm139_vm15 = vcmp.eq.s32.totalorder %v134_v36, 2  ;;  %vm136_vm2 = vcmp.eq.s32.totalorder %v134_v36, 0  ;;  %vm135_vm4 = vcmp.lt.s32.totalorder %v134_v36, 2 }
  0xc3   :  { %v149_v10 = vsub.f32 0.5, %v148_v48 }
  0xc4   :  { %v1768_v12 = vadd.s32 4294967294, %v108_v11 }
  0xc6   :  { %vm1769_vm9 = vcmp.lt.s32.totalorder %v1768_v12, 0 }
  0xc7   :  { %v111_v13 = vsel %vm1769_vm9, 0, %v1768_v12  ;;  %v1068_v12 = vrot.slane %v1953_v61, 4  ;;  %vm1413_vm9 = vcmask 23552  }
  0xc8   :  { %v112_v16 = vsub.s32 32, %v111_v13  ;;  %v116_v17 = vsub.s32 4294967266, %v111_v13  ;;  %v113_v18 = vshll.u32 %v104_v7, %v111_v13  ;;  %v1961_v7 = vsel %vm1062_vm14, %v1065_v47, -1.0 }
  0xc9   :  { %3520 = vst [vmem:[#allocation7_spill] sm:$0xff] %v1961_v7 }
  0xca   :  { %v114_v19 = vshrl.u32 %v96_v15, %v112_v16  ;;  %v117_v20 = vadd.s32 127, %v116_v17  ;;  %v1974_v16 = vsub.s32 0, %v1950_v60  ;;  %v1073_v17 = vrot.slane %v1961_v7, 4 }
  0xcc   :  { %v115_v21 = vor.u32 %v114_v19, %v113_v18  ;;  %v118_v22 = vshll.u32 %v117_v20, 23 }
  0xce   :  { %v119_v23 = vor.u32 4788187, %v118_v22  ;;  %v122_v25 = vcvt.s32.f32 %v115_v21  ;;  %v1991_v22 = vsel %vm1070_vm7, %v1953_v61, %v1068_v12 }
  0xcf   :  { %3523 = vst [vmem:[#allocation10_spill] sm:$0xff] %v1991_v22 }
  0xd0   :  { %v120_v24 = vand.u32 2147483647, %v119_v23 }
  0xd2   :  { %v123_v26 = vmul.f32 %v122_v25, %v120_v24  ;;  %v1999_v25 = vsel %vm1070_vm7, %v1961_v7, %v1073_v17 }
  0xd3   :  { %3524 = vst [vmem:[#allocation11_spill] sm:$0xff] %v1999_v25  ;;  %v2040_v44 = vsub.f32 0.0, %v1999_v25 }
  0xd4   :  { %v124_v28 = vxor.u32 2147483648, %v123_v26 }
  0xd5   :  { %3528 = vst [vmem:[#allocation15_spill] sm:$0xff] %v2040_v44 }
  0xd6   :  { %v125_v29 = vsel %vm42_vm10, %v124_v28, %v123_v26  ;;  %vm1415_vm10 = vcmask 31744  }
  0xd7   :  { %v128_v31 = vsel %vm41_vm11, %v1917_v9, %v125_v29  ;;  %v2010_v29 = vmul.f32 0.012, %v1999_v25  ;;  %vm1417_vm11 = vcmask 39936  }
  0xd8   :  { %1807 = vcosq.f32 %v128_v31 }
  0xd9   :  { %1809 = vsinq.f32 %v128_v31  ;;  %3525 = vst [vmem:[#allocation12_spill] sm:$0xff] %v2010_v29  ;;  %v2014_v31 = vmul.f32 0.012, %v1991_v22 }
  0xda   :  { %1811 = vrcp.f32 %v1917_v9  ;;  %v268_v9 = vmul.f32 %v266_v54, %v1942_v40  ;;  %v291_v54 = vpop.permute.xlu1 %290 }
  0xdb   :  { %1813 = vrcp.f32 %v1909_v4  ;;  %3526 = vst [vmem:[#allocation13_spill] sm:$0xff] %v2014_v31 }
  0xe2   :  { %v1808_v39 = vpop.eup %1807 }
  0xe3   :  { %v1810_v43 = vpop.eup %1809  ;;  %v140_v46 = vxor.u32 2147483648, %v1808_v39 }
  0xe4   :  { %v137_v4 = vxor.u32 2147483648, %v1810_v43  ;;  %v1812_v57 = vpop.eup %1811 }
  0xe5   :  { %v141_v49 = vsel %vm139_vm15, %v140_v46, %v1810_v43  ;;  %v250_v50 = vsel %vm248_vm1, %v140_v46, %v1810_v43  ;;  %v1814_v6 = vpop.eup %1813  ;;  %vm1419_vm15 = vcmask 48128   ;;  %vm1421_vm1 = vcmask 56320  }
  0xe6   :  { %v138_v51 = vsel %vm136_vm2, %v1808_v39, %v137_v4  ;;  %v247_v52 = vsel %vm245_vm3, %v1808_v39, %v137_v4  ;;  %vm1423_vm2 = vcmask 64512   ;;  %vm1425_vm3 = vcmask 72704  }
  0xe7   :  { %v142_v55 = vsel %vm135_vm4, %v138_v51, %v141_v49  ;;  %v251_v56 = vsel %vm244_vm5, %v247_v52, %v250_v50  ;;  %vm1427_vm4 = vcmask 80896   ;;  %vm1429_vm5 = vcmask 89088  }
  0xe8   :  { %v143_v58 = vsel %vm132_vm6, nan, %v142_v55  ;;  %v252_v59 = vsel %vm132_vm6, nan, %v251_v56  ;;  %v272_v55 = vpop.permute.xlu1 %271  ;;  %v21_v56 = vadd.f32 0.11, %v1888_v0  ;;  %vm1433_vm6 = vcmask 105472  }
  0xe9   :  { %v145_v63 = vmul.f32 %v1812_v57, %v143_v58  ;;  %v1957_v2 = vsel %vm28_vm0, %v259_v53, %v252_v59  ;;  %v253_v5 = vsub.f32 1.0, %v252_v59 }
  0xea   :  { %3519 = vst [vmem:[#allocation6_spill] sm:$0xff] %v1957_v2  ;;  %v1978_v18 = vrot.slane %v1957_v2, 1  ;;  %v313_v19 = vmul.f32 0.017, %v1957_v2 }
  0xeb   :  { %v146_v8 = vsel %vm28_vm0, %v39_v62, %v145_v63  ;;  %v255_v11 = vmul.f32 %v1814_v6, %v253_v5 }
  0xec   :  { %286 = vrot.lane.b32.xlu1 %v146_v8, %s1840_s18  ;;  %297 = vrot.lane.b32.xlu0 %v146_v8, %s1842_s20  ;;  %v1969_v13 = vmul.f32 %v146_v8, %v1888_v0  ;;  %v2002_v26 = vmul.f32 %v1942_v40, %v146_v8 }
  0xed   :  { %v256_v15 = vsel %vm28_vm0, %v149_v10, %v255_v11  ;;  %vm1409_vm0 = vcmask 7168  }
  0xee   :  { %3521 = vst [vmem:[#allocation8_spill] sm:$0xff] %v1969_v13  ;;  %v261_v20 = vmul.f32 %v256_v15, %v1892_v1  ;;  %v1982_v21 = vmul.f32 %v268_v9, %v256_v15  ;;  %v1107_v24 = vrot.slane %v1969_v13, %v1974_v16  ;;  %v2028_v14 = vrot.slane %v2002_v26, 1 }
  0xef   :  { %v301_v38 = vmul.f32 0.017, %v1969_v13  ;;  %v528_v46 = vmul.f32 0.0, %v2002_v26  ;;  %v274_v9 = vmul.f32 %v272_v55, %v21_v56 }
  0xf0   :  { %444 = vrot.lane.b32.xlu1 %v1978_v18, %s1840_s18  ;;  %315 = vrot.lane.b32.xlu0 %v313_v19, %s1842_s20  ;;  %v1987_v3 = vsub.f32 1.0, %v261_v20  ;;  %v1096_v23 = vrot.slane %v1982_v21, %v1974_v16  ;;  %v2020_v33 = vmul.f32 0.0, %v1982_v21  ;;  %v1114_v34 = vsel %vm1070_vm7, 0.0, %v1107_v24 }
  0xf1   :  { %v1274_v43 = vmul.f32 0.005, %v1114_v34  ;;  %v2044_v47 = vrot.slane %v1982_v21, 1  ;;  %v293_v19 = vmul.f32 %v291_v54, %v21_v56 }
  0xf2   :  { %3522 = vst [vmem:[#allocation9_spill] sm:$0xff] %v1987_v3  ;;  %v1085_v27 = vrot.slane %v1987_v3, %v1974_v16  ;;  %v2007_v28 = vsel %vm1070_vm7, 0.0, %v1096_v23  ;;  %v525_v30 = vmul.f32 0.0, %v1987_v3 }
  0xf3   :  { %v1258_v36 = vmul.f32 %v2007_v28, %v1999_v25  ;;  %v1270_v39 = vmul.f32 %v2007_v28, %v2010_v29  ;;  %v2056_v50 = vmul.f32 %v2007_v28, %v1991_v22 }
  0xf4   :  { %276 = vrot.lane.b32.xlu1 %v256_v15, %s1842_s20  ;;  %280 = vrot.lane.b32.xlu0 %v256_v15, %s1840_s18  ;;  %v1092_v32 = vsel %vm1070_vm7, 1.0, %v1085_v27  ;;  %v527_v41 = vadd.f32 %v2020_v33, %v525_v30 }
  0xf5   :  { %v1256_v35 = vmul.f32 %v1092_v32, %v1991_v22  ;;  %v1268_v37 = vmul.f32 %v1092_v32, %v2014_v31  ;;  %v1262_v4 = vmul.f32 %v1092_v32, %v2040_v44  ;;  %3530 = vst [vmem:[#allocation17_spill] sm:$0xff] %v2056_v50  ;;  %v2363_v22 = vmul.f32 %v2044_v47, %v2002_v26 }
  0xf6   :  { %v2049_v49 = vadd.f32 %v528_v46, %v527_v41 }
  0xf7   :  { %v2034_v42 = vadd.f32 %v1258_v36, %v1256_v35  ;;  %v1272_v45 = vadd.f32 %v1270_v39, %v1268_v37  ;;  %v1266_v51 = vadd.f32 %v2056_v50, %v1262_v4  ;;  %v2359_v50 = vrot.slane %v1982_v21, 2  ;;  %3571 = vst [vmem:[#allocation58_spill] sm:$0xff] %v2363_v22 }
  0xf8   :  { %406 = vrot.lane.b32.xlu1 %v2028_v14, %s1840_s18  ;;  %303 = vrot.lane.b32.xlu0 %v301_v38, %s1842_s20  ;;  %3529 = vst [vmem:[#allocation16_spill] sm:$0xff] %v2049_v49  ;;  %v795_v52 = vrot.slane %v2049_v49, 7 }
  0xf9   :  { %3527 = vst [vmem:[#allocation14_spill] sm:$0xff] %v2034_v42  ;;  %v2047_v48 = vadd.f32 %v1274_v43, %v1272_v45  ;;  %3570 = vst [vmem:[#allocation57_spill] sm:$0xff] %v2359_v50 }
  0xfa   :  { %v2062_v53 = vsel %vm706_vm13, 0.0, %v795_v52 }
  0xfb   :  { %3531 = vst [vmem:[#allocation18_spill] sm:$0xff] %v2062_v53  ;;  %v2379_v29 = vmul.f32 %v2062_v53, %v1982_v21  ;;  %v2383_v22 = vmul.f32 %v2062_v53, %v1969_v13 }
  0xfc   :  { %1599 = vrot.lane.b32.xlu0 %v1114_v34, %s1842_s20  ;;  %397 = vrot.lane.b32.xlu1 %v2044_v47, %s1840_s18 }
 0x100   :  { %1591 = vrot.lane.b32.xlu0 %v1266_v51, %s1840_s18 }
 0x104   :  { %1394 = vrot.lane.b32.xlu0 %v2062_v53, %s1851_s0 }
 0x15e   :  { %v287_v57 = vpop.permute.xlu1 %286  ;;  %v298_v58 = vpop.permute.xlu0 %297 }
 0x15f   :  { %v2068_v59 = vmul.f32 %v287_v57, %v1888_v0  ;;  %v2070_v62 = vmul.f32 %v298_v58, %v21_v56  ;;  %v2077_v5 = vmul.f32 %v287_v57, %v1942_v40 }
 0x161   :  { %3532 = vst [vmem:[#allocation19_spill] sm:$0xff] %v2068_v59  ;;  %3533 = vst [vmem:[#allocation20_spill] sm:$0xff] %v2070_v62  ;;  %959 = vrot.lane.b32.xlu0 %v2068_v59, %s1841_s19  ;;  %521 = vrot.lane.b32.xlu1 %v2070_v62, %s1852_s21  ;;  %v2080_v6 = vrot.slane %v2068_v59, 1  ;;  %v307_v10 = vmul.f32 0.017, %v2068_v59  ;;  %v348_v11 = vrot.slane %v2077_v5, 1  ;;  %v1153_v32 = vrot.slane %v2068_v59, %v1974_v16 }
 0x162   :  { %v445_v63 = vpop.permute.xlu1 %444  ;;  %3534 = vst [vmem:[#allocation21_spill] sm:$0xff] %v2077_v5  ;;  %v386_v12 = vrot.slane %v2070_v62, 1  ;;  %v545_v15 = vmul.f32 0.0, %v2068_v59  ;;  %v577_v17 = vrot.slane %v2077_v5, 2  ;;  %v609_v23 = vrot.slane %v2070_v62, 2  ;;  %v316_v43 = vpop.permute.xlu0 %315 }
 0x163   :  { %v447_v40 = vmul.f32 %v445_v63, %v2068_v59  ;;  %v2110_v24 = vmul.f32 0.0, %v2070_v62  ;;  %v785_v27 = vrot.slane %v2070_v62, 7  ;;  %v537_v30 = vmul.f32 0.0, %v2077_v5 }
 0x164   :  { %v587_v34 = vrot.slane %v2068_v59, 2  ;;  %v1194_v35 = vrot.slane %v2077_v5, %v1974_v16  ;;  %v744_v36 = vrot.slane %v2068_v59, 7  ;;  %v769_v41 = vrot.slane %v2077_v5, 7 }
 0x165   :  { %361 = vrot.lane.b32.xlu0 %v2080_v6, %s1841_s19  ;;  %952 = vrot.lane.b32.xlu1 %v2077_v5, %s1841_s19  ;;  %v318_v45 = vsub.f32 %v2070_v62, %v316_v43  ;;  %v1220_v46 = vrot.slane %v2070_v62, %v1974_v16 }
 0x166   :  { %v277_v0 = vpop.permute.xlu1 %276  ;;  %v281_v51 = vpop.permute.xlu0 %280 }
 0x167   :  { %v2086_v8 = vmul.f32 %v277_v0, %v274_v9  ;;  %v2103_v20 = vmul.f32 %v293_v19, %v277_v0  ;;  %v283_v52 = vmul.f32 %v281_v51, %v1892_v1  ;;  %v429_v9 = vmul.f32 %v348_v11, %v2068_v59 }
 0x169   :  { %3535 = vst [vmem:[#allocation22_spill] sm:$0xff] %v2086_v8  ;;  %309 = vrot.lane.b32.xlu1 %v307_v10, %s1840_s18  ;;  %392 = vrot.lane.b32.xlu0 %v2086_v8, %s1852_s21  ;;  %3536 = vst [vmem:[#allocation23_spill] sm:$0xff] %v2103_v20  ;;  %v379_v37 = vrot.slane %v2103_v20, 1  ;;  %v598_v4 = vrot.slane %v2086_v8, 2  ;;  %v753_v54 = vrot.slane %v2103_v20, 7  ;;  %v333_v55 = vmul.f32 0.0, %v2086_v8 }
 0x16a   :  { %v407_v38 = vpop.permute.xlu1 %406  ;;  %v2147_v56 = vsub.f32 1.0, %v283_v52  ;;  %v373_v57 = vrot.slane %v2086_v8, 1  ;;  %v1118_v1 = vrot.slane %v2086_v8, %v1974_v16  ;;  %v415_v58 = vmul.f32 0.0, %v2103_v20  ;;  %v304_v19 = vpop.permute.xlu0 %303 }
 0x16b   :  { %v409_v39 = vmul.f32 %v407_v38, %v2068_v59 }
 0x16c   :  { %3537 = vst [vmem:[#allocation24_spill] sm:$0xff] %v2147_v56  ;;  %v341_v63 = vrot.slane %v2147_v56, 1  ;;  %v1138_v38 = vrot.slane %v2147_v56, %v1974_v16 }
 0x16d   :  { %349 = vrot.lane.b32.xlu1 %v348_v11, %s1841_s19  ;;  %449 = vrot.lane.b32.xlu0 %v447_v40, %s1841_s19  ;;  %v503_v40 = vmul.f32 %v2080_v6, %v2077_v5 }
 0x16e   :  { %v398_v0 = vpop.permute.xlu1 %397 }
 0x16f   :  { %v400_v10 = vmul.f32 %v398_v0, %v2147_v56  ;;  %v478_v11 = vmul.f32 %v398_v0, %v2077_v5 }
 0x171   :  { %387 = vrot.lane.b32.xlu1 %v386_v12, %s1852_s21  ;;  %547 = vrot.lane.b32.xlu0 %v545_v15, %s1841_s19  ;;  %v603_v15 = vrot.slane %v2103_v20, 2 }
 0x175   :  { %464 = vrot.lane.b32.xlu1 %v386_v12, %s1841_s19  ;;  %578 = vrot.lane.b32.xlu0 %v577_v17, %s1841_s19  ;;  %v438_v12 = vmul.f32 %v2080_v6, %v2147_v56  ;;  %v722_v17 = vrot.slane %v2086_v8, 7  ;;  %v554_v6 = vadd.f32 %v415_v58, %v333_v55 }
 0x179   :  { %473 = vrot.lane.b32.xlu1 %v2103_v20, %s1852_s21  ;;  %610 = vrot.lane.b32.xlu0 %v609_v23, %s1852_s21  ;;  %v306_v23 = vsub.f32 %v2086_v8, %v304_v19 }
 0x17d   :  { %488 = vrot.lane.b32.xlu1 %v2110_v24, %s1852_s21  ;;  %786 = vrot.lane.b32.xlu0 %v785_v27, %s1852_s21  ;;  %v531_v27 = vmul.f32 0.0, %v2147_v56 }
 0x181   :  { %539 = vrot.lane.b32.xlu1 %v537_v30, %s1841_s19  ;;  %1161 = vrot.lane.b32.xlu0 %v1153_v32, %s1841_s19  ;;  %v735_v30 = vrot.slane %v2147_v56, 7  ;;  %v1168_v32 = vrot.slane %v2103_v20, %v1974_v16 }
 0x185   :  { %588 = vrot.lane.b32.xlu1 %v587_v34, %s1841_s19  ;;  %1202 = vrot.lane.b32.xlu0 %v1194_v35, %s1841_s19  ;;  %v422_v34 = vmul.f32 %v341_v63, %v2147_v56  ;;  %v571_v35 = vrot.slane %v2147_v56, 2 }
 0x189   :  { %745 = vrot.lane.b32.xlu1 %v744_v36, %s1841_s19  ;;  %380 = vrot.lane.b32.xlu0 %v379_v37, %s1852_s21  ;;  %v555_v36 = vadd.f32 %v554_v6, %v2110_v24  ;;  %v2200_v24 = vsub.s32 1, %v1950_v60 }
 0x18d   :  { %770 = vrot.lane.b32.xlu1 %v769_v41, %s1841_s19  ;;  %411 = vrot.lane.b32.xlu0 %v409_v39, %s1841_s19  ;;  %v556_v39 = vadd.f32 1.0, %v555_v36  ;;  %v2195_v41 = vpop.permute.xlu0 %1599 }
 0x18e   :  { %3538 = vst [vmem:[#allocation25_spill] sm:$0xff] %v2195_v41 }
 0x18f   :  { %v671_v43 = vmul.f32 0.0, %v556_v39 }
 0x191   :  { %979 = vrot.lane.b32.xlu1 %v318_v45, %s1852_s21  ;;  %455 = vrot.lane.b32.xlu0 %v379_v37, %s1841_s19  ;;  %v493_v37 = vmul.f32 %v341_v63, %v2077_v5  ;;  %v1250_v45 = vrot.slane %v556_v39, %v2200_v24 }
 0x195   :  { %1228 = vrot.lane.b32.xlu1 %v1220_v46, %s1852_s21  ;;  %599 = vrot.lane.b32.xlu0 %v598_v4, %s1852_s21  ;;  %v806_v46 = vrot.slane %v556_v39, 7  ;;  %v2203_v4 = vpop.permute.xlu0 %1591 }
 0x196   :  { %3539 = vst [vmem:[#allocation26_spill] sm:$0xff] %v2203_v4  ;;  %v2333_v4 = vsub.f32 0.0, %v1961_v7 }
 0x198   :  { %3566 = vst [vmem:[#allocation53_spill] sm:$0xff] %v2333_v4  ;;  %v762_v4 = vrot.slane %v2002_v26, 7 }
 0x199   :  { %754 = vrot.lane.b32.xlu0 %v753_v54, %s1852_s21  ;;  %335 = vrot.lane.b32.xlu1 %v333_v55, %s1852_s21  ;;  %v2207_v51 = vpop.permute.xlu0 %1394 }
 0x19a   :  { %3540 = vst [vmem:[#allocation27_spill] sm:$0xff] %v2207_v51 }
 0x19d   :  { %947 = vrot.lane.b32.xlu0 %v2147_v56, %s1841_s19  ;;  %374 = vrot.lane.b32.xlu1 %v373_v57, %s1852_s21 }
 0x1a1   :  { %1126 = vrot.lane.b32.xlu0 %v1118_v1, %s1852_s21  ;;  %417 = vrot.lane.b32.xlu1 %v415_v58, %s1852_s21 }
 0x1a5   :  { %342 = vrot.lane.b32.xlu0 %v341_v63, %s1841_s19  ;;  %431 = vrot.lane.b32.xlu1 %v429_v9, %s1841_s19 }
 0x1a9   :  { %402 = vrot.lane.b32.xlu0 %v400_v10, %s1841_s19  ;;  %505 = vrot.lane.b32.xlu1 %v503_v40, %s1841_s19 }
 0x1ad   :  { %440 = vrot.lane.b32.xlu0 %v438_v12, %s1841_s19  ;;  %604 = vrot.lane.b32.xlu1 %v603_v15, %s1852_s21 }
 0x1b1   :  { %480 = vrot.lane.b32.xlu0 %v478_v11, %s1841_s19  ;;  %723 = vrot.lane.b32.xlu1 %v722_v17, %s1852_s21 }
 0x1b5   :  { %533 = vrot.lane.b32.xlu0 %v531_v27, %s1841_s19  ;;  %968 = vrot.lane.b32.xlu1 %v306_v23, %s1852_s21 }
 0x1b9   :  { %736 = vrot.lane.b32.xlu0 %v735_v30, %s1841_s19  ;;  %1176 = vrot.lane.b32.xlu1 %v1168_v32, %s1852_s21 }
 0x1bd   :  { %424 = vrot.lane.b32.xlu0 %v422_v34, %s1841_s19  ;;  %572 = vrot.lane.b32.xlu1 %v571_v35, %s1841_s19 }
 0x1c1   :  { %495 = vrot.lane.b32.xlu0 %v493_v37, %s1841_s19  ;;  %1146 = vrot.lane.b32.xlu1 %v1138_v38, %s1841_s19 }
 0x1c5   :  { %695 = vrot.lane.b32.xlu0 %v556_v39, %s1852_s21  ;;  %673 = vrot.lane.b32.xlu1 %v671_v43, %s1852_s21  ;;  %v2259_v39 = vrot.slane %v1969_v13, 1 }
 0x1c9   :  { %1253 = vrot.lane.b32.xlu0 %v1250_v45, %s1852_s21  ;;  %807 = vrot.lane.b32.xlu1 %v806_v46, %s1852_s21 }
 0x1d3   :  { %v2209_v52 = vpop.permute.xlu0 %959  ;;  %v2211_v54 = vpop.permute.xlu1 %521 }
 0x1d4   :  { %3541 = vst [vmem:[#allocation28_spill] sm:$0xff] %v2209_v52  ;;  %3542 = vst [vmem:[#allocation29_spill] sm:$0xff] %v2211_v54 }
 0x1d7   :  { %v2213_v55 = vpop.permute.xlu0 %361  ;;  %v2215_v57 = vpop.permute.xlu1 %952 }
 0x1d8   :  { %3543 = vst [vmem:[#allocation30_spill] sm:$0xff] %v2215_v57  ;;  %v364_v43 = vmul.f32 %v2213_v55, %v1982_v21 }
 0x1db   :  { %v310_v60 = vpop.permute.xlu1 %309  ;;  %v2217_v1 = vpop.permute.xlu0 %392 }
 0x1dc   :  { %3544 = vst [vmem:[#allocation31_spill] sm:$0xff] %v2217_v1  ;;  %v312_v34 = vsub.f32 %v2103_v20, %v310_v60  ;;  %v358_v60 = vmul.f32 %v2259_v39, %v1987_v3 }
 0x1df   :  { %v2219_v58 = vpop.permute.xlu1 %349  ;;  %v2221_v63 = vpop.permute.xlu0 %449 }
 0x1e3   :  { %v2223_v9 = vpop.permute.xlu1 %387  ;;  %v548_v0 = vpop.permute.xlu0 %547 }
 0x1e4   :  { %3545 = vst [vmem:[#allocation32_spill] sm:$0xff] %v2223_v9 }
 0x1e7   :  { %v465_v10 = vpop.permute.xlu1 %464  ;;  %v2225_v40 = vpop.permute.xlu0 %578 }
 0x1e8   :  { %v467_v6 = vmul.f32 %v465_v10, %v2068_v59  ;;  %v369_v59 = vmul.f32 %v1978_v18, %v1969_v13 }
 0x1eb   :  { %v2227_v12 = vpop.permute.xlu1 %473  ;;  %v2229_v15 = vpop.permute.xlu0 %610 }
 0x1ec   :  { %3546 = vst [vmem:[#allocation33_spill] sm:$0xff] %v2227_v12  ;;  %3547 = vst [vmem:[#allocation34_spill] sm:$0xff] %v2229_v15  ;;  %v2337_v12 = vmul.f32 %v2044_v47, %v1987_v3 }
 0x1ef   :  { %v2231_v11 = vpop.permute.xlu1 %488  ;;  %v2233_v17 = vpop.permute.xlu0 %786 }
 0x1f0   :  { %3548 = vst [vmem:[#allocation35_spill] sm:$0xff] %v2231_v11  ;;  %3549 = vst [vmem:[#allocation36_spill] sm:$0xff] %v2233_v17  ;;  %v331_v11 = vmul.f32 %v2028_v14, %v1969_v13 }
 0x1f3   :  { %v2235_v19 = vpop.permute.xlu1 %539  ;;  %v1162_v23 = vpop.permute.xlu0 %1161 }
 0x1f4   :  { %v2238_v27 = vsel %vm1070_vm7, 0.0, %v1162_v23 }
 0x1f5   :  { %1631 = vrot.lane.b32.xlu0 %v2238_v27, %s1853_s22 }
 0x1f7   :  { %v2243_v30 = vpop.permute.xlu1 %588  ;;  %v2245_v32 = vpop.permute.xlu0 %1202 }
 0x1f8   :  { %3550 = vst [vmem:[#allocation37_spill] sm:$0xff] %v2243_v30  ;;  %3551 = vst [vmem:[#allocation38_spill] sm:$0xff] %v2245_v32 }
 0x1f9   :  { %469 = vrot.lane.b32.xlu0 %v467_v6, %s1841_s19  ;;  %v365_v6 = vadd.f32 %v364_v43, %v358_v60 }
 0x1fb   :  { %v2249_v35 = vpop.permute.xlu1 %745  ;;  %v2251_v36 = vpop.permute.xlu0 %380  ;;  %v370_v62 = vadd.f32 %v369_v59, %v365_v6  ;;  %v551_v59 = vmul.f32 0.0, %v1957_v2 }
 0x1fd   :  { %973 = vrot.lane.b32.xlu0 %v312_v34, %s1852_s21 }
 0x1ff   :  { %v2254_v37 = vpop.permute.xlu1 %770  ;;  %v2256_v38 = vpop.permute.xlu0 %411 }
 0x203   :  { %v2263_v45 = vpop.permute.xlu1 %979  ;;  %v456_v46 = vpop.permute.xlu0 %455 }
 0x204   :  { %3552 = vst [vmem:[#allocation39_spill] sm:$0xff] %v2263_v45  ;;  %v458_v10 = vmul.f32 %v456_v46, %v2147_v56  ;;  %v513_v23 = vmul.f32 %v456_v46, %v2077_v5  ;;  %v544_v56 = vmul.f32 0.0, %v1969_v13  ;;  %v2342_v45 = vmul.f32 %v2259_v39, %v2002_v26 }
 0x206   :  { %515 = vrot.lane.b32.xlu0 %v513_v23, %s1841_s19  ;;  %460 = vrot.lane.b32.xlu1 %v458_v10, %s1841_s19  ;;  %v550_v46 = vadd.f32 %v548_v0, %v544_v56 }
 0x207   :  { %v2271_v34 = vpop.permute.xlu1 %1228  ;;  %v2273_v51 = vpop.permute.xlu0 %599 }
 0x208   :  { %3553 = vst [vmem:[#allocation40_spill] sm:$0xff] %v2271_v34  ;;  %3554 = vst [vmem:[#allocation41_spill] sm:$0xff] %v2273_v51  ;;  %v2296_v6 = vadd.f32 %v551_v59, %v550_v46  ;;  %v778_v59 = vrot.slane %v1957_v2, 7 }
 0x20a   :  { %v803_v0 = vrot.slane %v2296_v6, 7  ;;  %v2330_v42 = vsel %vm704_vm12, 1.0, %v778_v59 }
 0x20b   :  { %v2277_v20 = vpop.permute.xlu0 %754  ;;  %v2279_v8 = vpop.permute.xlu1 %335  ;;  %3565 = vst [vmem:[#allocation52_spill] sm:$0xff] %v2330_v42  ;;  %v2353_v42 = vmul.f32 %v2028_v14, %v1957_v2 }
 0x20c   :  { %3555 = vst [vmem:[#allocation42_spill] sm:$0xff] %v2277_v20  ;;  %v2283_v43 = vadd.f32 %v370_v62, %v2279_v8  ;;  %v320_v20 = vrot.slane %v1987_v3, 1  ;;  %v2310_v46 = vsel %vm706_vm13, 0.0, %v803_v0  ;;  %v2327_v0 = vmul.f32 %v2044_v47, %v1982_v21 }
 0x20d   :  { %3561 = vst [vmem:[#allocation48_spill] sm:$0xff] %v2310_v46  ;;  %3569 = vst [vmem:[#allocation56_spill] sm:$0xff] %v2353_v42  ;;  %v2372_v42 = vmul.f32 %v2062_v53, %v1987_v3  ;;  %v683_v53 = vmul.f32 %v2049_v49, %v2259_v39 }
 0x20e   :  { %3556 = vst [vmem:[#allocation43_spill] sm:$0xff] %v2283_v43  ;;  %v2287_v60 = vrot.slane %v2283_v43, %v1974_v16  ;;  %v396_v54 = vmul.f32 %v320_v20, %v1982_v21  ;;  %v2349_v59 = vmul.f32 %v320_v20, %v2002_v26 }
 0x20f   :  { %v2289_v10 = vpop.permute.xlu0 %947  ;;  %v2291_v23 = vpop.permute.xlu1 %374  ;;  %3573 = vst [vmem:[#allocation60_spill] sm:$0xff] %v2372_v42  ;;  %v2391_v42 = vmul.f32 %v2007_v28, %v2014_v31 }
 0x210   :  { %3557 = vst [vmem:[#allocation44_spill] sm:$0xff] %v2287_v60  ;;  %3558 = vst [vmem:[#allocation45_spill] sm:$0xff] %v2289_v10  ;;  %1601 = vrot.lane.b32.xlu1 %v2287_v60, %s1842_s20  ;;  %v436_v60 = vmul.f32 %v2259_v39, %v1982_v21  ;;  %v2394_v10 = vmul.f32 %v2049_v49, %v320_v20  ;;  %v2422_v39 = vsel %vm704_vm12, 0.0, %v762_v4  ;;  %v2442_v4 = vrot.slane %v2002_v26, 2 }
 0x211   :  { %3559 = vst [vmem:[#allocation46_spill] sm:$0xff] %v2291_v23  ;;  %3568 = vst [vmem:[#allocation55_spill] sm:$0xff] %v2349_v59  ;;  %v715_v59 = vrot.slane %v1969_v13, 7 }
 0x212   :  { %3576 = vst [vmem:[#allocation63_spill] sm:$0xff] %v2394_v10  ;;  %3580 = vst [vmem:[#allocation67_spill] sm:$0xff] %v2422_v39  ;;  %v2451_v10 = vmul.f32 %v2296_v6, %v2223_v9 }
 0x213   :  { %v1127_v5 = vpop.permute.xlu0 %1126  ;;  %v2298_v34 = vpop.permute.xlu1 %417 }
 0x214   :  { %v1129_v62 = vsel %vm1070_vm7, 0.0, %v1127_v5  ;;  %3582 = vst [vmem:[#allocation69_spill] sm:$0xff] %v2451_v10 }
 0x215   :  { %v1278_v56 = vadd.f32 %v2047_v48, %v1129_v62  ;;  %v322_v48 = vmul.f32 %v320_v20, %v1987_v3  ;;  %v2319_v62 = vmul.f32 0.012, %v1953_v61 }
 0x217   :  { %v2303_v41 = vpop.permute.xlu0 %342  ;;  %v2305_v17 = vpop.permute.xlu1 %431  ;;  %1607 = vrot.lane.b32.xlu0 %v1278_v56, %s1854_s23  ;;  %3563 = vst [vmem:[#allocation50_spill] sm:$0xff] %v2319_v62  ;;  %v2323_v56 = vmul.f32 %v1978_v18, %v1957_v2  ;;  %v327_v61 = vadd.f32 %v2327_v0, %v322_v48  ;;  %v708_v48 = vrot.slane %v1982_v21, 7 }
 0x218   :  { %3560 = vst [vmem:[#allocation47_spill] sm:$0xff] %v2305_v17 }
 0x219   :  { %3564 = vst [vmem:[#allocation51_spill] sm:$0xff] %v2323_v56  ;;  %v699_v56 = vrot.slane %v1987_v3, 7  ;;  %v332_v17 = vadd.f32 %v331_v11, %v327_v61  ;;  %v720_v61 = vsel %vm704_vm12, 0.0, %v715_v59  ;;  %v2416_v11 = vrot.slane %v1969_v13, 2 }
 0x21a   :  { %v2419_v31 = vsel %vm704_vm12, 0.0, %v708_v48  ;;  %v2439_v48 = vmul.f32 0.012, %v1961_v7  ;;  %v2459_v7 = vmul.f32 %v2296_v6, %v2219_v58 }
 0x21b   :  { %v403_v32 = vpop.permute.xlu0 %402  ;;  %v2313_v5 = vpop.permute.xlu1 %505  ;;  %1402 = vrot.lane.b32.xlu0 %v2310_v46, %s1855_s24  ;;  %3579 = vst [vmem:[#allocation66_spill] sm:$0xff] %v2419_v31  ;;  %v686_v31 = vmul.f32 %v2296_v6, %v1978_v18  ;;  %v345_v18 = vmul.f32 %v2303_v41, %v1982_v21 }
 0x21c   :  { %3562 = vst [vmem:[#allocation49_spill] sm:$0xff] %v2313_v5  ;;  %v2398_v5 = vmul.f32 %v2049_v49, %v2044_v47  ;;  %3584 = vst [vmem:[#allocation71_spill] sm:$0xff] %v2459_v7 }
 0x21e   :  { %3577 = vst [vmem:[#allocation64_spill] sm:$0xff] %v2398_v5  ;;  %v2436_v5 = vmul.f32 %v2219_v58, %v1957_v2 }
 0x21f   :  { %v441_v30 = vpop.permute.xlu0 %440  ;;  %v2346_v1 = vpop.permute.xlu1 %604 }
 0x220   :  { %3567 = vst [vmem:[#allocation54_spill] sm:$0xff] %v2346_v1  ;;  %v2367_v1 = vrot.slane %v2049_v49, %v2200_v24  ;;  %v443_v10 = vadd.f32 %v441_v30, %v436_v60  ;;  %v383_v30 = vmul.f32 %v2251_v36, %v1982_v21 }
 0x222   :  { %3572 = vst [vmem:[#allocation59_spill] sm:$0xff] %v2367_v1  ;;  %v2412_v20 = vmul.f32 %v2367_v1, %v2319_v62  ;;  %v352_v1 = vmul.f32 %v2219_v58, %v1969_v13  ;;  %v2476_v58 = vmul.f32 %v2310_v46, %v2002_v26 }
 0x223   :  { %v2385_v25 = vpop.permute.xlu0 %480  ;;  %v2387_v52 = vpop.permute.xlu1 %723 }
 0x224   :  { %3574 = vst [vmem:[#allocation61_spill] sm:$0xff] %v2385_v25  ;;  %3575 = vst [vmem:[#allocation62_spill] sm:$0xff] %v2387_v52  ;;  %v2404_v25 = vmul.f32 %v2007_v28, %v2040_v44  ;;  %v2408_v52 = vrot.slane %v2296_v6, %v2200_v24  ;;  %v2425_v28 = vsel %vm704_vm12, 1.0, %v699_v56  ;;  %v2428_v44 = vrot.slane %v1987_v3, 2 }
 0x225   :  { %v2446_v56 = vmul.f32 %v2223_v9, %v1969_v13 }
 0x226   :  { %3578 = vst [vmem:[#allocation65_spill] sm:$0xff] %v2408_v52  ;;  %v1344_v13 = vmul.f32 0.005, %v2408_v52 }
 0x227   :  { %v534_v62 = vpop.permute.xlu0 %533  ;;  %v2432_v59 = vpop.permute.xlu1 %968 }
 0x228   :  { %3581 = vst [vmem:[#allocation68_spill] sm:$0xff] %v2432_v59  ;;  %v536_v39 = vadd.f32 %v534_v62, %v2020_v33  ;;  %v2455_v59 = vmul.f32 %v2296_v6, %v2028_v14  ;;  %v2466_v33 = vsel %vm704_vm12, 0.0, %v2296_v6  ;;  %v405_v62 = vadd.f32 %v403_v32, %v396_v54 }
 0x229   :  { %v2472_v14 = vadd.f32 %v2279_v8, %v332_v17  ;;  %v2486_v54 = vmul.f32 %v2215_v57, %v2310_v46  ;;  %v2490_v17 = vmul.f32 %v2310_v46, %v1957_v2  ;;  %v2495_v32 = vsel %vm704_vm12, 0.0, %v2249_v35 }
 0x22a   :  { %3583 = vst [vmem:[#allocation70_spill] sm:$0xff] %v2455_v59  ;;  %v2469_v9 = vadd.f32 %v2235_v19, %v536_v39  ;;  %v1297_v19 = vmul.f32 0.005, %v2238_v27  ;;  %3589 = vst [vmem:[#allocation76_spill] sm:$0xff] %v2495_v32  ;;  %v2502_v6 = vsel %vm704_vm12, 0.0, %v2254_v37  ;;  %v718_v27 = vrot.slane %v2283_v43, 6 }
 0x22b   :  { %3586 = vst [vmem:[#allocation73_spill] sm:$0xff] %v2472_v14  ;;  %v2480_v52 = vpop.permute.xlu0 %736  ;;  %v2482_v7 = vpop.permute.xlu1 %1176  ;;  %3590 = vst [vmem:[#allocation77_spill] sm:$0xff] %v2502_v6  ;;  %v377_v35 = vmul.f32 %v2291_v23, %v1987_v3  ;;  %v414_v57 = vadd.f32 %v2256_v38, %v405_v62  ;;  %v2519_v37 = vmul.f32 %v2359_v50, %v2472_v14  ;;  %v3599_v59 = vld [vmem:[#allocation47_spill] sm:$0xff] }
 0x22c   :  { %3585 = vst [vmem:[#allocation72_spill] sm:$0xff] %v2469_v9  ;;  %3587 = vst [vmem:[#allocation74_spill] sm:$0xff] %v2480_v52  ;;  %v799_v60 = vrot.slane %v2469_v9, 7  ;;  %v684_v39 = vmul.f32 %v2469_v9, %v2213_v55  ;;  %v2508_v46 = vrot.slane %v2469_v9, %v2200_v24  ;;  %v346_v55 = vadd.f32 %v345_v18, %v2337_v12 }
 0x22d   :  { %3588 = vst [vmem:[#allocation75_spill] sm:$0xff] %v2482_v7  ;;  %3593 = vst [vmem:[#allocation80_spill] sm:$0xff] %v2519_v37  ;;  %v452_v2 = vadd.f32 %v2221_v63, %v443_v10  ;;  %v2527_v6 = vmul.f32 %v2225_v40, %v2283_v43  ;;  %v2533_v62 = vrot.slane %v2472_v14, %v1974_v16  ;;  %v702_v10 = vrot.slane %v2472_v14, 6 }
 0x22e   :  { %3591 = vst [vmem:[#allocation78_spill] sm:$0xff] %v2508_v46  ;;  %v2515_v7 = vsel %vm706_vm13, 0.0, %v799_v60  ;;  %v2538_v63 = vmul.f32 %v2273_v51, %v2472_v14  ;;  %v2542_v12 = vmul.f32 %v2229_v15, %v2283_v43  ;;  %v2547_v18 = vmul.f32 %v2049_v49, %v2291_v23  ;;  %v3598_v15 = vld [vmem:[#allocation49_spill] sm:$0xff] }
 0x22f   :  { %3592 = vst [vmem:[#allocation79_spill] sm:$0xff] %v2515_v7  ;;  %v425_v24 = vpop.permute.xlu0 %424  ;;  %1398 = vrot.lane.b32.xlu1 %v2515_v7, %s1856_s25  ;;  %3594 = vst [vmem:[#allocation81_spill] sm:$0xff] %v2527_v6  ;;  %v2529_v38 = vpop.permute.xlu1 %572  ;;  %v685_v6 = vadd.f32 %v684_v39, %v683_v53  ;;  %v1341_v37 = vmul.f32 %v2508_v46, %v2439_v48  ;;  %v2555_v51 = vadd.f32 %v2298_v34, %v414_v57 }
 0x230   :  { %3595 = vst [vmem:[#allocation82_spill] sm:$0xff] %v2533_v62  ;;  %v427_v60 = vadd.f32 %v425_v24, %v2327_v0  ;;  %3596 = vst [vmem:[#allocation83_spill] sm:$0xff] %v2542_v12  ;;  %v2552_v0 = vsel %vm706_vm13, %v720_v61, %v718_v27  ;;  %v384_v24 = vadd.f32 %v383_v30, %v377_v35  ;;  %v3600_v30 = vld [vmem:[#allocation45_spill] sm:$0xff]  ;;  %v3603_v35 = vld [vmem:[#allocation12_spill] sm:$0xff] }
 0x231   :  { %3597 = vst [vmem:[#allocation84_spill] sm:$0xff] %v2552_v0  ;;  %v508_v12 = vadd.f32 %v3598_v15, %v2342_v45  ;;  %v353_v52 = vadd.f32 %v352_v1, %v346_v55  ;;  %v2561_v23 = vadd.f32 %v452_v2, %v2298_v34  ;;  %v687_v49 = vadd.f32 %v686_v31, %v685_v6  ;;  %v3601_v1 = vld [vmem:[#allocation28_spill] sm:$0xff]  ;;  %v3605_v55 = vld [vmem:[#allocation53_spill] sm:$0xff] }
 0x232   :  { %v434_v32 = vadd.f32 %v3599_v59, %v427_v60  ;;  %v1343_v46 = vadd.f32 %v1341_v37, %v2412_v20  ;;  %v1036_v57 = vmul.f32 %v2515_v7, %v1982_v21  ;;  %v1043_v15 = vmul.f32 %v3600_v30, %v2515_v7  ;;  %v3602_v59 = vld [vmem:[#allocation11_spill] sm:$0xff] }
 0x233   :  { %v496_v53 = vpop.permute.xlu0 %495  ;;  %v1147_v39 = vpop.permute.xlu1 %1146  ;;  %v1049_v2 = vmul.f32 %v3601_v1, %v2515_v7  ;;  %v3604_v20 = vld [vmem:[#allocation51_spill] sm:$0xff]  ;;  %v2583_v60 = vmul.f32 %v2533_v62, %v3605_v55 }
 0x234   :  { %v2565_v61 = vadd.f32 %v434_v32, %v2298_v34  ;;  %v1149_v45 = vsel %vm1070_vm7, 1.0, %v1147_v39  ;;  %v1346_v6 = vadd.f32 %v1344_v13, %v1343_v46  ;;  %v510_v37 = vadd.f32 %v3604_v20, %v508_v12  ;;  %v3606_v39 = vld [vmem:[#allocation10_spill] sm:$0xff]  ;;  %v3608_v13 = vld [vmem:[#allocation17_spill] sm:$0xff] }
 0x235   :  { %v1281_v27 = vmul.f32 %v1149_v45, %v3602_v59  ;;  %v1293_v31 = vmul.f32 %v1149_v45, %v3603_v35  ;;  %v623_v34 = vmul.f32 %v2359_v50, %v2555_v51  ;;  %v1287_v30 = vmul.f32 %v1149_v45, %v3606_v39 }
 0x236   :  { %v624_v32 = vmul.f32 %v2529_v38, %v2565_v61  ;;  %v2594_v12 = vsel %vm706_vm13, %v2425_v28, %v702_v10  ;;  %v391_v20 = vadd.f32 %v2446_v56, %v384_v24  ;;  %v2598_v50 = vadd.f32 %v353_v52, %v2279_v8  ;;  %v3611_v10 = vld [vmem:[#allocation35_spill] sm:$0xff]  ;;  %v3613_v52 = vld [vmem:[#allocation61_spill] sm:$0xff] }
 0x237   :  { %v1295_v7 = vadd.f32 %v1293_v31, %v2391_v42  ;;  %v2587_v59 = vpop.permute.xlu0 %695  ;;  %v2589_v35 = vpop.permute.xlu1 %673  ;;  %v1283_v46 = vadd.f32 %v1281_v27, %v3608_v13  ;;  %3609 = vst [vmem:[#allocation47_spill] sm:$0xff] %v2594_v12  ;;  %v626_v45 = vmul.f32 %v2225_v40, %v2561_v23  ;;  %v3610_v31 = vld [vmem:[#allocation60_spill] sm:$0xff]  ;;  %v1044_v13 = vadd.f32 %v1043_v15, %v2379_v29  ;;  %v3612_v8 = vld [vmem:[#allocation55_spill] sm:$0xff] }
 0x238   :  { %3607 = vst [vmem:[#allocation49_spill] sm:$0xff] %v2587_v59  ;;  %v625_v39 = vadd.f32 %v624_v32, %v623_v34  ;;  %v1037_v27 = vadd.f32 %v1036_v57, %v3610_v31  ;;  %v1050_v28 = vadd.f32 %v1049_v2, %v2383_v22  ;;  %v2609_v56 = vadd.f32 %v510_v37, %v3611_v10  ;;  %v3617_v22 = vld [vmem:[#allocation5_spill] sm:$0xff]  ;;  %v3618_v2 = vld [vmem:[#allocation31_spill] sm:$0xff] }
 0x239   :  { %v2602_v42 = vadd.f32 %v1297_v19, %v1295_v7  ;;  %1615 = vrot.lane.b32.xlu0 %v1283_v46, %s1857_s26  ;;  %v483_v24 = vadd.f32 %v3613_v52, %v3612_v8  ;;  %v688_v7 = vadd.f32 %v687_v49, %v2589_v35  ;;  %v3615_v19 = vld [vmem:[#allocation58_spill] sm:$0xff]  ;;  %v1289_v57 = vadd.f32 %v1287_v30, %v2404_v25 }
 0x23a   :  { %v2613_v59 = vadd.f32 %v626_v45, %v625_v39  ;;  %v498_v34 = vadd.f32 %v496_v53, %v3615_v19  ;;  %v2620_v29 = vmul.f32 %v2416_v11, %v2472_v14  ;;  %v2624_v15 = vmul.f32 %v2533_v62, %v3617_v22 }
 0x23b   :  { %v1254_v32 = vpop.permute.xlu0 %1253  ;;  %v808_v46 = vpop.permute.xlu1 %807  ;;  %v2627_v37 = vadd.f32 %v3618_v2, %v391_v20  ;;  %v711_v53 = vrot.slane %v2598_v50, 6  ;;  %v1039_v25 = vadd.f32 %v2476_v58, %v1037_v27  ;;  %v1046_v30 = vadd.f32 %v2486_v54, %v1044_v13  ;;  %v3632_v2 = vld [vmem:[#allocation54_spill] sm:$0xff] }
 0x23c   :  { %3614 = vst [vmem:[#allocation51_spill] sm:$0xff] %v2613_v59  ;;  %3616 = vst [vmem:[#allocation17_spill] sm:$0xff] %v2620_v29  ;;  %v2629_v39 = vadd.f32 %v1346_v6, %v1254_v32  ;;  %v2632_v49 = vsel %vm706_vm13, 1.0, %v808_v46  ;;  %v1052_v45 = vadd.f32 %v2490_v17, %v1050_v28  ;;  %v3622_v6 = vld [vmem:[#allocation56_spill] sm:$0xff]  ;;  %v930_v8 = vrot.slane %v688_v7, 7 }
 0x23d   :  { %3619 = vst [vmem:[#allocation60_spill] sm:$0xff] %v2627_v37  ;;  %3621 = vst [vmem:[#allocation55_spill] sm:$0xff] %v2632_v49  ;;  %v1040_v31 = vmul.f32 0.0, %v2632_v49  ;;  %1623 = vrot.lane.b32.xlu0 %v1289_v57, %s1858_s27  ;;  %1406 = vrot.lane.b32.xlu1 %v2632_v49, %s1859_s28  ;;  %v485_v20 = vadd.f32 %v3622_v6, %v483_v24  ;;  %v2645_v52 = vrot.slane %v2561_v23, %v1974_v16 }
 0x23e   :  { %3620 = vst [vmem:[#allocation35_spill] sm:$0xff] %v2629_v39  ;;  %v781_v58 = vrot.slane %v2609_v56, 6  ;;  %v500_v54 = vadd.f32 %v2436_v5, %v498_v34  ;;  %v732_v28 = vrot.slane %v2555_v51, 6  ;;  %v2658_v24 = vmul.f32 %v2428_v44, %v2472_v14  ;;  %v3630_v5 = vld [vmem:[#allocation62_spill] sm:$0xff]  ;;  %v3660_v14 = vld [vmem:[#allocation57_spill] sm:$0xff] }
 0x23f   :  { %3623 = vst [vmem:[#allocation61_spill] sm:$0xff] %v2645_v52  ;;  %v2649_v17 = vadd.f32 %v1040_v31, %v1039_v25  ;;  %v2651_v27 = vadd.f32 %v1046_v30, %v1040_v31  ;;  %v2653_v13 = vadd.f32 %v1052_v45, %v1040_v31  ;;  %v2662_v7 = vmul.f32 %v2442_v4, %v2283_v43 }
 0x240   :  { %3627 = vst [vmem:[#allocation56_spill] sm:$0xff] %v2658_v24  ;;  %v2666_v19 = vmul.f32 %v2594_v12, %v1987_v3  ;;  %v729_v34 = vsel %vm704_vm12, 0.0, %v3630_v5  ;;  %v727_v32 = vrot.slane %v2627_v37, 6  ;;  %v2677_v46 = vrot.slane %v2598_v50, %v1974_v16  ;;  %v3634_v5 = vld [vmem:[#allocation52_spill] sm:$0xff] }
 0x241   :  { %3624 = vst [vmem:[#allocation58_spill] sm:$0xff] %v2649_v17  ;;  %3625 = vst [vmem:[#allocation5_spill] sm:$0xff] %v2651_v27  ;;  %1354 = vrot.lane.b32.xlu0 %v2552_v0, %s1842_s20  ;;  %1633 = vrot.lane.b32.xlu1 %v2645_v52, %s1853_s22  ;;  %v2681_v57 = vmul.f32 %v2552_v0, %v2002_v26  ;;  %v607_v25 = vmul.f32 %v3632_v2, %v2598_v50  ;;  %v832_v27 = vrot.slane %v2627_v37, 7  ;;  %v3644_v0 = vld [vmem:[#allocation64_spill] sm:$0xff] }
 0x242   :  { %3626 = vst [vmem:[#allocation31_spill] sm:$0xff] %v2653_v13  ;;  %3628 = vst [vmem:[#allocation85_spill] sm:$0xff] %v2662_v7  ;;  %v2686_v30 = vadd.f32 %v3611_v10, %v485_v20  ;;  %v667_v45 = vmul.f32 %v2469_v9, %v2044_v47  ;;  %v2692_v31 = vsel %vm706_vm13, %v2466_v33, %v930_v8  ;;  %v3635_v13 = vld [vmem:[#allocation66_spill] sm:$0xff] }
 0x243   :  { %3629 = vst [vmem:[#allocation86_spill] sm:$0xff] %v2666_v19  ;;  %3631 = vst [vmem:[#allocation62_spill] sm:$0xff] %v2681_v57  ;;  %v2695_v6 = vadd.f32 %v500_v54, %v3611_v10  ;;  %v2699_v39 = vsel %vm706_vm13, %v3634_v5, %v781_v58  ;;  %v2704_v20 = vsel %vm706_vm13, %v3635_v13, %v711_v53  ;;  %v749_v10 = vrot.slane %v2561_v23, 6  ;;  %v3639_v58 = vld [vmem:[#allocation37_spill] sm:$0xff]  ;;  %v3649_v57 = vld [vmem:[#allocation67_spill] sm:$0xff] }
 0x244   :  { %3633 = vst [vmem:[#allocation87_spill] sm:$0xff] %v2692_v31  ;;  %3636 = vst [vmem:[#allocation52_spill] sm:$0xff] %v2704_v20  ;;  %v678_v47 = vmul.f32 %v2469_v9, %v2303_v41  ;;  %v2709_v17 = vsel %vm706_vm13, %v729_v34, %v727_v32  ;;  %v2713_v33 = vsel %vm706_vm13, %v3635_v13, %v732_v28  ;;  %v740_v41 = vrot.slane %v2565_v61, 6  ;;  %v3641_v13 = vld [vmem:[#allocation63_spill] sm:$0xff]  ;;  %v3645_v31 = vld [vmem:[#allocation8_spill] sm:$0xff] }
 0x245   :  { %3637 = vst [vmem:[#allocation66_spill] sm:$0xff] %v2713_v33  ;;  %v2718_v8 = vrot.slane %v2555_v51, %v1974_v16  ;;  %1386 = vrot.lane.b32.xlu0 %v2699_v39, %s1860_s29  ;;  %1358 = vrot.lane.b32.xlu1 %v2709_v17, %s1854_s23  ;;  %v1265_v53 = vmul.f32 %v2677_v46, %v3617_v22  ;;  %v765_v32 = vrot.slane %v2686_v30, 6 }
 0x246   :  { %v2729_v54 = vmul.f32 %v3639_v58, %v2598_v50  ;;  %v668_v28 = vadd.f32 %v667_v45, %v3641_v13  ;;  %v2734_v34 = vmul.f32 %v2704_v20, %v1982_v21  ;;  %v608_v5 = vadd.f32 %v607_v25, %v2538_v63  ;;  %v3643_v13 = vld [vmem:[#allocation74_spill] sm:$0xff]  ;;  %v3646_v25 = vld [vmem:[#allocation76_spill] sm:$0xff] }
 0x247   :  { %3638 = vst [vmem:[#allocation88_spill] sm:$0xff] %v2718_v8  ;;  %v690_v59 = vmul.f32 %v2469_v9, %v2251_v36  ;;  %v985_v52 = vmul.f32 %v2713_v33, %v1987_v3  ;;  %v2744_v2 = vmul.f32 %v2713_v33, %v1982_v21  ;;  %v774_v45 = vrot.slane %v2695_v6, 6 }
 0x248   :  { %3640 = vst [vmem:[#allocation37_spill] sm:$0xff] %v2729_v54  ;;  %3642 = vst [vmem:[#allocation63_spill] sm:$0xff] %v2734_v34  ;;  %v742_v49 = vsel %vm704_vm12, 1.0, %v3643_v13  ;;  %v679_v12 = vadd.f32 %v678_v47, %v3644_v0  ;;  %v998_v63 = vmul.f32 %v2713_v33, %v3645_v31  ;;  %v2754_v36 = vsel %vm706_vm13, %v3646_v25, %v749_v10  ;;  %v3648_v47 = vld [vmem:[#allocation70_spill] sm:$0xff]  ;;  %v3650_v25 = vld [vmem:[#allocation83_spill] sm:$0xff] }
 0x249   :  { %833 = vrot.lane.b32.xlu0 %v832_v27, %s1842_s20  ;;  %1350 = vrot.lane.b32.xlu1 %v2704_v20, %s1840_s18  ;;  %v861_v9 = vrot.slane %v2561_v23, 7  ;;  %v2761_v7 = vsel %vm706_vm13, %v742_v49, %v740_v41  ;;  %v1267_v13 = vadd.f32 %v1265_v53, %v2583_v60  ;;  %v1280_v0 = vmul.f32 %v2718_v8, %v3617_v22  ;;  %v3653_v41 = vld [vmem:[#allocation77_spill] sm:$0xff] }
 0x24a   :  { %3647 = vst [vmem:[#allocation74_spill] sm:$0xff] %v2761_v7  ;;  %v670_v37 = vadd.f32 %v3648_v47, %v668_v28  ;;  %v2769_v10 = vsel %vm706_vm13, %v3649_v57, %v765_v32  ;;  %v2773_v27 = vmul.f32 %v2718_v8, %v3605_v55  ;;  %v2776_v20 = vadd.f32 %v3650_v25, %v608_v5  ;;  %v3655_v32 = vld [vmem:[#allocation71_spill] sm:$0xff] }
 0x24b   :  { %v2779_v49 = vadd.f32 %v690_v59, %v2547_v18  ;;  %v2783_v60 = vrot.slane %v2565_v61, %v1974_v16  ;;  %v2787_v53 = vsel %vm706_vm13, %v3653_v41, %v774_v45  ;;  %v2791_v57 = vmul.f32 %v2677_v46, %v2439_v48  ;;  %v3657_v45 = vld [vmem:[#allocation45_spill] sm:$0xff] }
 0x24c   :  { %3651 = vst [vmem:[#allocation64_spill] sm:$0xff] %v2776_v20  ;;  %v2795_v28 = vmul.f32 %v2529_v38, %v2598_v50  ;;  %v2798_v5 = vadd.f32 %v3655_v32, %v679_v12  ;;  %v2801_v18 = vadd.f32 %v2589_v35, %v670_v37  ;;  %v986_v59 = vmul.f32 %v2761_v7, %v1982_v21  ;;  %v3658_v37 = vld [vmem:[#allocation6_spill] sm:$0xff] }
 0x24d   :  { %3652 = vst [vmem:[#allocation76_spill] sm:$0xff] %v2779_v49  ;;  %3654 = vst [vmem:[#allocation70_spill] sm:$0xff] %v2791_v57  ;;  %862 = vrot.lane.b32.xlu0 %v861_v9, %s1840_s18  ;;  %v2808_v47 = vmul.f32 %v3657_v45, %v2761_v7  ;;  %v999_v25 = vmul.f32 %v3601_v1, %v2761_v7  ;;  %1366 = vrot.lane.b32.xlu1 %v2761_v7, %s1858_s27  ;;  %v2817_v41 = vrot.slane %v3658_v37, 2  ;;  %v3659_v57 = vld [vmem:[#allocation7_spill] sm:$0xff] }
 0x24e   :  { %3656 = vst [vmem:[#allocation67_spill] sm:$0xff] %v2798_v5  ;;  %v1010_v12 = vmul.f32 %v2769_v10, %v1987_v3  ;;  %v1011_v32 = vmul.f32 %v2787_v53, %v1982_v21  ;;  %v1024_v9 = vmul.f32 %v3601_v1, %v2787_v53  ;;  %v629_v55 = vmul.f32 %v2416_v11, %v2555_v51 }
 0x24f   :  { %v630_v8 = vmul.f32 %v3639_v58, %v2565_v61  ;;  %v1023_v7 = vmul.f32 %v2769_v10, %v3645_v31  ;;  %v1282_v3 = vmul.f32 %v2783_v60, %v3659_v57  ;;  %v2833_v20 = vrot.slane %v2686_v30, %v1974_v16 }
 0x250   :  { %v632_v49 = vmul.f32 %v2817_v41, %v2561_v23  ;;  %v648_v43 = vmul.f32 %v3660_v14, %v2686_v30  ;;  %v649_v62 = vmul.f32 %v2529_v38, %v2695_v6  ;;  %v987_v24 = vadd.f32 %v986_v59, %v985_v52 }
 0x251   :  { %v631_v1 = vadd.f32 %v630_v8, %v629_v55  ;;  %1362 = vrot.lane.b32.xlu0 %v2713_v33, %s1857_s26  ;;  %1382 = vrot.lane.b32.xlu1 %v2787_v53, %s1861_s30  ;;  %v2847_v31 = vrot.slane %v2695_v6, %v1974_v16  ;;  %v651_v55 = vmul.f32 %v2225_v40, %v2609_v56 }
 0x252   :  { %v988_v8 = vmul.f32 %v2754_v36, %v2002_v26  ;;  %v650_v38 = vadd.f32 %v649_v62, %v648_v43  ;;  %v1000_v52 = vadd.f32 %v999_v25, %v998_v63  ;;  %v1001_v59 = vmul.f32 %v2754_v36, %v3658_v37  ;;  %v3661_v62 = vld [vmem:[#allocation16_spill] sm:$0xff] }
 0x253   :  { %v2853_v54 = vadd.f32 %v632_v49, %v631_v1  ;;  %v2859_v33 = vrot.slane %v2609_v56, %v1974_v16  ;;  %v1012_v34 = vadd.f32 %v1011_v32, %v1010_v12  ;;  %v1013_v40 = vmul.f32 %v2699_v39, %v2002_v26  ;;  %v3662_v49 = vld [vmem:[#allocation50_spill] sm:$0xff] }
 0x254   :  { %v2861_v29 = vadd.f32 %v988_v8, %v987_v24  ;;  %v2865_v19 = vadd.f32 %v651_v55, %v650_v38  ;;  %v2867_v5 = vadd.f32 %v1001_v59, %v1000_v52  ;;  %v1025_v1 = vadd.f32 %v1024_v9, %v1023_v7 }
 0x255   :  { %v1026_v43 = vmul.f32 %v2699_v39, %v3658_v37  ;;  %1370 = vrot.lane.b32.xlu0 %v2754_v36, %s1853_s22  ;;  %1593 = vrot.lane.b32.xlu1 %v1267_v13, %s1840_s18  ;;  %v922_v24 = vsel %vm704_vm12, 0.0, %v3661_v62  ;;  %v2876_v63 = vadd.f32 %v1013_v40, %v1012_v34  ;;  %v1316_v25 = vmul.f32 %v2833_v20, %v3662_v49  ;;  %v3664_v40 = vld [vmem:[#allocation75_spill] sm:$0xff] }
 0x256   :  { %v1318_v12 = vmul.f32 %v2847_v31, %v2439_v48  ;;  %v1017_v7 = vmul.f32 %v2769_v10, %v1982_v21  ;;  %v1284_v32 = vadd.f32 %v1282_v3, %v1280_v0  ;;  %v1288_v9 = vmul.f32 %v2783_v60, %v3617_v22 }
 0x257   :  { %v2886_v55 = vadd.f32 %v1026_v43, %v1025_v1  ;;  %v1322_v13 = vmul.f32 0.005, %v2859_v33  ;;  %v616_v34 = vmul.f32 %v2428_v44, %v2555_v51  ;;  %v617_v38 = vmul.f32 %v3660_v14, %v2565_v61 }
 0x258   :  { %v1320_v8 = vadd.f32 %v1318_v12, %v1316_v25  ;;  %v1018_v52 = vmul.f32 %v3657_v45, %v2787_v53  ;;  %v619_v3 = vmul.f32 %v2442_v4, %v2561_v23  ;;  %v1259_v0 = vmul.f32 %v2677_v46, %v3659_v57 }
 0x259   :  { %3663 = vst [vmem:[#allocation83_spill] sm:$0xff] %v2886_v55  ;;  %v641_v59 = vmul.f32 %v2428_v44, %v2686_v30  ;;  %v1179_v1 = vsel %vm1070_vm7, 0.0, %v3664_v40  ;;  %1378 = vrot.lane.b32.xlu0 %v2769_v10, %s1862_s2  ;;  %1617 = vrot.lane.b32.xlu1 %v1284_v32, %s1857_s26  ;;  %v618_v62 = vadd.f32 %v617_v38, %v616_v34  ;;  %v920_v34 = vrot.slane %v2801_v18, 7 }
 0x25a   :  { %v2906_v43 = vadd.f32 %v1322_v13, %v1320_v8  ;;  %v642_v25 = vmul.f32 %v3660_v14, %v2695_v6  ;;  %v1301_v46 = vadd.f32 %v2602_v42, %v1179_v1  ;;  %v2912_v12 = vadd.f32 %v1259_v0, %v2624_v15 }
 0x25b   :  { %v654_v44 = vmul.f32 %v2416_v11, %v2686_v30  ;;  %v655_v40 = vmul.f32 %v3639_v58, %v2695_v6  ;;  %v1290_v55 = vadd.f32 %v1288_v9, %v2773_v27  ;;  %v2919_v32 = vadd.f32 %v619_v3, %v618_v62  ;;  %v3668_v9 = vld [vmem:[#allocation80_spill] sm:$0xff] }
 0x25c   :  { %3665 = vst [vmem:[#allocation77_spill] sm:$0xff] %v2906_v43  ;;  %3666 = vst [vmem:[#allocation71_spill] sm:$0xff] %v2912_v12  ;;  %v643_v13 = vadd.f32 %v642_v25, %v641_v59  ;;  %v644_v8 = vmul.f32 %v2442_v4, %v2609_v56  ;;  %v657_v15 = vmul.f32 %v2817_v41, %v2609_v56  ;;  %v2929_v38 = vmul.f32 0.0, %v2709_v17  ;;  %v3667_v4 = vld [vmem:[#allocation30_spill] sm:$0xff]  ;;  %v3669_v59 = vld [vmem:[#allocation67_spill] sm:$0xff] }
 0x25d   :  { %v656_v42 = vadd.f32 %v655_v40, %v654_v44  ;;  %v994_v11 = vadd.f32 %v2808_v47, %v2744_v2  ;;  %1639 = vrot.lane.b32.xlu0 %v1301_v46, %s1863_s3  ;;  %1625 = vrot.lane.b32.xlu1 %v1290_v55, %s1858_s27  ;;  %v995_v27 = vmul.f32 %v3667_v4, %v2754_v36  ;;  %v850_v1 = vrot.slane %v2565_v61, 7  ;;  %v3671_v25 = vld [vmem:[#allocation86_spill] sm:$0xff]  ;;  %v3673_v46 = vld [vmem:[#allocation17_spill] sm:$0xff] }
 0x25e   :  { %v2933_v58 = vadd.f32 %v644_v8, %v643_v13  ;;  %v1019_v18 = vadd.f32 %v1018_v52, %v1017_v7  ;;  %v576_v3 = vadd.f32 %v2795_v28, %v3668_v9  ;;  %v1020_v2 = vmul.f32 %v3667_v4, %v2699_v39  ;;  %v3672_v7 = vld [vmem:[#allocation63_spill] sm:$0xff]  ;;  %v3674_v44 = vld [vmem:[#allocation37_spill] sm:$0xff]  ;;  %v3676_v8 = vld [vmem:[#allocation56_spill] sm:$0xff] }
 0x25f   :  { %v2939_v0 = vadd.f32 %v657_v15, %v656_v42  ;;  %v562_v47 = vmul.f32 %v3660_v14, %v2598_v50  ;;  %v682_v55 = vadd.f32 %v3669_v59, %v2589_v35  ;;  %v2948_v62 = vadd.f32 %v995_v27, %v994_v11  ;;  %v3677_v14 = vld [vmem:[#allocation82_spill] sm:$0xff]  ;;  %v3678_v15 = vld [vmem:[#allocation43_spill] sm:$0xff]  ;;  %v3679_v27 = vld [vmem:[#allocation73_spill] sm:$0xff] }
 0x260   :  { %v941_v52 = vadd.f32 %v3672_v7, %v3671_v25  ;;  %v923_v28 = vsel %vm706_vm13, %v922_v24, %v920_v34  ;;  %v592_v40 = vadd.f32 %v3674_v44, %v3673_v46  ;;  %v2955_v13 = vadd.f32 %v1020_v2, %v1019_v18  ;;  %v3680_v24 = vld [vmem:[#allocation62_spill] sm:$0xff]  ;;  %v3681_v59 = vld [vmem:[#allocation81_spill] sm:$0xff]  ;;  %v3682_v18 = vld [vmem:[#allocation76_spill] sm:$0xff] }
 0x261   :  { %3670 = vst [vmem:[#allocation45_spill] sm:$0xff] %v2948_v62  ;;  %v563_v42 = vadd.f32 %v562_v47, %v3676_v8  ;;  %851 = vrot.lane.b32.xlu0 %v850_v1, %s1840_s18  ;;  %1484 = vrot.lane.b32.xlu1 %v923_v28, %s1851_s0  ;;  %v1269_v35 = vmul.f32 %v3677_v14, %v3662_v49  ;;  %v811_v9 = vrot.slane %v3679_v27, 7  ;;  %v3683_v2 = vld [vmem:[#allocation69_spill] sm:$0xff]  ;;  %v3684_v47 = vld [vmem:[#allocation60_spill] sm:$0xff]  ;;  %v890_v28 = vrot.slane %v2695_v6, 7 }
 0x262   :  { %3675 = vst [vmem:[#allocation6_spill] sm:$0xff] %v2955_v13  ;;  %v595_v11 = vmul.f32 %v2817_v41, %v3678_v15  ;;  %v943_v34 = vadd.f32 %v3680_v24, %v941_v52  ;;  %v582_v25 = vadd.f32 %v3681_v59, %v576_v3  ;;  %v693_v7 = vadd.f32 %v3683_v2, %v3682_v18  ;;  %v3685_v1 = vld [vmem:[#allocation85_spill] sm:$0xff]  ;;  %v3686_v8 = vld [vmem:[#allocation64_spill] sm:$0xff]  ;;  %v3687_v13 = vld [vmem:[#allocation70_spill] sm:$0xff] }
 0x263   :  { %v568_v46 = vmul.f32 0.0, %v3684_v47  ;;  %v567_v44 = vadd.f32 %v3685_v1, %v563_v42  ;;  %v615_v14 = vadd.f32 %v3686_v8, %v3684_v47  ;;  %v1273_v41 = vadd.f32 %v3687_v13, %v1269_v35  ;;  %v3689_v52 = vld [vmem:[#allocation49_spill] sm:$0xff]  ;;  %v3690_v18 = vld [vmem:[#allocation44_spill] sm:$0xff]  ;;  %v3691_v42 = vld [vmem:[#allocation87_spill] sm:$0xff] }
 0x264   :  { %v2976_v27 = vadd.f32 %v2929_v38, %v943_v34  ;;  %v698_v24 = vadd.f32 %v3689_v52, %v693_v7  ;;  %v925_v3 = vrot.slane %v682_v55, 7  ;;  %v596_v59 = vadd.f32 %v595_v11, %v592_v40  ;;  %v3692_v1 = vld [vmem:[#allocation52_spill] sm:$0xff] }
 0x265   :  { %v569_v62 = vadd.f32 %v568_v46, %v567_v44  ;;  %v1275_v2 = vmul.f32 0.005, %v3690_v18  ;;  %891 = vrot.lane.b32.xlu0 %v890_v28, %s1840_s18  ;;  %1492 = vrot.lane.b32.xlu1 %v3691_v42, %s1855_s24  ;;  %v950_v8 = vmul.f32 %v3657_v45, %v3692_v1  ;;  %v3693_v13 = vld [vmem:[#allocation28_spill] sm:$0xff]  ;;  %v837_v44 = vrot.slane %v615_v14, 6 }
 0x266   :  { %3688 = vst [vmem:[#allocation7_spill] sm:$0xff] %v2976_v27  ;;  %v962_v35 = vmul.f32 %v3693_v13, %v3692_v1  ;;  %v3694_v27 = vld [vmem:[#allocation9_spill] sm:$0xff]  ;;  %v3695_v40 = vld [vmem:[#allocation72_spill] sm:$0xff]  ;;  %v583_v18 = vadd.f32 %v582_v25, %v568_v46  ;;  %v935_v12 = vrot.slane %v698_v24, 7  ;;  %v597_v43 = vadd.f32 %v596_v59, %v568_v46 }
 0x267   :  { %v814_v34 = vrot.slane %v569_v62, 6  ;;  %v816_v7 = vsel %vm704_vm12, %v3694_v27, %v811_v9  ;;  %v2989_v55 = vpop.permute.xlu0 %1631  ;;  %v927_v11 = vsel %vm704_vm12, 0.0, %v3695_v40  ;;  %v1277_v28 = vadd.f32 %v1275_v2, %v1273_v41  ;;  %v3696_v9 = vld [vmem:[#allocation8_spill] sm:$0xff]  ;;  %v3697_v27 = vld [vmem:[#allocation47_spill] sm:$0xff] }
 0x268   :  { %v928_v42 = vsel %vm706_vm13, %v927_v11, %v925_v3  ;;  %v1123_v62 = vrot.slane %v3684_v47, %v1974_v16  ;;  %v958_v13 = vmul.f32 %v3697_v27, %v3696_v9  ;;  %v946_v25 = vmul.f32 %v3697_v27, %v1982_v21  ;;  %v3698_v40 = vld [vmem:[#allocation84_spill] sm:$0xff] }
 0x269   :  { %v2995_v45 = vsel %vm706_vm13, %v816_v7, %v814_v34  ;;  %1488 = vrot.lane.b32.xlu0 %v928_v42, %s1856_s25  ;;  %838 = vrot.lane.b32.xlu1 %v837_v44, %s1842_s20  ;;  %v937_v14 = vsel %vm704_vm12, 1.0, %v3689_v52  ;;  %v818_v46 = vrot.slane %v2598_v50, 7  ;;  %v825_v41 = vrot.slane %v3678_v15, 7  ;;  %v3699_v52 = vld [vmem:[#allocation18_spill] sm:$0xff]  ;;  %v3700_v15 = vld [vmem:[#allocation68_spill] sm:$0xff] }
 0x26a   :  { %v1279_v3 = vadd.f32 %v1277_v28, %v1123_v62  ;;  %v821_v59 = vrot.slane %v583_v18, 6  ;;  %v963_v2 = vadd.f32 %v962_v35, %v958_v13  ;;  %v951_v34 = vadd.f32 %v950_v8, %v946_v25  ;;  %v3701_v25 = vld [vmem:[#allocation79_spill] sm:$0xff] }
 0x26b   :  { %v470_v24 = vpop.permute.xlu0 %469  ;;  %v938_v47 = vsel %vm706_vm13, %v937_v14, %v935_v12  ;;  %v828_v7 = vrot.slane %v597_v43, 6  ;;  %v964_v11 = vmul.f32 %v3698_v40, %v3658_v37  ;;  %v955_v50 = vmul.f32 %v3667_v4, %v3698_v40 }
 0x26c   :  { %v1054_v44 = vmul.f32 %v3700_v15, %v3699_v52  ;;  %v971_v35 = vmul.f32 %v3700_v15, %v3697_v27  ;;  %v823_v12 = vsel %vm704_vm12, %v1982_v21, %v818_v46  ;;  %v830_v43 = vsel %vm704_vm12, %v3696_v9, %v825_v41  ;;  %v3704_v52 = vld [vmem:[#allocation46_spill] sm:$0xff] }
 0x26d   :  { %1496 = vrot.lane.b32.xlu0 %v938_v47, %s1859_s28  ;;  %1609 = vrot.lane.b32.xlu1 %v1279_v3, %s1854_s23  ;;  %v1029_v28 = vmul.f32 %v3700_v15, %v2769_v10  ;;  %v824_v18 = vsel %vm706_vm13, %v823_v12, %v821_v59  ;;  %v965_v4 = vadd.f32 %v964_v11, %v963_v2  ;;  %v3702_v10 = vld [vmem:[#allocation39_spill] sm:$0xff] }
 0x26e   :  { %v956_v42 = vadd.f32 %v955_v50, %v951_v34  ;;  %v831_v9 = vsel %vm706_vm13, %v830_v43, %v828_v7  ;;  %v982_v46 = vmul.f32 %v3702_v10, %v3698_v40  ;;  %v3703_v34 = vld [vmem:[#allocation48_spill] sm:$0xff]  ;;  %v1183_v12 = vrot.slane %v2002_v26, %v1974_v16 }
 0x26f   :  { %v3024_v8 = vpop.permute.xlu0 %973  ;;  %v1057_v47 = vmul.f32 %v3702_v10, %v3703_v34  ;;  %v3712_v34 = vld [vmem:[#allocation14_spill] sm:$0xff] }
 0x270   :  { %v976_v62 = vmul.f32 %v3024_v8, %v3692_v1  ;;  %v1030_v13 = vmul.f32 %v3024_v8, %v2787_v53  ;;  %v1055_v14 = vmul.f32 %v3024_v8, %v3701_v25  ;;  %v1032_v1 = vmul.f32 %v3702_v10, %v2699_v39 }
 0x271   :  { %1440 = vrot.lane.b32.xlu0 %v824_v18, %s1840_s18  ;;  %1444 = vrot.lane.b32.xlu1 %v831_v9, %s1842_s20  ;;  %v966_v53 = vadd.f32 %v965_v4, %v2929_v38  ;;  %v957_v2 = vadd.f32 %v956_v42, %v2929_v38  ;;  %v512_v39 = vmul.f32 %v3704_v52, %v2002_v26  ;;  %v3705_v38 = vld [vmem:[#allocation55_spill] sm:$0xff]  ;;  %v3706_v18 = vld [vmem:[#allocation32_spill] sm:$0xff]  ;;  %v3066_v9 = vsel %vm1070_vm7, 0.0, %v1183_v12  ;;  %v3715_v12 = vld [vmem:[#allocation42_spill] sm:$0xff] }
 0x272   :  { %v977_v41 = vadd.f32 %v976_v62, %v971_v35  ;;  %v1031_v3 = vadd.f32 %v1030_v13, %v1029_v28  ;;  %v1056_v59 = vadd.f32 %v1055_v14, %v1054_v44  ;;  %v454_v44 = vmul.f32 %v3704_v52, %v1982_v21 }
 0x273   :  { %v519_v4 = vmul.f32 %v3706_v18, %v3658_v37 }
 0x274   :  { %v983_v7 = vadd.f32 %v982_v46, %v977_v41  ;;  %v3046_v11 = vadd.f32 %v1032_v1, %v1031_v3  ;;  %v1058_v40 = vadd.f32 %v1057_v47, %v1056_v59  ;;  %v3708_v46 = vld [vmem:[#allocation41_spill] sm:$0xff] }
 0x275   :  { %1519 = vrot.lane.b32.xlu0 %v966_v53, %s1842_s20  ;;  %1515 = vrot.lane.b32.xlu1 %v957_v2, %s1840_s18  ;;  %v635_v41 = vmul.f32 %v3708_v46, %v2555_v51  ;;  %v3709_v3 = vld [vmem:[#allocation29_spill] sm:$0xff]  ;;  %v3711_v2 = vld [vmem:[#allocation26_spill] sm:$0xff]  ;;  %v660_v18 = vmul.f32 %v3708_v46, %v2686_v30 }
 0x276   :  { %v984_v50 = vadd.f32 %v983_v7, %v2709_v17  ;;  %v3056_v35 = vadd.f32 %v1058_v40, %v3705_v38  ;;  %v3707_v17 = vld [vmem:[#allocation54_spill] sm:$0xff]  ;;  %v3710_v1 = vld [vmem:[#allocation33_spill] sm:$0xff]  ;;  %v1709_v47 = vsel %vm1409_vm0, %v3712_v34, %v3711_v2  ;;  %v3713_v7 = vld [vmem:[#allocation15_spill] sm:$0xff]  ;;  %v1294_v2 = vmul.f32 %v2783_v60, %v2439_v48 }
 0x277   :  { %v636_v13 = vmul.f32 %v3707_v17, %v2565_v61  ;;  %v1309_v40 = vmul.f32 %v3066_v9, %v3713_v7  ;;  %v843_v60 = vrot.slane %v2555_v51, 7 }
 0x278   :  { %v516_v43 = vpop.permute.xlu0 %515  ;;  %v461_v28 = vpop.permute.xlu1 %460 }
 0x279   :  { %v518_v42 = vadd.f32 %v516_v43, %v512_v39  ;;  %v463_v62 = vadd.f32 %v461_v28, %v454_v44  ;;  %1523 = vrot.lane.b32.xlu1 %v984_v50, %s1854_s23  ;;  %v637_v61 = vadd.f32 %v636_v13, %v635_v41  ;;  %v1209_v50 = vrot.slane %v3658_v37, %v1974_v16  ;;  %v3714_v44 = vld [vmem:[#allocation38_spill] sm:$0xff]  ;;  %v3718_v13 = vld [vmem:[#allocation25_spill] sm:$0xff] }
 0x27a   :  { %v3089_v38 = vsel %vm1070_vm7, 0.0, %v3714_v44  ;;  %v760_v43 = vsel %vm704_vm12, 0.0, %v3715_v12  ;;  %v3716_v28 = vld [vmem:[#allocation34_spill] sm:$0xff]  ;;  %v883_v12 = vrot.slane %v2686_v30, 7 }
 0x27b   :  { %v520_v25 = vadd.f32 %v519_v4, %v518_v42  ;;  %v472_v14 = vadd.f32 %v470_v24, %v463_v62  ;;  %v661_v24 = vmul.f32 %v3707_v17, %v2695_v6  ;;  %v638_v6 = vmul.f32 %v3716_v28, %v2561_v23  ;;  %v3717_v4 = vld [vmem:[#allocation36_spill] sm:$0xff] }
 0x27c   :  { %v792_v42 = vsel %vm704_vm12, 0.0, %v3717_v4  ;;  %v663_v44 = vmul.f32 %v3716_v28, %v2609_v56 }
 0x27d   :  { %v3071_v59 = vadd.f32 %v3709_v3, %v520_v25  ;;  %v3074_v53 = vadd.f32 %v3710_v1, %v472_v14  ;;  %v1711_v25 = vsel %vm1411_vm8, %v1709_v47, %v3718_v13  ;;  %v639_v23 = vadd.f32 %v638_v6, %v637_v61  ;;  %v3719_v3 = vld [vmem:[#allocation10_spill] sm:$0xff]  ;;  %v3720_v61 = vld [vmem:[#allocation88_spill] sm:$0xff] }
 0x27e   :  { %v662_v14 = vadd.f32 %v661_v24, %v660_v18  ;;  %v1311_v1 = vmul.f32 %v3089_v38, %v3719_v3  ;;  %v1306_v47 = vmul.f32 %v2847_v31, %v3659_v57  ;;  %v1292_v24 = vmul.f32 %v3720_v61, %v3662_v49  ;;  %v3721_v49 = vld [vmem:[#allocation12_spill] sm:$0xff] }
 0x27f   :  { %v872_v52 = vrot.slane %v3074_v53, 7  ;;  %v758_v39 = vrot.slane %v3074_v53, 6  ;;  %v790_v17 = vrot.slane %v3071_v59, 6  ;;  %v3109_v46 = vmul.f32 0.0, %v3074_v53 }
 0x280   :  { %v3112_v41 = vmul.f32 0.0, %v3071_v59  ;;  %v908_v34 = vrot.slane %v3071_v59, 7  ;;  %v1317_v6 = vmul.f32 %v3089_v38, %v3721_v49  ;;  %v664_v18 = vadd.f32 %v663_v44, %v662_v14 }
 0x281   :  { %873 = vrot.lane.b32.xlu0 %v872_v52, %s1842_s20  ;;  %v3101_v62 = vsel %vm706_vm13, %v760_v43, %v758_v39  ;;  %v1304_v52 = vmul.f32 %v2833_v20, %v3617_v22  ;;  %v640_v39 = vadd.f32 %v639_v23, %v3074_v53  ;;  %v3130_v48 = vsel %vm706_vm13, %v792_v42, %v790_v17 }
 0x282   :  { %1374 = vrot.lane.b32.xlu1 %v3101_v62, %s1863_s3  ;;  %v901_v43 = vrot.slane %v2609_v56, 7  ;;  %v622_v28 = vadd.f32 %v3109_v46, %v2919_v32  ;;  %v647_v4 = vadd.f32 %v3112_v41, %v2933_v58  ;;  %v1296_v42 = vadd.f32 %v1294_v2, %v1292_v24 }
 0x283   :  { %v1308_v51 = vadd.f32 %v1306_v47, %v1304_v52  ;;  %v659_v56 = vadd.f32 %v2939_v0, %v3112_v41  ;;  %v877_v30 = vrot.slane %v640_v39, 6  ;;  %v665_v17 = vadd.f32 %v664_v18, %v3071_v59  ;;  %v3722_v47 = vld [vmem:[#allocation74_spill] sm:$0xff]  ;;  %v3723_v52 = vld [vmem:[#allocation13_spill] sm:$0xff] }
 0x284   :  { %v846_v13 = vrot.slane %v622_v28, 6  ;;  %v886_v23 = vrot.slane %v647_v4, 6  ;;  %v848_v32 = vsel %vm704_vm12, %v1982_v21, %v843_v60  ;;  %v888_v58 = vsel %vm704_vm12, %v2002_v26, %v883_v12  ;;  %v3725_v60 = vld [vmem:[#allocation66_spill] sm:$0xff] }
 0x285   :  { %909 = vrot.lane.b32.xlu0 %v908_v34, %s1842_s20  ;;  %v904_v14 = vrot.slane %v659_v56, 6  ;;  %v906_v2 = vsel %vm704_vm12, %v3658_v37, %v901_v43  ;;  %v1005_v0 = vmul.f32 %v3024_v8, %v3722_v47  ;;  %v1315_v26 = vmul.f32 %v3066_v9, %v3723_v52  ;;  %v3724_v8 = vld [vmem:[#allocation61_spill] sm:$0xff] }
 0x286   :  { %1390 = vrot.lane.b32.xlu1 %v3130_v48, %s1864_s4  ;;  %v3160_v24 = vsel %vm706_vm13, %v848_v32, %v846_v13  ;;  %v3163_v21 = vsel %vm706_vm13, %v888_v58, %v886_v23  ;;  %v1313_v39 = vadd.f32 %v1311_v1, %v1309_v40  ;;  %v1216_v37 = vsel %vm1070_vm7, 1.0, %v1209_v50  ;;  %v3726_v50 = vld [vmem:[#allocation40_spill] sm:$0xff]  ;;  %v3730_v32 = vld [vmem:[#allocation59_spill] sm:$0xff] }
 0x287   :  { %v3169_v44 = vsel %vm706_vm13, %v906_v2, %v904_v14  ;;  %v1004_v12 = vmul.f32 %v3700_v15, %v3725_v60  ;;  %v913_v43 = vrot.slane %v665_v17, 6  ;;  %v1173_v18 = vrot.slane %v3074_v53, %v1974_v16  ;;  %v3727_v17 = vld [vmem:[#allocation51_spill] sm:$0xff] }
 0x288   :  { %v1319_v28 = vadd.f32 %v1317_v6, %v1315_v26  ;;  %v1321_v40 = vmul.f32 0.005, %v1216_v37  ;;  %v1231_v1 = vsel %vm1070_vm7, 0.0, %v3726_v50  ;;  %v1007_v56 = vmul.f32 %v3702_v10, %v2754_v36  ;;  %v3728_v36 = vld [vmem:[#allocation78_spill] sm:$0xff] }
 0x289   :  { %v1608_v34 = vpop.permute.xlu0 %1607  ;;  %1649 = vrot.lane.b32.xlu0 %v1308_v51, %s1862_s2  ;;  %v1006_v51 = vadd.f32 %v1005_v0, %v1004_v12  ;;  %v628_v13 = vadd.f32 %v3727_v17, %v3109_v46  ;;  %v1330_v10 = vmul.f32 %v3728_v36, %v3659_v57  ;;  %v1328_v58 = vmul.f32 %v3730_v32, %v3617_v22  ;;  %v1602_v12 = vpop.permute.xlu1 %1601 }
 0x28a   :  { %v3156_v61 = vsel %vm1413_vm9, %v1711_v25, %v1608_v34  ;;  %878 = vrot.lane.b32.xlu1 %v877_v30, %s1842_s20  ;;  %v1298_v25 = vmul.f32 0.005, %v3724_v8  ;;  %v1323_v15 = vadd.f32 %v1321_v40, %v1319_v28  ;;  %v3729_v34 = vld [vmem:[#allocation58_spill] sm:$0xff]  ;;  %v1327_v14 = vmul.f32 0.0, %v3719_v3 }
 0x28b   :  { %v1008_v53 = vadd.f32 %v1007_v56, %v1006_v51  ;;  %v855_v23 = vrot.slane %v628_v13, 6  ;;  %v1333_v2 = vmul.f32 0.0, %v3713_v7  ;;  %v1332_v47 = vadd.f32 %v1330_v10, %v1328_v58  ;;  %v3734_v56 = vld [vmem:[#allocation83_spill] sm:$0xff]  ;;  %v3736_v13 = vld [vmem:[#allocation5_spill] sm:$0xff] }
 0x28c   :  { %v1300_v4 = vadd.f32 %v1298_v25, %v1296_v42  ;;  %v1325_v6 = vadd.f32 %v1323_v15, %v1231_v1  ;;  %v653_v57 = vadd.f32 %v2865_v19, %v3112_v41  ;;  %v1303_v7 = vmul.f32 %v3066_v9, %v3719_v3  ;;  %v3732_v25 = vld [vmem:[#allocation31_spill] sm:$0xff] }
 0x28d   :  { %1655 = vrot.lane.b32.xlu0 %v1313_v39, %s1861_s30  ;;  %v1009_v42 = vadd.f32 %v1008_v53, %v3101_v62  ;;  %v3212_v8 = vmul.f32 0.0, %v3101_v62  ;;  %v1312_v41 = vmul.f32 %v2847_v31, %v3617_v22  ;;  %v3228_v31 = vmul.f32 0.0, %v3130_v48 }
 0x28e   :  { %914 = vrot.lane.b32.xlu1 %v913_v43, %s1842_s20  ;;  %v1302_v30 = vadd.f32 %v1300_v4, %v1173_v18  ;;  %v895_v39 = vrot.slane %v653_v57, 6  ;;  %v3221_v43 = vpop.permute.xlu0 %1402  ;;  %v1034_v40 = vadd.f32 %v3046_v11, %v3130_v48  ;;  %vm1435_vm7 = vcmask 113664  }
 0x28f   :  { %v991_v9 = vadd.f32 %v3212_v8, %v2861_v29  ;;  %v1016_v51 = vadd.f32 %v3228_v31, %v2876_v63  ;;  %v3735_v63 = vld [vmem:[#allocation77_spill] sm:$0xff] }
 0x291   :  { %1665 = vrot.lane.b32.xlu0 %v2859_v33, %s1860_s29  ;;  %v634_v33 = vadd.f32 %v2853_v54, %v3109_v46  ;;  %v1336_v54 = vadd.f32 %v1333_v2, %v1327_v14  ;;  %v3731_v46 = vld [vmem:[#allocation11_spill] sm:$0xff] }
 0x292   :  { %1641 = vrot.lane.b32.xlu1 %v1302_v30, %s1863_s3  ;;  %v1305_v26 = vmul.f32 %v3089_v38, %v3731_v46  ;;  %v3733_v38 = vld [vmem:[#allocation53_spill] sm:$0xff]  ;;  %v1028_v30 = vadd.f32 %v3734_v56, %v3228_v31 }
 0x293   :  { %v866_v0 = vrot.slane %v634_v33, 6  ;;  %v1310_v60 = vmul.f32 %v2833_v20, %v3733_v38  ;;  %v1003_v20 = vadd.f32 %v2867_v5, %v3212_v8  ;;  %v1225_v5 = vrot.slane %v3071_v59, %v1974_v16 }
 0x294   :  { %v1307_v19 = vadd.f32 %v1305_v26, %v1303_v7  ;;  %v1334_v10 = vmul.f32 %v3730_v32, %v3733_v38 }
 0x295   :  { %1671 = vrot.lane.b32.xlu0 %v1325_v6, %s1864_s4  ;;  %v1314_v62 = vadd.f32 %v1312_v41, %v1310_v60  ;;  %v1326_v15 = vadd.f32 %v3735_v63, %v1225_v5  ;;  %v3738_v41 = vld [vmem:[#allocation45_spill] sm:$0xff]  ;;  %v3739_v60 = vld [vmem:[#allocation6_spill] sm:$0xff] }
 0x296   :  { %1539 = vrot.lane.b32.xlu1 %v1009_v42, %s1863_s3  ;;  %v1335_v42 = vmul.f32 %v3728_v36, %v3617_v22 }
 0x298   :  { %v1337_v58 = vadd.f32 %v1335_v42, %v1334_v10 }
 0x299   :  { %1559 = vrot.lane.b32.xlu0 %v3729_v34, %s1851_s0 }
 0x29a   :  { %856 = vrot.lane.b32.xlu1 %v855_v23, %s1840_s18 }
 0x29d   :  { %1681 = vrot.lane.b32.xlu0 %v1332_v47, %s1851_s0 }
 0x29e   :  { %867 = vrot.lane.b32.xlu1 %v866_v0, %s1840_s18  ;;  %v3737_v0 = vld [vmem:[#allocation71_spill] sm:$0xff] }
 0x2a1   :  { %1687 = vrot.lane.b32.xlu0 %v1336_v54, %s1856_s25  ;;  %v3230_v3 = vpop.permute.xlu1 %1398 }
 0x2a2   :  { %896 = vrot.lane.b32.xlu1 %v895_v39, %s1840_s18 }
 0x2a5   :  { %1567 = vrot.lane.b32.xlu0 %v3732_v25, %s1855_s24  ;;  %v997_v25 = vadd.f32 %v3738_v41, %v3212_v8  ;;  %v3745_v41 = vld [vmem:[#allocation19_spill] sm:$0xff] }
 0x2a6   :  { %1647 = vrot.lane.b32.xlu1 %v1307_v19, %s1862_s2 }
 0x2a9   :  { %1527 = vrot.lane.b32.xlu0 %v991_v9, %s1857_s26  ;;  %v3740_v9 = vld [vmem:[#allocation22_spill] sm:$0xff] }
 0x2aa   :  { %1657 = vrot.lane.b32.xlu1 %v1314_v62, %s1861_s30 }
 0x2ab   :  { %v1616_v18 = vpop.permute.xlu0 %1615 }
 0x2ac   :  { %v1715_v28 = vsel %vm1415_vm10, %v3156_v61, %v1616_v18  ;;  %v1329_v61 = vmul.f32 0.0, %v3731_v46 }
 0x2ad   :  { %1535 = vrot.lane.b32.xlu0 %v1003_v20, %s1853_s22 }
 0x2ae   :  { %1663 = vrot.lane.b32.xlu1 %v1216_v37, %s1860_s29  ;;  %v1331_v11 = vadd.f32 %v1329_v61, %v1327_v14 }
 0x2af   :  { %v1624_v29 = vpop.permute.xlu0 %1623  ;;  %v3238_v4 = vpop.permute.xlu1 %1406 }
 0x2b0   :  { %v1717_v50 = vsel %vm1417_vm11, %v1715_v28, %v1624_v29 }
 0x2b1   :  { %1543 = vrot.lane.b32.xlu0 %v1016_v51, %s1862_s2 }
 0x2b2   :  { %1555 = vrot.lane.b32.xlu1 %v1034_v40, %s1864_s4 }
 0x2b3   :  { %v1355_v37 = vpop.permute.xlu0 %1354  ;;  %v1634_v1 = vpop.permute.xlu1 %1633 }
 0x2b5   :  { %1551 = vrot.lane.b32.xlu0 %v1028_v30, %s1860_s29 }
 0x2b6   :  { %1673 = vrot.lane.b32.xlu1 %v1326_v15, %s1864_s4  ;;  %v3741_v15 = vld [vmem:[#allocation7_spill] sm:$0xff] }
 0x2b7   :  { %v3255_v48 = vpop.permute.xlu0 %1386  ;;  %v1359_v16 = vpop.permute.xlu1 %1358 }
 0x2ba   :  { %1679 = vrot.lane.b32.xlu1 %v1331_v11, %s1851_s0 }
 0x2bb   :  { %v834_v59 = vpop.permute.xlu0 %833  ;;  %v1351_v53 = vpop.permute.xlu1 %1350 }
 0x2bc   :  { %v1410_v6 = vsel %vm1409_vm0, %v3697_v27, %v1351_v53  ;;  %v841_v62 = vsel %vm704_vm12, %v3740_v9, %v834_v59  ;;  %v1338_v9 = vmul.f32 0.0, %v3723_v52  ;;  %v3747_v52 = vld [vmem:[#allocation65_spill] sm:$0xff] }
 0x2bd   :  { %v1412_v17 = vsel %vm1411_vm8, %v1410_v6, %v1355_v37 }
 0x2be   :  { %1563 = vrot.lane.b32.xlu1 %v3736_v13, %s1856_s25  ;;  %v1414_v23 = vsel %vm1413_vm9, %v1412_v17, %v1359_v16 }
 0x2bf   :  { %v3268_v33 = vpop.permute.xlu0 %862  ;;  %v1367_v34 = vpop.permute.xlu1 %1366 }
 0x2c2   :  { %1689 = vrot.lane.b32.xlu1 %v1337_v58, %s1856_s25 }
 0x2c3   :  { %v1363_v27 = vpop.permute.xlu0 %1362  ;;  %v1383_v14 = vpop.permute.xlu1 %1382 }
 0x2c4   :  { %v1416_v22 = vsel %vm1415_vm10, %v1414_v23, %v1363_v27 }
 0x2c5   :  { %v1418_v36 = vsel %vm1417_vm11, %v1416_v22, %v1367_v34  ;;  %v3742_v34 = vld [vmem:[#allocation23_spill] sm:$0xff] }
 0x2c6   :  { %1452 = vrot.lane.b32.xlu1 %v3160_v24, %s1857_s26  ;;  %v1719_v24 = vsel %vm1419_vm15, %v1717_v50, %v2989_v55 }
 0x2c7   :  { %v1371_v2 = vpop.permute.xlu0 %1370  ;;  %v1594_v32 = vpop.permute.xlu1 %1593 }
 0x2c8   :  { %v1420_v47 = vsel %vm1419_vm15, %v1418_v36, %v1371_v2  ;;  %v1710_v57 = vsel %vm1409_vm0, %v3737_v0, %v1594_v32  ;;  %v3743_v2 = vld [vmem:[#allocation20_spill] sm:$0xff] }
 0x2c9   :  { %v1712_v54 = vsel %vm1411_vm8, %v1710_v57, %v1602_v12  ;;  %v1022_v12 = vadd.f32 %v3739_v60, %v3228_v31 }
 0x2ca   :  { %1468 = vrot.lane.b32.xlu1 %v3163_v21, %s1862_s2 }
 0x2cb   :  { %v1379_v46 = vpop.permute.xlu0 %1378  ;;  %v1618_v26 = vpop.permute.xlu1 %1617 }
 0x2ce   :  { %1476 = vrot.lane.b32.xlu1 %v3169_v44, %s1860_s29 }
 0x2cf   :  { %v1640_v39 = vpop.permute.xlu0 %1639  ;;  %v1626_v7 = vpop.permute.xlu1 %1625 }
 0x2d0   :  { %v3286_v19 = vsel %vm1421_vm1, %v1719_v24, %v1640_v39 }
 0x2d2   :  { %1531 = vrot.lane.b32.xlu1 %v997_v25, %s1858_s27  ;;  %v870_v25 = vsel %vm704_vm12, %v3745_v41, %v3268_v33 }
 0x2d3   :  { %v852_v21 = vpop.permute.xlu0 %851  ;;  %v3291_v38 = vpop.permute.xlu1 %1484 }
 0x2d6   :  { %1547 = vrot.lane.b32.xlu1 %v1022_v12, %s1861_s30 }
 0x2d7   :  { %v892_v44 = vpop.permute.xlu0 %891  ;;  %v3296_v55 = vpop.permute.xlu1 %1492 }
 0x2db   :  { %v3300_v18 = vpop.permute.xlu0 %1488  ;;  %v839_v20 = vpop.permute.xlu1 %838 }
 0x2dc   :  { %v842_v8 = vsel %vm706_vm13, %v841_v62, %v839_v20  ;;  %v1340_v62 = vmul.f32 0.0, %v3721_v49  ;;  %v3746_v20 = vld [vmem:[#allocation21_spill] sm:$0xff] }
 0x2dd   :  { %1448 = vrot.lane.b32.xlu0 %v842_v8, %s1840_s18 }
 0x2de   :  { %v1342_v33 = vadd.f32 %v1340_v62, %v1338_v9  ;;  %v3749_v9 = vld [vmem:[#allocation27_spill] sm:$0xff] }
 0x2df   :  { %v3304_v28 = vpop.permute.xlu0 %1496  ;;  %v1610_v29 = vpop.permute.xlu1 %1609 }
 0x2e0   :  { %v1714_v31 = vsel %vm1413_vm9, %v1712_v54, %v1610_v29  ;;  %v1347_v49 = vadd.f32 1.0, %v1342_v33 }
 0x2e1   :  { %v1716_v51 = vsel %vm1415_vm10, %v1714_v31, %v1618_v26  ;;  %v3744_v26 = vld [vmem:[#allocation24_spill] sm:$0xff] }
 0x2e2   :  { %v1718_v40 = vsel %vm1417_vm11, %v1716_v51, %v1626_v7  ;;  %v859_v24 = vsel %vm704_vm12, %v3744_v26, %v852_v21  ;;  %v899_v21 = vsel %vm704_vm12, %v3746_v20, %v892_v44  ;;  %v1865_v51 = vmov 0.0  }
 0x2e3   :  { %v1441_v50 = vpop.permute.xlu0 %1440  ;;  %v1445_v5 = vpop.permute.xlu1 %1444  ;;  %v1720_v61 = vsel %vm1419_vm15, %v1718_v40, %v1634_v1 }
 0x2e4   :  { %v1499_v37 = vsel %vm1409_vm0, %v2995_v45, %v1441_v50 }
 0x2e5   :  { %v3313_v56 = vsel %vm1411_vm8, %v1499_v37, %v1445_v5  ;;  %v3748_v5 = vld [vmem:[#allocation35_spill] sm:$0xff] }
 0x2e7   :  { %v1520_v30 = vpop.permute.xlu0 %1519  ;;  %v1516_v63 = vpop.permute.xlu1 %1515 }
 0x2e8   :  { %v1574_v11 = vsel %vm1409_vm0, %v3741_v15, %v1516_v63  ;;  %vm1437_vm0 = vcmask 121856  }
 0x2e9   :  { %v1575_v16 = vsel %vm1411_vm8, %v1574_v11, %v1520_v30  ;;  %vm1753_vm8 = vcmask 1045504  }
 0x2eb   :  { %v1524_v59 = vpop.permute.xlu1 %1523 }
 0x2ec   :  { %v3319_v53 = vsel %vm1413_vm9, %v1575_v16, %v1524_v59 }
 0x2f3   :  { %v874_v42 = vpop.permute.xlu0 %873 }
 0x2f4   :  { %v1375_v6 = vpop.permute.xlu1 %1374  ;;  %v881_v58 = vsel %vm704_vm12, %v3742_v34, %v874_v42 }
 0x2f5   :  { %v1422_v1 = vsel %vm1421_vm1, %v1420_v47, %v1375_v6 }
 0x2f6   :  { %v1424_v45 = vsel %vm1423_vm2, %v1422_v1, %v1379_v46 }
 0x2f7   :  { %v1426_v17 = vsel %vm1425_vm3, %v1424_v45, %v1383_v14  ;;  %v910_v22 = vpop.permute.xlu0 %909 }
 0x2f8   :  { %v1428_v13 = vsel %vm1427_vm4, %v1426_v17, %v3255_v48  ;;  %v1391_v10 = vpop.permute.xlu1 %1390  ;;  %v917_v32 = vsel %vm704_vm12, %v3743_v2, %v910_v22 }
 0x2f9   :  { %v3327_v23 = vsel %vm1429_vm5, %v1428_v13, %v1391_v10 }
 0x2fb   :  { %v1650_v0 = vpop.permute.xlu0 %1649 }
 0x2fc   :  { %v879_v27 = vpop.permute.xlu1 %878 }
 0x2fd   :  { %v882_v36 = vsel %vm706_vm13, %v881_v58, %v879_v27 }
 0x2fe   :  { %1464 = vrot.lane.b32.xlu0 %v882_v36, %s1858_s27 }
 0x2ff   :  { %v1656_v29 = vpop.permute.xlu0 %1655 }
 0x300   :  { %v915_v14 = vpop.permute.xlu1 %914 }
 0x301   :  { %v918_v47 = vsel %vm706_vm13, %v917_v32, %v915_v14 }
 0x302   :  { %1480 = vrot.lane.b32.xlu0 %v918_v47, %s1861_s30 }
 0x303   :  { %v1666_v50 = vpop.permute.xlu0 %1665 }
 0x304   :  { %v1642_v48 = vpop.permute.xlu1 %1641 }
 0x305   :  { %v1722_v57 = vsel %vm1421_vm1, %v1720_v61, %v1642_v48 }
 0x306   :  { %v3339_v54 = vsel %vm1423_vm2, %v1722_v57, %v1650_v0 }
 0x307   :  { %v1672_v37 = vpop.permute.xlu0 %1671 }
 0x308   :  { %v1540_v46 = vpop.permute.xlu1 %1539 }
 0x30b   :  { %v1560_v63 = vpop.permute.xlu0 %1559 }
 0x30c   :  { %v857_v39 = vpop.permute.xlu1 %856 }
 0x30d   :  { %v860_v7 = vsel %vm706_vm13, %v859_v24, %v857_v39 }
 0x30e   :  { %1456 = vrot.lane.b32.xlu0 %v860_v7, %s1857_s26 }
 0x30f   :  { %v1682_v16 = vpop.permute.xlu0 %1681 }
 0x310   :  { %v868_v60 = vpop.permute.xlu1 %867 }
 0x311   :  { %v871_v12 = vsel %vm706_vm13, %v870_v25, %v868_v60 }
 0x312   :  { %1460 = vrot.lane.b32.xlu1 %v871_v12, %s1858_s27 }
 0x314   :  { %v897_v8 = vpop.permute.xlu1 %896 }
 0x315   :  { %v900_v31 = vsel %vm706_vm13, %v899_v21, %v897_v8  ;;  %vm1431_vm13 = vcmask 97280  }
 0x316   :  { %1695 = vrot.lane.b32.xlu1 %v1865_v51, %s1855_s24  ;;  %1472 = vrot.lane.b32.xlu0 %v900_v31, %s1862_s2 }
 0x318   :  { %v1648_v40 = vpop.permute.xlu1 %1647 }
 0x31a   :  { %1571 = vrot.lane.b32.xlu1 %v3056_v35, %s1859_s28  ;;  %1697 = vrot.lane.b32.xlu0 %v3747_v52, %s1855_s24  ;;  %v3364_v35 = vpop.permute.xlu0 %1687 }
 0x31c   :  { %v1658_v44 = vpop.permute.xlu1 %1657 }
 0x31d   :  { %v1726_v20 = vsel %vm1425_vm3, %v3339_v54, %v1658_v44 }
 0x31e   :  { %1705 = vrot.lane.b32.xlu1 %v3748_v5, %s1859_s28  ;;  %1703 = vrot.lane.b32.xlu0 %v1347_v49, %s1859_s28  ;;  %v1568_v45 = vpop.permute.xlu0 %1567  ;;  %v1728_v52 = vsel %vm1427_vm4, %v1726_v20, %v1666_v50 }
 0x320   :  { %v1664_v61 = vpop.permute.xlu1 %1663 }
 0x322   :  { %v1528_v17 = vpop.permute.xlu0 %1527 }
 0x323   :  { %v1577_v10 = vsel %vm1415_vm10, %v3319_v53, %v1528_v17 }
 0x324   :  { %v1556_v30 = vpop.permute.xlu1 %1555 }
 0x326   :  { %v1536_v58 = vpop.permute.xlu0 %1535 }
 0x328   :  { %v1674_v15 = vpop.permute.xlu1 %1673 }
 0x329   :  { %v1730_v49 = vsel %vm1429_vm5, %v1728_v52, %v1674_v15 }
 0x32a   :  { %v1544_v2 = vpop.permute.xlu0 %1543 }
 0x32c   :  { %v1680_v11 = vpop.permute.xlu1 %1679 }
 0x32e   :  { %v1552_v32 = vpop.permute.xlu0 %1551 }
 0x330   :  { %v1564_v59 = vpop.permute.xlu1 %1563 }
 0x334   :  { %v1690_v6 = vpop.permute.xlu1 %1689 }
 0x338   :  { %v1453_v1 = vpop.permute.xlu1 %1452 }
 0x33c   :  { %v1469_v42 = vpop.permute.xlu1 %1468 }
 0x340   :  { %v1477_v13 = vpop.permute.xlu1 %1476 }
 0x344   :  { %v1532_v34 = vpop.permute.xlu1 %1531 }
 0x345   :  { %v1578_v27 = vsel %vm1417_vm11, %v1577_v10, %v1532_v34 }
 0x346   :  { %v1579_v22 = vsel %vm1419_vm15, %v1578_v27, %v1536_v58 }
 0x347   :  { %v1580_v36 = vsel %vm1421_vm1, %v1579_v22, %v1540_v46  ;;  %v1723_v46 = vsel %vm1423_vm2, %v3286_v19, %v1648_v40 }
 0x348   :  { %v1581_v48 = vsel %vm1423_vm2, %v1580_v36, %v1544_v2  ;;  %v1548_v0 = vpop.permute.xlu1 %1547  ;;  %v1725_v21 = vsel %vm1425_vm3, %v1723_v46, %v1656_v29 }
 0x349   :  { %v1582_v26 = vsel %vm1425_vm3, %v1581_v48, %v1548_v0  ;;  %v1727_v31 = vsel %vm1427_vm4, %v1725_v21, %v1664_v61 }
 0x34a   :  { %v1583_v24 = vsel %vm1427_vm4, %v1582_v26, %v1552_v32  ;;  %v1729_v44 = vsel %vm1429_vm5, %v1727_v31, %v1672_v37  ;;  %v1732_v37 = vsel %vm1431_vm13, %v1730_v49, %v1682_v16 }
 0x34b   :  { %v1584_v41 = vsel %vm1429_vm5, %v1583_v24, %v1556_v30  ;;  %v1731_v61 = vsel %vm1431_vm13, %v1729_v44, %v1680_v11 }
 0x34c   :  { %v1585_v8 = vsel %vm1431_vm13, %v1584_v41, %v1560_v63 }
 0x34d   :  { %v1586_v29 = vsel %vm1433_vm6, %v1585_v8, %v1564_v59 }
 0x34e   :  { %v1587_v15 = vsel %vm1435_vm7, %v1586_v29, %v1568_v45 }
 0x34f   :  { %v1449_v14 = vpop.permute.xlu0 %1448 }
 0x350   :  { %v1501_v53 = vsel %vm1413_vm9, %v3313_v56, %v1449_v14  ;;  %v1432_v56 = vsel %vm1431_vm13, %v3327_v23, %v3749_v9  ;;  %vm1756_vm9 = vcmask 130048  }
 0x351   :  { %v1502_v7 = vsel %vm1415_vm10, %v1501_v53, %v1453_v1  ;;  %v1434_v40 = vsel %vm1433_vm6, %v1432_v56, %v3230_v3  ;;  %vm1759_vm10 = vcmask 126976  }
 0x352   :  { %v1436_v63 = vsel %vm1435_vm7, %v1434_v40, %v3221_v43 }
 0x353   :  { %v1438_v43 = vsel %vm1437_vm0, %v1436_v63, %v3238_v4 }
 0x370   :  { %v1465_v47 = vpop.permute.xlu0 %1464 }
 0x374   :  { %v1481_v57 = vpop.permute.xlu0 %1480 }
 0x380   :  { %v1457_v39 = vpop.permute.xlu0 %1456 }
 0x381   :  { %v1503_v25 = vsel %vm1417_vm11, %v1502_v7, %v1457_v39 }
 0x384   :  { %v1461_v60 = vpop.permute.xlu1 %1460 }
 0x385   :  { %v1504_v12 = vsel %vm1419_vm15, %v1503_v25, %v1461_v60 }
 0x386   :  { %v1505_v62 = vsel %vm1421_vm1, %v1504_v12, %v1465_v47 }
 0x387   :  { %v1506_v19 = vsel %vm1423_vm2, %v1505_v62, %v1469_v42  ;;  %v1733_v42 = vsel %vm1433_vm6, %v1731_v61, %v3364_v35 }
 0x388   :  { %v1473_v51 = vpop.permute.xlu0 %1472  ;;  %v1696_v33 = vpop.permute.xlu1 %1695 }
 0x389   :  { %v1507_v23 = vsel %vm1425_vm3, %v1506_v19, %v1473_v51  ;;  %v1735_v45 = vsel %vm1435_vm7, %v1733_v42, %v1696_v33 }
 0x38a   :  { %v1508_v54 = vsel %vm1427_vm4, %v1507_v23, %v1477_v13 }
 0x38b   :  { %v1509_v5 = vsel %vm1429_vm5, %v1508_v54, %v1481_v57 }
 0x38c   :  { %v1510_v3 = vsel %vm1431_vm13, %v1509_v5, %v3291_v38  ;;  %v1698_v30 = vpop.permute.xlu0 %1697  ;;  %v1572_v50 = vpop.permute.xlu1 %1571  ;;  %v1734_v38 = vsel %vm1433_vm6, %v1732_v37, %v1690_v6 }
 0x38d   :  { %v1511_v59 = vsel %vm1433_vm6, %v1510_v3, %v3300_v18  ;;  %v1588_v11 = vsel %vm1437_vm0, %v1587_v15, %v1572_v50  ;;  %v1736_v16 = vsel %vm1435_vm7, %v1734_v38, %v1698_v30 }
 0x38e   :  { %v1512_v1 = vsel %vm1435_vm7, %v1511_v59, %v3296_v55  ;;  %v1743_v10 = vrot.slane %v1588_v11, 2 }
 0x38f   :  { %v1513_v18 = vsel %vm1437_vm0, %v1512_v1, %v3304_v28 }
 0x390   :  { %v1740_v17 = vrot.slane %v1513_v18, 5  ;;  %v1704_v55 = vpop.permute.xlu0 %1703  ;;  %v1706_v13 = vpop.permute.xlu1 %1705 }
 0x391   :  { %v1737_v6 = vsel %vm1437_vm0, %v1735_v45, %v1704_v55  ;;  %v1738_v35 = vsel %vm1437_vm0, %v1736_v16, %v1706_v13 }
 0x392   :  { %v1752_v34 = vsel %vm1062_vm14, %v1438_v43, %v1740_v17  ;;  %v1747_v4 = vrot.slane %v1737_v6, 7  ;;  %v1748_v58 = vrot.slane %v1738_v35, 7 }
 0x393   :  { %v1754_v28 = vsel %vm1753_vm8, %v1752_v34, %v1743_v10 }
 0x394   :  { %1757 = vst.msk [vmem:[%s3437_s1] sm:$0xff] %vm1756_vm9, %v1754_v28  ;;  %v1755_v27 = vsel %vm704_vm12, %v1743_v10, %v1747_v4  ;;  %v1749_v22 = vsel %vm704_vm12, %v1747_v4, %v1748_v58 }
 0x395   :  { %1758 = vst.msk [vmem:[%s3437_s1 + $0x8] sm:$0xff] %vm1756_vm9, %v1755_v27 }
 0x396   :  { %1760 = vst.msk [vmem:[%s3437_s1 + $0x10] sm:$0x1f] %vm1759_vm10, %v1749_v22 }
 0x397   :  { %1765 = vsyncpa [#allocation3], 1 }

</bundles_post_ra>
